<compile_context>
chip_gen: v7x
topology: tpu7x:2x2x1
jax: 0.10.0
libtpu: 0.0.40
codegen_flags: <defaults>
</compile_context>

<pallas_src>
import jax
import jax.numpy as jnp
from jax import lax
from jax.experimental import pallas as pl
from jax.experimental.pallas import tpu as pltpu

# Fixed model dimensions (implied by the PyTorch module).
C_IN, C_OUT, K = 1, 20, 3
H_IN = W_IN = 28
H_CONV = W_CONV = H_IN - K + 1          # 26
H_POOL = W_POOL = H_CONV // 2           # 13
FEAT = C_OUT * H_POOL * W_POOL          # 3380
HID = 128
NCLS = 10
CONV_COLS = C_OUT * W_CONV              # 520  (column layout: oc*26 + j)
CM_COLS = CONV_COLS - 1                 # 519  (adjacent-column max drops last col)


def fused_cnn_kernel(x_ref, cmat_ref, brow_ref, er_ref, w1g_ref, b1_ref,
                     w2_ref, b2_ref, out_ref):
    """Per-image fused forward.
    x_ref:    (1, 28, 28)      image
    cmat_ref: (3, 28, 520)     banded conv weights (one matrix per kh)
    brow_ref: (1, 520)         conv bias broadcast over the (oc*26 + j) columns
    er_ref:   (13, 25)         even-row selection matrix
    w1g_ref:  (13, 519, 128)   fc1 weights repacked to the pooled layout
    b1_ref:   (1, 128); w2_ref: (128, 10); b2_ref: (1, 10)
    out_ref:  (1, 1, 10)       log-probabilities
    """
    x2d = x_ref[0]                                                   # (28, 28)

    # conv1 for all 20 output channels at once -> (26, 520), layout (i, oc*26 + j)
    conv = jnp.dot(x2d[0:H_CONV, :], cmat_ref[0],
                   preferred_element_type=jnp.float32)
    conv += jnp.dot(x2d[1:1 + H_CONV, :], cmat_ref[1],
                    preferred_element_type=jnp.float32)
    conv += jnp.dot(x2d[2:2 + H_CONV, :], cmat_ref[2],
                    preferred_element_type=jnp.float32)
    conv += brow_ref[...]                                            # + bias

    # 2x2 / stride-2 max-pool, vectorized over all channels (VPU maxes + 1 matmul).
    cm = jnp.maximum(conv[:, 0:CM_COLS], conv[:, 1:CM_COLS + 1])     # (26, 519)
    rm = jnp.maximum(cm[0:H_CONV - 1, :], cm[1:H_CONV, :])           # (25, 519)
    g = jnp.dot(er_ref[...], rm, preferred_element_type=jnp.float32)  # (13, 519)
    g = jnp.maximum(g, 0.0)   # relu (odd columns are unused -> zero fc1 weights)

    # fc1: hidden[k] = sum_{p, c} g[p, c] * w1g[p, c, k]  (column selection folded in)
    h = jnp.dot(g[0:1, :], w1g_ref[0], preferred_element_type=jnp.float32)
    for p in range(1, H_POOL):
        h += jnp.dot(g[p:p + 1, :], w1g_ref[p],
                     preferred_element_type=jnp.float32)
    h = jnp.maximum(h + b1_ref[...], 0.0)                            # (1, 128)

    # fc2 + log_softmax
    logits = jnp.dot(h, w2_ref[...],
                     preferred_element_type=jnp.float32) + b2_ref[...]   # (1, 10)
    m = jnp.max(logits, axis=1, keepdims=True)
    z = logits - m
    lse = jnp.log(jnp.sum(jnp.exp(z), axis=1, keepdims=True))
    out_ref[0] = z - lse


def prepack_params(params):
    """One-time repack of PyTorch-layout params into kernel-friendly operands."""
    wc, bc, w1, b1, w2, b2 = params

    # Banded conv matrices: Cmat[kh, j + kw, oc*26 + j] = wc[oc, 0, kh, kw].
    wc2 = wc[:, 0]                                                   # (20, 3, 3)
    j = jnp.arange(W_CONV)
    kw = jnp.arange(K)
    sel = jax.nn.one_hot(j[None, :] + kw[:, None], W_IN,
                         dtype=jnp.float32)                          # (kw, j, m)
    cmat = jnp.einsum('ohw,wjm->hmoj', wc2, sel).reshape(K, W_IN, CONV_COLS)

    # Conv bias broadcast to the (oc*26 + j) column layout.
    brow = jnp.repeat(bc, W_CONV).reshape(1, CONV_COLS)

    # Even-row selection: Er[s, 2s] = 1.
    er = (jnp.arange(H_CONV - 1)[None, :] ==
          2 * jnp.arange(H_POOL)[:, None]).astype(jnp.float32)       # (13, 25)

    # fc1 weights: W1g[ip, oc*26 + 2*jp, k] = w1[k, oc*169 + ip*13 + jp], zeros elsewhere.
    w1r = w1.reshape(HID, C_OUT, H_POOL, W_POOL)                     # (k, oc, ip, jp)
    w1t = jnp.transpose(w1r, (2, 1, 3, 0))                           # (ip, oc, jp, k)
    w1g = jnp.zeros((H_POOL, C_OUT, W_CONV, HID), jnp.float32)
    w1g = w1g.at[:, :, 0:2 * W_POOL:2, :].set(w1t)
    w1g = w1g.reshape(H_POOL, CONV_COLS, HID)[:, :CM_COLS, :]        # (13, 519, 128)

    return (cmat, brow, er, w1g,
            b1.reshape(1, HID), w2.T, b2.reshape(1, NCLS))


def forward(x, packed):
    cmat, brow, er, w1g, b1r, w2t, b2r = packed
    N = x.shape[0]
    x3 = x.reshape(N, H_IN, W_IN)        # single input channel

    out3 = pl.pallas_call(
        fused_cnn_kernel,
        out_shape=jax.ShapeDtypeStruct((N, 1, NCLS), jnp.float32),
        grid=(N,),
        in_specs=[
            pl.BlockSpec((1, H_IN, W_IN), lambda b: (b, 0, 0)),
            pl.BlockSpec((K, W_IN, CONV_COLS), lambda b: (0, 0, 0)),
            pl.BlockSpec((1, CONV_COLS), lambda b: (0, 0)),
            pl.BlockSpec((H_POOL, H_CONV - 1), lambda b: (0, 0)),
            pl.BlockSpec((H_POOL, CM_COLS, HID), lambda b: (0, 0, 0)),
            pl.BlockSpec((1, HID), lambda b: (0, 0)),
            pl.BlockSpec((HID, NCLS), lambda b: (0, 0)),
            pl.BlockSpec((1, NCLS), lambda b: (0, 0)),
        ],
        out_specs=pl.BlockSpec((1, 1, NCLS), lambda b: (b, 0, 0)),
        compiler_params=pltpu.CompilerParams(
            dimension_semantics=("parallel",),
            vmem_limit_bytes=32 * 1024 * 1024,
        ),
    )(x3, cmat, brow, er, w1g, b1r, w2t, b2r)
    return out3.reshape(N, NCLS)


def reference(x, params):
    """Pure-JAX reference mirroring the PyTorch forward pass."""
    wc, bc, w1, b1, w2, b2 = params
    conv = lax.conv_general_dilated(
        x, wc, window_strides=(1, 1), padding="VALID",
        dimension_numbers=("NCHW", "OIHW", "NCHW")) + bc[None, :, None, None]
    pooled = lax.reduce_window(conv, -jnp.inf, lax.max,
                               (1, 1, 2, 2), (1, 1, 2, 2), "VALID")
    h = jnp.maximum(pooled, 0.0).reshape(x.shape[0], FEAT)
    h = jnp.maximum(h @ w1.T + b1, 0.0)
    logits = h @ w2.T + b2
    return jax.nn.log_softmax(logits, axis=1)


def init_params(key):
    ks = jax.random.split(key, 6)
    wc = 0.10 * jax.random.normal(ks[0], (C_OUT, C_IN, K, K), jnp.float32)
    bc = 0.10 * jax.random.normal(ks[1], (C_OUT,), jnp.float32)
    w1 = 0.02 * jax.random.normal(ks[2], (HID, FEAT), jnp.float32)
    b1 = 0.10 * jax.random.normal(ks[3], (HID,), jnp.float32)
    w2 = 0.10 * jax.random.normal(ks[4], (NCLS, HID), jnp.float32)
    b2 = 0.10 * jax.random.normal(ks[5], (NCLS,), jnp.float32)
    return (wc, bc, w1, b1, w2, b2)


if __name__ == "__main__":
    key = jax.random.PRNGKey(0)
    pkey, xkey = jax.random.split(key)
    params = init_params(pkey)
    packed = prepack_params(params)      # one-time weight repack (outside the kernel)

    N = 2  # small batch; spatial size 28 is fixed by fc1 = 13*13*20
    x = jax.random.normal(xkey, (N, C_IN, H_IN, W_IN), jnp.float32)

    out = jax.block_until_ready(forward(x, packed))
    ref = jax.block_until_ready(reference(x, params))

    max_diff = float(jnp.max(jnp.abs(out - ref)))
    assert out.shape == (N, NCLS)
    assert max_diff < 5e-3, f"mismatch vs reference: {max_diff}"

    print("KERNEL_OK")
</pallas_src>

<mosaic_0001>
module attributes {stable_mosaic.version = 11 : i64} {
  func.func @fused_cnn_kernel(%arg0: i32, %arg1: memref<1x28x28xf32, #tpu.memory_space<vmem>>, %arg2: memref<3x28x520xf32, #tpu.memory_space<vmem>>, %arg3: memref<1x520xf32, #tpu.memory_space<vmem>>, %arg4: memref<13x25xf32, #tpu.memory_space<vmem>>, %arg5: memref<13x519x128xf32, #tpu.memory_space<vmem>>, %arg6: memref<1x128xf32, #tpu.memory_space<vmem>>, %arg7: memref<128x10xf32, #tpu.memory_space<vmem>>, %arg8: memref<1x10xf32, #tpu.memory_space<vmem>>, %arg9: memref<1x1x10xf32, #tpu.memory_space<vmem>>) attributes {dimension_semantics = [#tpu.dimension_semantics<parallel>], iteration_bounds = array<i64: 2>, scalar_prefetch = 0 : i64, scratch_operands = 0 : i64, tpu.core_type = #tpu.core_type<tc>, window_params = [{transform_indices = @transform_0, window_bounds = array<i64: 1, 28, 28>}, {pipeline_mode = #tpu.pipeline_mode<synchronous>, transform_indices = @transform_1, window_bounds = array<i64: 3, 28, 520>}, {pipeline_mode = #tpu.pipeline_mode<synchronous>, transform_indices = @transform_2, window_bounds = array<i64: 1, 520>}, {pipeline_mode = #tpu.pipeline_mode<synchronous>, transform_indices = @transform_3, window_bounds = array<i64: 13, 25>}, {pipeline_mode = #tpu.pipeline_mode<synchronous>, transform_indices = @transform_4, window_bounds = array<i64: 13, 519, 128>}, {pipeline_mode = #tpu.pipeline_mode<synchronous>, transform_indices = @transform_5, window_bounds = array<i64: 1, 128>}, {pipeline_mode = #tpu.pipeline_mode<synchronous>, transform_indices = @transform_6, window_bounds = array<i64: 128, 10>}, {pipeline_mode = #tpu.pipeline_mode<synchronous>, transform_indices = @transform_7, window_bounds = array<i64: 1, 10>}, {transform_indices = @transform_8, window_bounds = array<i64: 1, 1, 10>}]} {
    %c0 = arith.constant 0 : index
    %c0_0 = arith.constant 0 : index
    %c0_1 = arith.constant 0 : index
    %0 = vector.load %arg1[%c0, %c0_0, %c0_1] : memref<1x28x28xf32, #tpu.memory_space<vmem>>, vector<1x28x28xf32>
    %1 = vector.shape_cast %0 : vector<1x28x28xf32> to vector<28x28xf32>
    %2 = vector.extract_strided_slice %1 {offsets = [0, 0], sizes = [26, 28], strides = [1, 1]} : vector<28x28xf32> to vector<26x28xf32>
    %c0_2 = arith.constant 0 : index
    %c0_3 = arith.constant 0 : index
    %c0_4 = arith.constant 0 : index
    %3 = vector.load %arg2[%c0_2, %c0_3, %c0_4] : memref<3x28x520xf32, #tpu.memory_space<vmem>>, vector<1x28x520xf32>
    %4 = vector.shape_cast %3 : vector<1x28x520xf32> to vector<28x520xf32>
    %cst = arith.constant dense<0.000000e+00> : vector<26x520xf32>
    %5 = tpu.matmul %2, %4, %cst {dimension_numbers = #tpu.dot_dimension_numbers<[1], [0], [0], [1], [0, 0, 1, 1], [], []>} : vector<26x28xf32>, vector<28x520xf32>, vector<26x520xf32> -> vector<26x520xf32>
    %6 = vector.extract_strided_slice %1 {offsets = [1, 0], sizes = [26, 28], strides = [1, 1]} : vector<28x28xf32> to vector<26x28xf32>
    %c1 = arith.constant 1 : index
    %c0_5 = arith.constant 0 : index
    %c0_6 = arith.constant 0 : index
    %7 = vector.load %arg2[%c1, %c0_5, %c0_6] : memref<3x28x520xf32, #tpu.memory_space<vmem>>, vector<1x28x520xf32>
    %8 = vector.shape_cast %7 : vector<1x28x520xf32> to vector<28x520xf32>
    %cst_7 = arith.constant dense<0.000000e+00> : vector<26x520xf32>
    %9 = tpu.matmul %6, %8, %cst_7 {dimension_numbers = #tpu.dot_dimension_numbers<[1], [0], [0], [1], [0, 0, 1, 1], [], []>} : vector<26x28xf32>, vector<28x520xf32>, vector<26x520xf32> -> vector<26x520xf32>
    %10 = arith.addf %5, %9 : vector<26x520xf32>
    %11 = vector.extract_strided_slice %1 {offsets = [2, 0], sizes = [26, 28], strides = [1, 1]} : vector<28x28xf32> to vector<26x28xf32>
    %c2 = arith.constant 2 : index
    %c0_8 = arith.constant 0 : index
    %c0_9 = arith.constant 0 : index
    %12 = vector.load %arg2[%c2, %c0_8, %c0_9] : memref<3x28x520xf32, #tpu.memory_space<vmem>>, vector<1x28x520xf32>
    %13 = vector.shape_cast %12 : vector<1x28x520xf32> to vector<28x520xf32>
    %cst_10 = arith.constant dense<0.000000e+00> : vector<26x520xf32>
    %14 = tpu.matmul %11, %13, %cst_10 {dimension_numbers = #tpu.dot_dimension_numbers<[1], [0], [0], [1], [0, 0, 1, 1], [], []>} : vector<26x28xf32>, vector<28x520xf32>, vector<26x520xf32> -> vector<26x520xf32>
    %15 = arith.addf %10, %14 : vector<26x520xf32>
    %c0_11 = arith.constant 0 : index
    %c0_12 = arith.constant 0 : index
    %16 = vector.load %arg3[%c0_11, %c0_12] : memref<1x520xf32, #tpu.memory_space<vmem>>, vector<1x520xf32>
    %17 = vector.broadcast %16 : vector<1x520xf32> to vector<26x520xf32>
    %18 = arith.addf %15, %17 : vector<26x520xf32>
    %19 = vector.extract_strided_slice %18 {offsets = [0, 0], sizes = [26, 519], strides = [1, 1]} : vector<26x520xf32> to vector<26x519xf32>
    %20 = vector.extract_strided_slice %18 {offsets = [0, 1], sizes = [26, 519], strides = [1, 1]} : vector<26x520xf32> to vector<26x519xf32>
    %21 = arith.maximumf %19, %20 : vector<26x519xf32>
    %22 = vector.extract_strided_slice %21 {offsets = [0, 0], sizes = [25, 519], strides = [1, 1]} : vector<26x519xf32> to vector<25x519xf32>
    %23 = vector.extract_strided_slice %21 {offsets = [1, 0], sizes = [25, 519], strides = [1, 1]} : vector<26x519xf32> to vector<25x519xf32>
    %24 = arith.maximumf %22, %23 : vector<25x519xf32>
    %c0_13 = arith.constant 0 : index
    %c0_14 = arith.constant 0 : index
    %25 = vector.load %arg4[%c0_13, %c0_14] : memref<13x25xf32, #tpu.memory_space<vmem>>, vector<13x25xf32>
    %cst_15 = arith.constant dense<0.000000e+00> : vector<13x519xf32>
    %26 = tpu.matmul %25, %24, %cst_15 {dimension_numbers = #tpu.dot_dimension_numbers<[1], [0], [0], [1], [0, 0, 1, 1], [], []>} : vector<13x25xf32>, vector<25x519xf32>, vector<13x519xf32> -> vector<13x519xf32>
    %cst_16 = arith.constant 0.000000e+00 : f32
    %27 = vector.broadcast %cst_16 : f32 to vector<13x519xf32>
    %28 = arith.maximumf %26, %27 : vector<13x519xf32>
    %29 = vector.extract_strided_slice %28 {offsets = [0, 0], sizes = [1, 519], strides = [1, 1]} : vector<13x519xf32> to vector<1x519xf32>
    %c0_17 = arith.constant 0 : index
    %c0_18 = arith.constant 0 : index
    %c0_19 = arith.constant 0 : index
    %30 = vector.load %arg5[%c0_17, %c0_18, %c0_19] : memref<13x519x128xf32, #tpu.memory_space<vmem>>, vector<1x519x128xf32>
    %31 = vector.shape_cast %30 : vector<1x519x128xf32> to vector<519x128xf32>
    %cst_20 = arith.constant dense<0.000000e+00> : vector<1x128xf32>
    %32 = tpu.matmul %29, %31, %cst_20 {dimension_numbers = #tpu.dot_dimension_numbers<[1], [0], [0], [1], [0, 0, 1, 1], [], []>} : vector<1x519xf32>, vector<519x128xf32>, vector<1x128xf32> -> vector<1x128xf32>
    %33 = vector.extract_strided_slice %28 {offsets = [1, 0], sizes = [1, 519], strides = [1, 1]} : vector<13x519xf32> to vector<1x519xf32>
    %c1_21 = arith.constant 1 : index
    %c0_22 = arith.constant 0 : index
    %c0_23 = arith.constant 0 : index
    %34 = vector.load %arg5[%c1_21, %c0_22, %c0_23] : memref<13x519x128xf32, #tpu.memory_space<vmem>>, vector<1x519x128xf32>
    %35 = vector.shape_cast %34 : vector<1x519x128xf32> to vector<519x128xf32>
    %cst_24 = arith.constant dense<0.000000e+00> : vector<1x128xf32>
    %36 = tpu.matmul %33, %35, %cst_24 {dimension_numbers = #tpu.dot_dimension_numbers<[1], [0], [0], [1], [0, 0, 1, 1], [], []>} : vector<1x519xf32>, vector<519x128xf32>, vector<1x128xf32> -> vector<1x128xf32>
    %37 = arith.addf %32, %36 : vector<1x128xf32>
    %38 = vector.extract_strided_slice %28 {offsets = [2, 0], sizes = [1, 519], strides = [1, 1]} : vector<13x519xf32> to vector<1x519xf32>
    %c2_25 = arith.constant 2 : index
    %c0_26 = arith.constant 0 : index
    %c0_27 = arith.constant 0 : index
    %39 = vector.load %arg5[%c2_25, %c0_26, %c0_27] : memref<13x519x128xf32, #tpu.memory_space<vmem>>, vector<1x519x128xf32>
    %40 = vector.shape_cast %39 : vector<1x519x128xf32> to vector<519x128xf32>
    %cst_28 = arith.constant dense<0.000000e+00> : vector<1x128xf32>
    %41 = tpu.matmul %38, %40, %cst_28 {dimension_numbers = #tpu.dot_dimension_numbers<[1], [0], [0], [1], [0, 0, 1, 1], [], []>} : vector<1x519xf32>, vector<519x128xf32>, vector<1x128xf32> -> vector<1x128xf32>
    %42 = arith.addf %37, %41 : vector<1x128xf32>
    %43 = vector.extract_strided_slice %28 {offsets = [3, 0], sizes = [1, 519], strides = [1, 1]} : vector<13x519xf32> to vector<1x519xf32>
    %c3 = arith.constant 3 : index
    %c0_29 = arith.constant 0 : index
    %c0_30 = arith.constant 0 : index
    %44 = vector.load %arg5[%c3, %c0_29, %c0_30] : memref<13x519x128xf32, #tpu.memory_space<vmem>>, vector<1x519x128xf32>
    %45 = vector.shape_cast %44 : vector<1x519x128xf32> to vector<519x128xf32>
    %cst_31 = arith.constant dense<0.000000e+00> : vector<1x128xf32>
    %46 = tpu.matmul %43, %45, %cst_31 {dimension_numbers = #tpu.dot_dimension_numbers<[1], [0], [0], [1], [0, 0, 1, 1], [], []>} : vector<1x519xf32>, vector<519x128xf32>, vector<1x128xf32> -> vector<1x128xf32>
    %47 = arith.addf %42, %46 : vector<1x128xf32>
    %48 = vector.extract_strided_slice %28 {offsets = [4, 0], sizes = [1, 519], strides = [1, 1]} : vector<13x519xf32> to vector<1x519xf32>
    %c4 = arith.constant 4 : index
    %c0_32 = arith.constant 0 : index
    %c0_33 = arith.constant 0 : index
    %49 = vector.load %arg5[%c4, %c0_32, %c0_33] : memref<13x519x128xf32, #tpu.memory_space<vmem>>, vector<1x519x128xf32>
    %50 = vector.shape_cast %49 : vector<1x519x128xf32> to vector<519x128xf32>
    %cst_34 = arith.constant dense<0.000000e+00> : vector<1x128xf32>
    %51 = tpu.matmul %48, %50, %cst_34 {dimension_numbers = #tpu.dot_dimension_numbers<[1], [0], [0], [1], [0, 0, 1, 1], [], []>} : vector<1x519xf32>, vector<519x128xf32>, vector<1x128xf32> -> vector<1x128xf32>
    %52 = arith.addf %47, %51 : vector<1x128xf32>
    %53 = vector.extract_strided_slice %28 {offsets = [5, 0], sizes = [1, 519], strides = [1, 1]} : vector<13x519xf32> to vector<1x519xf32>
    %c5 = arith.constant 5 : index
    %c0_35 = arith.constant 0 : index
    %c0_36 = arith.constant 0 : index
    %54 = vector.load %arg5[%c5, %c0_35, %c0_36] : memref<13x519x128xf32, #tpu.memory_space<vmem>>, vector<1x519x128xf32>
    %55 = vector.shape_cast %54 : vector<1x519x128xf32> to vector<519x128xf32>
    %cst_37 = arith.constant dense<0.000000e+00> : vector<1x128xf32>
    %56 = tpu.matmul %53, %55, %cst_37 {dimension_numbers = #tpu.dot_dimension_numbers<[1], [0], [0], [1], [0, 0, 1, 1], [], []>} : vector<1x519xf32>, vector<519x128xf32>, vector<1x128xf32> -> vector<1x128xf32>
    %57 = arith.addf %52, %56 : vector<1x128xf32>
    %58 = vector.extract_strided_slice %28 {offsets = [6, 0], sizes = [1, 519], strides = [1, 1]} : vector<13x519xf32> to vector<1x519xf32>
    %c6 = arith.constant 6 : index
    %c0_38 = arith.constant 0 : index
    %c0_39 = arith.constant 0 : index
    %59 = vector.load %arg5[%c6, %c0_38, %c0_39] : memref<13x519x128xf32, #tpu.memory_space<vmem>>, vector<1x519x128xf32>
    %60 = vector.shape_cast %59 : vector<1x519x128xf32> to vector<519x128xf32>
    %cst_40 = arith.constant dense<0.000000e+00> : vector<1x128xf32>
    %61 = tpu.matmul %58, %60, %cst_40 {dimension_numbers = #tpu.dot_dimension_numbers<[1], [0], [0], [1], [0, 0, 1, 1], [], []>} : vector<1x519xf32>, vector<519x128xf32>, vector<1x128xf32> -> vector<1x128xf32>
    %62 = arith.addf %57, %61 : vector<1x128xf32>
    %63 = vector.extract_strided_slice %28 {offsets = [7, 0], sizes = [1, 519], strides = [1, 1]} : vector<13x519xf32> to vector<1x519xf32>
    %c7 = arith.constant 7 : index
    %c0_41 = arith.constant 0 : index
    %c0_42 = arith.constant 0 : index
    %64 = vector.load %arg5[%c7, %c0_41, %c0_42] : memref<13x519x128xf32, #tpu.memory_space<vmem>>, vector<1x519x128xf32>
    %65 = vector.shape_cast %64 : vector<1x519x128xf32> to vector<519x128xf32>
    %cst_43 = arith.constant dense<0.000000e+00> : vector<1x128xf32>
    %66 = tpu.matmul %63, %65, %cst_43 {dimension_numbers = #tpu.dot_dimension_numbers<[1], [0], [0], [1], [0, 0, 1, 1], [], []>} : vector<1x519xf32>, vector<519x128xf32>, vector<1x128xf32> -> vector<1x128xf32>
    %67 = arith.addf %62, %66 : vector<1x128xf32>
    %68 = vector.extract_strided_slice %28 {offsets = [8, 0], sizes = [1, 519], strides = [1, 1]} : vector<13x519xf32> to vector<1x519xf32>
    %c8 = arith.constant 8 : index
    %c0_44 = arith.constant 0 : index
    %c0_45 = arith.constant 0 : index
    %69 = vector.load %arg5[%c8, %c0_44, %c0_45] : memref<13x519x128xf32, #tpu.memory_space<vmem>>, vector<1x519x128xf32>
    %70 = vector.shape_cast %69 : vector<1x519x128xf32> to vector<519x128xf32>
    %cst_46 = arith.constant dense<0.000000e+00> : vector<1x128xf32>
    %71 = tpu.matmul %68, %70, %cst_46 {dimension_numbers = #tpu.dot_dimension_numbers<[1], [0], [0], [1], [0, 0, 1, 1], [], []>} : vector<1x519xf32>, vector<519x128xf32>, vector<1x128xf32> -> vector<1x128xf32>
    %72 = arith.addf %67, %71 : vector<1x128xf32>
    %73 = vector.extract_strided_slice %28 {offsets = [9, 0], sizes = [1, 519], strides = [1, 1]} : vector<13x519xf32> to vector<1x519xf32>
    %c9 = arith.constant 9 : index
    %c0_47 = arith.constant 0 : index
    %c0_48 = arith.constant 0 : index
    %74 = vector.load %arg5[%c9, %c0_47, %c0_48] : memref<13x519x128xf32, #tpu.memory_space<vmem>>, vector<1x519x128xf32>
    %75 = vector.shape_cast %74 : vector<1x519x128xf32> to vector<519x128xf32>
    %cst_49 = arith.constant dense<0.000000e+00> : vector<1x128xf32>
    %76 = tpu.matmul %73, %75, %cst_49 {dimension_numbers = #tpu.dot_dimension_numbers<[1], [0], [0], [1], [0, 0, 1, 1], [], []>} : vector<1x519xf32>, vector<519x128xf32>, vector<1x128xf32> -> vector<1x128xf32>
    %77 = arith.addf %72, %76 : vector<1x128xf32>
    %78 = vector.extract_strided_slice %28 {offsets = [10, 0], sizes = [1, 519], strides = [1, 1]} : vector<13x519xf32> to vector<1x519xf32>
    %c10 = arith.constant 10 : index
    %c0_50 = arith.constant 0 : index
    %c0_51 = arith.constant 0 : index
    %79 = vector.load %arg5[%c10, %c0_50, %c0_51] : memref<13x519x128xf32, #tpu.memory_space<vmem>>, vector<1x519x128xf32>
    %80 = vector.shape_cast %79 : vector<1x519x128xf32> to vector<519x128xf32>
    %cst_52 = arith.constant dense<0.000000e+00> : vector<1x128xf32>
    %81 = tpu.matmul %78, %80, %cst_52 {dimension_numbers = #tpu.dot_dimension_numbers<[1], [0], [0], [1], [0, 0, 1, 1], [], []>} : vector<1x519xf32>, vector<519x128xf32>, vector<1x128xf32> -> vector<1x128xf32>
    %82 = arith.addf %77, %81 : vector<1x128xf32>
    %83 = vector.extract_strided_slice %28 {offsets = [11, 0], sizes = [1, 519], strides = [1, 1]} : vector<13x519xf32> to vector<1x519xf32>
    %c11 = arith.constant 11 : index
    %c0_53 = arith.constant 0 : index
    %c0_54 = arith.constant 0 : index
    %84 = vector.load %arg5[%c11, %c0_53, %c0_54] : memref<13x519x128xf32, #tpu.memory_space<vmem>>, vector<1x519x128xf32>
    %85 = vector.shape_cast %84 : vector<1x519x128xf32> to vector<519x128xf32>
    %cst_55 = arith.constant dense<0.000000e+00> : vector<1x128xf32>
    %86 = tpu.matmul %83, %85, %cst_55 {dimension_numbers = #tpu.dot_dimension_numbers<[1], [0], [0], [1], [0, 0, 1, 1], [], []>} : vector<1x519xf32>, vector<519x128xf32>, vector<1x128xf32> -> vector<1x128xf32>
    %87 = arith.addf %82, %86 : vector<1x128xf32>
    %88 = vector.extract_strided_slice %28 {offsets = [12, 0], sizes = [1, 519], strides = [1, 1]} : vector<13x519xf32> to vector<1x519xf32>
    %c12 = arith.constant 12 : index
    %c0_56 = arith.constant 0 : index
    %c0_57 = arith.constant 0 : index
    %89 = vector.load %arg5[%c12, %c0_56, %c0_57] : memref<13x519x128xf32, #tpu.memory_space<vmem>>, vector<1x519x128xf32>
    %90 = vector.shape_cast %89 : vector<1x519x128xf32> to vector<519x128xf32>
    %cst_58 = arith.constant dense<0.000000e+00> : vector<1x128xf32>
    %91 = tpu.matmul %88, %90, %cst_58 {dimension_numbers = #tpu.dot_dimension_numbers<[1], [0], [0], [1], [0, 0, 1, 1], [], []>} : vector<1x519xf32>, vector<519x128xf32>, vector<1x128xf32> -> vector<1x128xf32>
    %92 = arith.addf %87, %91 : vector<1x128xf32>
    %c0_59 = arith.constant 0 : index
    %c0_60 = arith.constant 0 : index
    %93 = vector.load %arg6[%c0_59, %c0_60] : memref<1x128xf32, #tpu.memory_space<vmem>>, vector<1x128xf32>
    %94 = arith.addf %92, %93 : vector<1x128xf32>
    %cst_61 = arith.constant 0.000000e+00 : f32
    %95 = vector.broadcast %cst_61 : f32 to vector<1x128xf32>
    %96 = arith.maximumf %94, %95 : vector<1x128xf32>
    %c0_62 = arith.constant 0 : index
    %c0_63 = arith.constant 0 : index
    %97 = vector.load %arg7[%c0_62, %c0_63] : memref<128x10xf32, #tpu.memory_space<vmem>>, vector<128x10xf32>
    %cst_64 = arith.constant dense<0.000000e+00> : vector<1x10xf32>
    %98 = tpu.matmul %96, %97, %cst_64 {dimension_numbers = #tpu.dot_dimension_numbers<[1], [0], [0], [1], [0, 0, 1, 1], [], []>} : vector<1x128xf32>, vector<128x10xf32>, vector<1x10xf32> -> vector<1x10xf32>
    %c0_65 = arith.constant 0 : index
    %c0_66 = arith.constant 0 : index
    %99 = vector.load %arg8[%c0_65, %c0_66] : memref<1x10xf32, #tpu.memory_space<vmem>>, vector<1x10xf32>
    %100 = arith.addf %98, %99 : vector<1x10xf32>
    %cst_67 = arith.constant dense<0xFF800000> : vector<1xf32>
    %101 = vector.multi_reduction <maximumf>, %100, %cst_67 [1] : vector<1x10xf32> to vector<1xf32>
    %102 = vector.shape_cast %101 : vector<1xf32> to vector<1x1xf32>
    %103 = vector.broadcast %102 : vector<1x1xf32> to vector<1x10xf32>
    %104 = arith.subf %100, %103 : vector<1x10xf32>
    %105 = math.exp %104 : vector<1x10xf32>
    %cst_68 = arith.constant dense<0.000000e+00> : vector<1xf32>
    %106 = vector.multi_reduction <add>, %105, %cst_68 [1] : vector<1x10xf32> to vector<1xf32>
    %107 = vector.shape_cast %106 : vector<1xf32> to vector<1x1xf32>
    %108 = math.log %107 : vector<1x1xf32>
    %109 = vector.broadcast %108 : vector<1x1xf32> to vector<1x10xf32>
    %110 = arith.subf %104, %109 : vector<1x10xf32>
    %c0_69 = arith.constant 0 : index
    %c0_70 = arith.constant 0 : index
    %c0_71 = arith.constant 0 : index
    %111 = vector.load %arg9[%c0_69, %c0_70, %c0_71] : memref<1x1x10xf32, #tpu.memory_space<vmem>>, vector<1x1x10xf32>
    %112 = vector.shape_cast %111 : vector<1x1x10xf32> to vector<1x10xf32>
    %113 = vector.shape_cast %110 : vector<1x10xf32> to vector<1x1x10xf32>
    tpu.vector_store %arg9[%c0_69, %c0_70, %c0_71], %113 {strides = array<i32>} : memref<1x1x10xf32, #tpu.memory_space<vmem>>, vector<1x1x10xf32>,
    return
  }
  func.func @transform_0(%arg0: i32) -> (i32, i32, i32) {
    %c0_i32 = arith.constant 0 : i32
    %c0_i32_0 = arith.constant 0 : i32
    %c0_i32_1 = arith.constant 0 : i32
    return %arg0, %c0_i32, %c0_i32_0 : i32, i32, i32
  }
  func.func @transform_1(%arg0: i32) -> (i32, i32, i32) {
    %c0_i32 = arith.constant 0 : i32
    %c0_i32_0 = arith.constant 0 : i32
    %c0_i32_1 = arith.constant 0 : i32
    %c0_i32_2 = arith.constant 0 : i32
    return %c0_i32, %c0_i32_0, %c0_i32_1 : i32, i32, i32
  }
  func.func @transform_2(%arg0: i32) -> (i32, i32) {
    %c0_i32 = arith.constant 0 : i32
    %c0_i32_0 = arith.constant 0 : i32
    %c0_i32_1 = arith.constant 0 : i32
    return %c0_i32, %c0_i32_0 : i32, i32
  }
  func.func @transform_3(%arg0: i32) -> (i32, i32) {
    %c0_i32 = arith.constant 0 : i32
    %c0_i32_0 = arith.constant 0 : i32
    %c0_i32_1 = arith.constant 0 : i32
    return %c0_i32, %c0_i32_0 : i32, i32
  }
  func.func @transform_4(%arg0: i32) -> (i32, i32, i32) {
    %c0_i32 = arith.constant 0 : i32
    %c0_i32_0 = arith.constant 0 : i32
    %c0_i32_1 = arith.constant 0 : i32
    %c0_i32_2 = arith.constant 0 : i32
    return %c0_i32, %c0_i32_0, %c0_i32_1 : i32, i32, i32
  }
  func.func @transform_5(%arg0: i32) -> (i32, i32) {
    %c0_i32 = arith.constant 0 : i32
    %c0_i32_0 = arith.constant 0 : i32
    %c0_i32_1 = arith.constant 0 : i32
    return %c0_i32, %c0_i32_0 : i32, i32
  }
  func.func @transform_6(%arg0: i32) -> (i32, i32) {
    %c0_i32 = arith.constant 0 : i32
    %c0_i32_0 = arith.constant 0 : i32
    %c0_i32_1 = arith.constant 0 : i32
    return %c0_i32, %c0_i32_0 : i32, i32
  }
  func.func @transform_7(%arg0: i32) -> (i32, i32) {
    %c0_i32 = arith.constant 0 : i32
    %c0_i32_0 = arith.constant 0 : i32
    %c0_i32_1 = arith.constant 0 : i32
    return %c0_i32, %c0_i32_0 : i32, i32
  }
  func.func @transform_8(%arg0: i32) -> (i32, i32, i32) {
    %c0_i32 = arith.constant 0 : i32
    %c0_i32_0 = arith.constant 0 : i32
    %c0_i32_1 = arith.constant 0 : i32
    return %arg0, %c0_i32, %c0_i32_0 : i32, i32, i32
  }
}

</mosaic_0001>

<bundles_post_ra>
// kernel: tpu_custom_call.1
= control target key start
LH: loop header
LB: loop body
LE: loop exit
PB: predicated region body
PF: predicated region fallthrough
CT: control target
= control target key end

     0   :  { %s9470_s0 = inlined_call_operand.vmem [shape: f32[2,28,28], index: 0, kind: input, shape index: {}]   ;;  %s9471_s1 = inlined_call_operand.hbm [shape: f32[3,28,520], index: 1, kind: input, shape index: {}]   ;;  %s9472_s2 = inlined_call_operand.hbm [shape: f32[1,520], index: 2, kind: input, shape index: {}]   ;;  %s9473_s3 = inlined_call_operand.hbm [shape: f32[13,25], index: 3, kind: input, shape index: {}]   ;;  %s9474_s4 = inlined_call_operand.hbm [shape: f32[13,519,128], index: 4, kind: input, shape index: {}]   ;;  %s9475_s5 = inlined_call_operand.hbm [shape: f32[1,128], index: 5, kind: input, shape index: {}]   ;;  %s9476_s6 = inlined_call_operand.vmem [shape: f32[128,10], index: 6, kind: input, shape index: {}]   ;;  %s9477_s7 = inlined_call_operand.hbm [shape: f32[1,10], index: 7, kind: input, shape index: {}]   ;;  %s9478_s8 = inlined_call_operand.hbm [shape: f32[2,1,10], index: 8, kind: output, shape index: {}]  }
   0x1   :  { %9488 = sst [smem:[#allocation23_spill]] %s9472_s2 }
   0x2   :  { %9489 = sst [smem:[#allocation24_spill]] %s9474_s4 }
   0x3   :  { %13 = vsyncpa [#allocation3], 0 }
   0x4   :  { %14 = vsyncpa [#allocation6], 0 }
   0x5   :  { %15 = vsyncpa [#allocation9], 0 }
   0x6   :  { %16 = vsyncpa [#allocation12], 0 }
   0x7   :  { %17 = vsyncpa [#allocation4], 0 }
   0x8   :  { %19 = vsyncpa [#allocation4 + $0x1], 0  ;;  %s8613_s27 = smov 0   ;;  %s8615_s28 = smov 0  }
   0x9   :  { %s8617_s29 = smov 0   ;;  %s8619_s30 = smov 0  }
   0xa LB: > { %9490 = sst [smem:[#allocation19_spill]] %s8546_s29  ;;  %s8634_s9 = sadd.s32 4294967295, %s8550_s30   ;;  %s8550_s30 = sphi %s8619_s30, %s9519_s30   ;;  %s8546_s29 = sphi %s8617_s29, %s9521_s29   ;;  %s8542_s28 = sphi %s8615_s28, %s9523_s28   ;;  %s8538_s27 = sphi %s8613_s27, %s9522_s27  }
   0xb   : > { %s5879_s10 = sadd.s32 4294967294, %s8550_s30   ;;  %s8638_s11 = sadd.s32 1, %s8550_s30  }
   0xc   : > { %9491 = sst [smem:[#allocation20_spill]] %s8638_s11  ;;  %s205_s12 = sadd.s32 1, %s8546_s29 }
   0xd   : > { %s202_s13 = ssub.s32 %s8550_s30, %s8638_s11  ;;  %p215_p0 = scmp.ne.s32.totalorder %s8546_s29, %s8542_s28 }
   0xe   : > { %p203_p1 = scmp.eq.s32.totalorder %s202_s13, 0  ;;  %p216_p2 = scmp.eq.s32.totalorder %s8634_s9, 1 }
   0xf   : > { %p221_p3 = scmp.ne.s32.totalorder %s8542_s28, %s8538_s27  ;;  %p222_p4 = scmp.eq.s32.totalorder %s5879_s10, 1 }
  0x10   : > { %s8649_s14 = scalar_select %p203_p1, %s8546_s29, %s205_s12  }
  0x11   : > { %p8651_p5 = por %p216_p2, %p215_p0  ;;  %p8655_p6 = por %p222_p4, %p221_p3 }
  0x12   : > { %9492 = sst [smem:[#allocation21_spill]] %s8649_s14  ;;  %p5880_p7 = scmp.ge.s32.totalorder %s8550_s30, 1 }
  0x13   : > { %s9493_s15 = scalar_select %p8651_p5, 1, 0 }
  0x14   : > { %s9494_s16 = scalar_select %p8655_p6, 1, 0 }
  0x15   : > { %p229_p8 = scmp.lt.s32.totalorder %s8550_s30, 3  ;;  %p9479_p9 = scmp.eq.s32.totalorder %s8634_s9, 0 }
  0x16   : > { %9495 = sst [smem:[#allocation22_spill]] %s9494_s16  ;;  %s8552_s18 = smov [#allocation5]  }
  0x17   : > { %p8662_p10 = pnand %p5880_p7, %p229_p8  ;;  %s255_s19 = sshll.u32 %s8552_s18, 4  ;;  %s256_s19 = int_to_ptr.vmem [resolvable:$true] %s255_s19 }
  0x18   : > { %s8553_s21 = smov [#allocation8]   ;;  %s8554_s23 = smov [#allocation2]  }
  0x19   : > { %s9496_s17 = scalar_select %p8662_p10, 1, 0 }
  0x1a   : > { %p8167_p11 = pneg %p8662_p10  ;;  %s278_s22 = sshll.u32 %s8553_s21, 4  ;;  %s8674_s22 = int_to_ptr.vmem [resolvable:$true] %s278_s22 }
  0x1b   : > { %s8676_s24 = sshll.u32 %s8554_s23, 4  ;;  %s9498_s2 = sld [smem:[#allocation23_spill]]  ;;  %s242_s24 = int_to_ptr.vmem [resolvable:$true] %s8676_s24 }
  0x1c   : > { %p8670_p12 = pnand %p9479_p9, %p8167_p11 }
  0x1e   : > { %p8686_p0 = pneg %p8670_p12 }
  0x21   : > { %s8304_s10 = scalar_lea.hbm %s9498_s2, 80 }
  0x22   : > { %p8305_p13 = scmp.ne.s32.totalorder %s9498_s2, %s8304_s10  ;;  %p8311_p3 = scmp.lt.u32.totalorder %s8304_s10, %s9498_s2 }
  0x24   : > { %p8307_p1 = pnand %p8686_p0, %p8305_p13 }
  0x26   : > { %p8308_p2 = pneg %p8307_p1 }
  0x28   : > { %p8313_p4 = pnand %p8311_p3, %p8308_p2 }
  0x2a   : > { %8316 = shalt.err (!%p8313_p4)
}
  0x2b   : > { %s8317_s25 = scalar_lea.vmem %s256_s19, 80  ;;  %s8324_s26 = scalar_lea.vmem %s256_s19, 96 }
  0x2c   : > { %p8318_p7 = scmp.ne.s32.totalorder %s256_s19, %s8317_s25  ;;  %p8325_p9 = scmp.lt.s32.totalorder %s256_s19, %s256_s19 }
  0x2d   : > { %p8326_p6 = scmp.lt.s32.totalorder %s8324_s26, %s8317_s25 }
  0x2e   : > { %p8320_p8 = pnand %p8318_p7, %p8686_p0 }
  0x2f   : > { %p8327_p5 = por %p8326_p6, %p8325_p9 }
  0x30   : > { %p8321_p11 = pneg %p8320_p8 }
  0x32   : > { %p8328_p10 = pnand %p8327_p5, %p8321_p11 }
  0x34   : > { %8331 = shalt.err (!%p8328_p10)
}
  0x35   : > { %8173 = dma.hbm_to_vmem [thread:$0]  (!%p8670_p12), %s9498_s2, 80, %s256_s19, [#allocation6]  }
  0x36   : > { %s9500_s4 = sld [smem:[#allocation24_spill]] }
  0x3c   : > { %s8332_s23 = scalar_lea.hbm %s9500_s4, 108160 }
  0x3d   : > { %p8333_p13 = scmp.ne.s32.totalorder %s9500_s4, %s8332_s23  ;;  %p8339_p5 = scmp.lt.u32.totalorder %s8332_s23, %s9500_s4 }
  0x3f   : > { %p8335_p1 = pnand %p8333_p13, %p8686_p0 }
  0x41   : > { %p8336_p6 = pneg %p8335_p1 }
  0x43   : > { %p8341_p9 = pnand %p8339_p5, %p8336_p6 }
  0x45   : > { %8344 = shalt.err (!%p8341_p9)
}
  0x46   : > { %s8345_s19 = scalar_lea.vmem %s8674_s22, 108160  ;;  %p8353_p4 = scmp.lt.s32.totalorder %s8674_s22, %s8674_s22 }
  0x47   : > { %p8346_p10 = scmp.ne.s32.totalorder %s8674_s22, %s8345_s19  ;;  %p8354_p7 = scmp.lt.s32.totalorder %s8345_s19, %s8345_s19 }
  0x49   : > { %p8348_p2 = pnand %p8346_p10, %p8686_p0  ;;  %p8355_p8 = por %p8354_p7, %p8353_p4 }
  0x4b   : > { %p8349_p3 = pneg %p8348_p2 }
  0x4d   : > { %p8356_p11 = pnand %p8355_p8, %p8349_p3 }
  0x4f   : > { %8359 = shalt.err (!%p8356_p11)
}
  0x50   : > { %s9483_s29 = smov 128   ;;  %s9484_s14 = smov 8  }
  0x51   : > { %8179 = dma.hbm_to_vmem [thread:$0]  (!%p8670_p12), %s9500_s4, 108160, %s8674_s22, [#allocation9], %s9483_s29, %s9483_s29, %s9484_s14  }
  0x52   : > { %s8360_s23 = scalar_lea.hbm %s9471_s1, 7680 }
  0x53   : > { %p8361_p13 = scmp.ne.s32.totalorder %s9471_s1, %s8360_s23  ;;  %p8367_p5 = scmp.lt.u32.totalorder %s8360_s23, %s9471_s1 }
  0x55   : > { %p8363_p1 = pnand %p8361_p13, %p8686_p0 }
  0x57   : > { %p8364_p6 = pneg %p8363_p1 }
  0x59   : > { %p8369_p9 = pnand %p8367_p5, %p8364_p6 }
  0x5b   : > { %8372 = shalt.err (!%p8369_p9)
}
  0x5c   : > { %s8373_s12 = scalar_lea.vmem %s242_s24, 7680  ;;  %p8381_p4 = scmp.lt.s32.totalorder %s242_s24, %s242_s24 }
  0x5d   : > { %p8374_p10 = scmp.ne.s32.totalorder %s242_s24, %s8373_s12  ;;  %p8382_p7 = scmp.lt.s32.totalorder %s8373_s12, %s8373_s12 }
  0x5f   : > { %p8376_p2 = pnand %p8374_p10, %p8686_p0  ;;  %p8383_p8 = por %p8382_p7, %p8381_p4 }
  0x61   : > { %p8377_p3 = pneg %p8376_p2 }
  0x63   : > { %p8384_p11 = pnand %p8383_p8, %p8377_p3 }
  0x65   : > { %8387 = shalt.err (!%p8384_p11)
}
  0x66   : > { %s8557_s22 = smov 640   ;;  %s8558_s13 = smov 40  }
  0x67   : > { %8170 = dma.hbm_to_vmem [thread:$0]  (!%p8670_p12), %s9471_s1, 7680, %s242_s24, [#allocation3], %s8557_s22, %s8557_s22, %s8558_s13  }
  0x68   : > { %s8559_s21 = smov [#allocation7]   ;;  %s8560_s25 = smov [#allocation10]  }
  0x69   : > { %s265_s23 = sshll.u32 %s8559_s21, 4  ;;  %s292_s26 = sshll.u32 %s8560_s25, 4  ;;  %s266_s23 = int_to_ptr.vmem [resolvable:$true] %s265_s23  ;;  %s293_s26 = int_to_ptr.vmem [resolvable:$true] %s292_s26 }
  0x6a   : > { %s8388_s12 = scalar_lea.hbm %s9473_s3, 256 }
  0x6b   : > { %p8389_p13 = scmp.ne.s32.totalorder %s9473_s3, %s8388_s12  ;;  %p8395_p5 = scmp.lt.u32.totalorder %s8388_s12, %s9473_s3 }
  0x6d   : > { %p8391_p1 = pnand %p8389_p13, %p8686_p0 }
  0x6f   : > { %p8392_p6 = pneg %p8391_p1 }
  0x71   : > { %p8397_p9 = pnand %p8395_p5, %p8392_p6 }
  0x73   : > { %8400 = shalt.err (!%p8397_p9)
}
  0x74   : > { %s8401_s24 = scalar_lea.vmem %s266_s23, 256  ;;  %p8409_p4 = scmp.lt.s32.totalorder %s266_s23, %s266_s23 }
  0x75   : > { %p8402_p10 = scmp.ne.s32.totalorder %s266_s23, %s8401_s24  ;;  %p8410_p7 = scmp.lt.s32.totalorder %s8401_s24, %s8401_s24 }
  0x77   : > { %p8404_p2 = pnand %p8402_p10, %p8686_p0  ;;  %p8411_p8 = por %p8410_p7, %p8409_p4 }
  0x79   : > { %p8405_p3 = pneg %p8404_p2 }
  0x7b   : > { %p8412_p11 = pnand %p8411_p8, %p8405_p3 }
  0x7d   : > { %8415 = shalt.err (!%p8412_p11)
}
  0x7e   : > { %s9501_s4 = smov 8   ;;  %s9502_s29 = smov 128  }
  0x7f   : > { %8176 = dma.hbm_to_vmem [thread:$0]  (!%p8670_p12), %s9473_s3, 256, %s266_s23, [#allocation6], %s9502_s29, %s9502_s29, %s9501_s4  }
  0x80   : > { %s8416_s13 = scalar_lea.hbm %s9475_s5, 16 }
  0x81   : > { %p8417_p13 = scmp.ne.s32.totalorder %s9475_s5, %s8416_s13  ;;  %p8423_p5 = scmp.lt.u32.totalorder %s8416_s13, %s9475_s5 }
  0x83   : > { %p8419_p1 = pnand %p8417_p13, %p8686_p0 }
  0x85   : > { %p8420_p6 = pneg %p8419_p1 }
  0x87   : > { %p8425_p9 = pnand %p8423_p5, %p8420_p6 }
  0x89   : > { %8428 = shalt.err (!%p8425_p9)
}
  0x8a   : > { %s8429_s19 = scalar_lea.vmem %s293_s26, 16  ;;  %s8436_s23 = scalar_lea.vmem %s293_s26, 32 }
  0x8b   : > { %p8430_p10 = scmp.ne.s32.totalorder %s293_s26, %s8429_s19  ;;  %p8437_p4 = scmp.lt.s32.totalorder %s293_s26, %s293_s26 }
  0x8c   : > { %p8438_p7 = scmp.lt.s32.totalorder %s8436_s23, %s8429_s19 }
  0x8d   : > { %p8432_p2 = pnand %p8430_p10, %p8686_p0 }
  0x8e   : > { %p8439_p8 = por %p8438_p7, %p8437_p4 }
  0x8f   : > { %p8433_p3 = pneg %p8432_p2 }
  0x91   : > { %p8440_p11 = pnand %p8439_p8, %p8433_p3 }
  0x93   : > { %8443 = shalt.err (!%p8440_p11)
}
  0x94   : > { %8182 = dma.hbm_to_vmem [thread:$0]  (!%p8670_p12), %s9475_s5, 16, %s293_s26, [#allocation9]  }
  0x95   : > { %s8561_s4 = smov [#allocation11]   ;;  %s8444_s14 = scalar_lea.hbm %s9477_s7, 16 }
  0x96   : > { %s306_s29 = sshll.u32 %s8561_s4, 4  ;;  %p8445_p13 = scmp.ne.s32.totalorder %s9477_s7, %s8444_s14  ;;  %s307_s29 = int_to_ptr.vmem [resolvable:$true] %s306_s29 }
  0x97   : > { %p8451_p5 = scmp.lt.u32.totalorder %s8444_s14, %s9477_s7 }
  0x98   : > { %p8447_p1 = pnand %p8445_p13, %p8686_p0 }
  0x9a   : > { %p8448_p6 = pneg %p8447_p1 }
  0x9c   : > { %p8453_p9 = pnand %p8451_p5, %p8448_p6 }
  0x9e   : > { %8456 = shalt.err (!%p8453_p9)
}
  0x9f   : > { %s8457_s26 = scalar_lea.vmem %s307_s29, 16  ;;  %s8464_s21 = scalar_lea.vmem %s307_s29, 32 }
  0xa0   : > { %p8458_p10 = scmp.ne.s32.totalorder %s307_s29, %s8457_s26  ;;  %p8465_p4 = scmp.lt.s32.totalorder %s307_s29, %s307_s29 }
  0xa1   : > { %p8466_p7 = scmp.lt.s32.totalorder %s8464_s21, %s8457_s26 }
  0xa2   : > { %p8460_p2 = pnand %p8458_p10, %p8686_p0 }
  0xa3   : > { %p8467_p8 = por %p8466_p7, %p8465_p4 }
  0xa4   : > { %p8461_p3 = pneg %p8460_p2 }
  0xa6   : > { %p8468_p11 = pnand %p8467_p8, %p8461_p3 }
  0xa8   : > { %8471 = shalt.err (!%p8468_p11)
}
  0xa9   : > { %8185 = dma.hbm_to_vmem [thread:$0]  (!%p8670_p12), %s9477_s7, 16, %s307_s29, [#allocation12]  }
  0xaa   : > { %p9503_p13 = scmp.ne.s32.totalorder %s9496_s17, 0 }
  0xab   : > { %p9504_p1 = scmp.eq.s32.totalorder (!%p9503_p13), %s8634_s9, 0 }
  0xac   : > { %327 = sbr.rel (%p9503_p13) target bundleno = 2043 (0x7fb), region = 52 }
  0xb3   : > { %8517 = dma.done.wait (%p9504_p1), [#allocation3], 7680   ;;  %p9505_p0 = pmov %p9504_p1 }
  0xb5   : > { %8519 = vsyncadd (%p9505_p0), [#allocation3], 4294959616  ;;  %p9506_p6 = pmov %p9505_p0 }
  0xb6   : > { %p9507_p5 = pmov %p9505_p0 }
  0xb7   : > { %8521 = dma.done.wait (%p9506_p6), [#allocation6], 336  }
  0xb8   : > { %8523 = vsyncadd (%p9507_p5), [#allocation6], 4294966960  ;;  %p9508_p9 = pmov %p9505_p0 }
  0xb9   : > { %p9509_p12 = pmov %p9505_p0 }
  0xba   : > { %8525 = dma.done.wait (%p9508_p9), [#allocation9], 108176  }
  0xbb   : > { %8527 = vsyncadd (%p9509_p12), [#allocation9], 4294859120  ;;  %p9510_p10 = pmov %p9505_p0 }
  0xbc   : > { %p9511_p2 = pmov %p9505_p0 }
  0xbd   : > { %8529 = dma.done.wait (%p9510_p10), [#allocation12], 16  }
  0xbe   : > { %8531 = vsyncadd (%p9511_p2), [#allocation12], 4294967280  ;;  %p380_p3 = scmp.lt.s32.totalorder %s8634_s9, 1  ;;  %v8562_v0 = vmov 0.0   ;;  %vm451_vm0 = vcmask 1043456   ;;  %vm8563_vm1 = vmmov 1  }
  0xbf   : > { %531 = vmatprep.mubr.f32.mxu0 %v8562_v0  ;;  %906 = vmatprep.mubr.f32.mxu1 %v8562_v0  ;;  %vm8827_vm2 = vmpackc.low %vm451_vm0, %vm8563_vm1  ;;  %v411_v2 = vld [vmem:[#allocation2 + $0xa8] sm:$0xff]  ;;  %v416_v3 = vld [vmem:[#allocation2 + $0xd0] sm:$0xff]  ;;  %vm434_vm3 = vcmask 1046528   ;;  %vm442_vm4 = vcmask 228352   ;;  %vm1037_vm5 = vcmask 1045504   ;;  %s8564_s24 = smov 127  }
  0xc0   : > { %s381_s17 = scalar_select %p380_p3, %s8634_s9, 1  ;;  %v392_v4 = vld [vmem:[#allocation2 + $0x18] sm:$0xff]  ;;  %v7125_v5 = vpack.c.bf16 %v416_v3, %v411_v2  ;;  %v397_v6 = vld [vmem:[#allocation2 + $0x40] sm:$0xff]  ;;  %v415_v8 = vld [vmem:[#allocation2 + $0xc8] sm:$0xff]  ;;  %vm1458_vm6 = vcmask 1039360   ;;  %vm1619_vm7 = vcmask 1040384  }
  0xc1   : > { %v410_v7 = vld [vmem:[#allocation2 + $0xa0] sm:$0xff]  ;;  %v7165_v9 = vpack.c.bf16 %v397_v6, %v392_v4  ;;  %v391_v11 = vld [vmem:[#allocation2 + $0x10] sm:$0xff]  ;;  %v396_v12 = vld [vmem:[#allocation2 + $0x38] sm:$0xff]  ;;  %vm1612_vm9 = vcmask 203776   ;;  %vm8565_vm10 = vmmov 0   ;;  %vm2019_vm11 = vcmask 56320  }
  0xc2   : > { %s5988_s20 = sshll.u32 %s381_s17, 5  ;;  %v7127_v10 = vpack.c.bf16 %v415_v8, %v410_v7  ;;  %v421_v13 = vld [vmem:[#allocation2 + $0xf8] sm:$0xff]  ;;  %7126 = vmatprep.subr.bf16.mxu0 %v7125_v5  ;;  %v7167_v14 = vpack.c.bf16 %v396_v12, %v391_v11  ;;  %v426_v15 = vld [vmem:[#allocation2 + $0x120] sm:$0xf]  ;;  %v402_v16 = vld [vmem:[#allocation2 + $0x68] sm:$0xff]  ;;  %vm5737_vm12 = vcmask 73728  }
  0xc3   : > { %s384_s12 = scalar_lea.vmem %s9470_s0, %s5988_s20  ;;  %v407_v17 = vld [vmem:[#allocation2 + $0x90] sm:$0xf]  ;;  %7166 = vmatprep.subr.bf16.mxu1 %v7165_v9  ;;  %v7129_v18 = vpack.c.bf16 %v426_v15, %v421_v13  ;;  %v425_v21 = vld [vmem:[#allocation2 + $0x118] sm:$0xf]  ;;  %v401_v22 = vld [vmem:[#allocation2 + $0x60] sm:$0xff]  ;;  %s378_s17 = sand.u32 1, %s8542_s28  }
  0xc4   : > { %7128 = vmatpush1.bf16.msra.mxu0 %v7127_v10  ;;  %v7169_v19 = vpack.c.bf16 %v407_v17, %v402_v16  ;;  %v420_v20 = vld [vmem:[#allocation2 + $0xf0] sm:$0xff]  ;;  %7168 = vmatpush1.bf16.msra.mxu1 %v7167_v14  ;;  %v406_v24 = vld [vmem:[#allocation2 + $0x88] sm:$0xf]  ;;  %v8834_v25 = vld [vmem:[%s384_s12] sm:$0xff]  ;;  %s5985_s20 = sshll.u32 %s8634_s9, 4  ;;  %s379_s18 = scalar_lea.vmem [#allocation13], %s378_s17 }
  0xc5   : > { %v7132_v23 = vpack.c.bf16 %v425_v21, %v420_v20  ;;  %v8836_v26 = vld [vmem:[%s384_s12 + $0x8] sm:$0xff]  ;;  %7131 = vmatprep.subr.msk.bf16.mxu0 %vm8827_vm2, %v7129_v18  ;;  %v7172_v27 = vpack.c.bf16 %v406_v24, %v401_v22  ;;  %v435_v28 = vrot.slane %v8834_v25, 1  ;;  %v8844_v30 = vld [vmem:[%s384_s12 + $0x10] sm:$0xff]  ;;  %v413_v31 = vld [vmem:[#allocation2 + $0xb8] sm:$0xff]  ;;  %v1038_v2 = vrot.slane %v8834_v25, 2  ;;  %s5764_s23 = sshll.u32 %s379_s18, 4  ;;  %s9427_s4 = scalar_lea.hbm %s9478_s8, %s5985_s20  ;;  %s9429_s23 = int_to_ptr.vmem [resolvable:$true] %s5764_s23 }
  0xc6   : > { %7171 = vmatprep.subr.msk.bf16.mxu1 %vm8827_vm2, %v7169_v19  ;;  %v436_v29 = vrot.slane %v8836_v26, 1  ;;  %v418_v32 = vld [vmem:[#allocation2 + $0xe0] sm:$0xff]  ;;  %v8846_v34 = vld [vmem:[%s384_s12 + $0x18] sm:$0xf]  ;;  %v412_v35 = vld [vmem:[#allocation2 + $0xb0] sm:$0xff]  ;;  %v438_v38 = vrot.slane %v8844_v30, 1 }
  0xc7   : > { %v7135_v33 = vpack.c.bf16 %v418_v32, %v413_v31  ;;  %v417_v36 = vld [vmem:[#allocation2 + $0xd8] sm:$0xff]  ;;  %v1025_v40 = vld [vmem:[#allocation2 + $0x180] sm:$0xff]  ;;  %v1019_v41 = vld [vmem:[#allocation2 + $0x150] sm:$0xff]  ;;  %v8865_v57 = vrot.slane %v8846_v34, 1  ;;  %v1039_v3 = vrot.slane %v8836_v26, 2  ;;  %v1041_v7 = vrot.slane %v8844_v30, 2 }
  0xc8   : > { %7134 = vmatpush1.bf16.msk.msra.mxu0 %vm8827_vm2, %v7132_v23  ;;  %v8851_v37 = vsel %vm434_vm3, %v435_v28, %v436_v29  ;;  %v1020_v39 = vld [vmem:[#allocation2 + $0x158] sm:$0xff]  ;;  %7174 = vmatpush1.bf16.msk.msra.mxu1 %vm8827_vm2, %v7172_v27  ;;  %v7137_v42 = vpack.c.bf16 %v417_v36, %v412_v35  ;;  %v423_v45 = vld [vmem:[#allocation2 + $0x108] sm:$0xff]  ;;  %v428_v46 = vld [vmem:[#allocation2 + $0x130] sm:$0xf]  ;;  %v8862_v56 = vsel %vm434_vm3, %v436_v29, %v438_v38  ;;  %v8911_v12 = vrot.slane %v8846_v34, 2  ;;  %s5752_s29 = scalar_lea.sflag [#allocation4], %s378_s17 }
  0xc9   : > { %7136 = vmatprep.subr.bf16.mxu0 %v7135_v33  ;;  %v7195_v43 = vpack.c.bf16 %v1025_v40, %v1020_v39  ;;  %v1024_v44 = vld [vmem:[#allocation2 + $0x178] sm:$0xff]  ;;  %v7139_v48 = vpack.c.bf16 %v428_v46, %v423_v45  ;;  %v1030_v49 = vld [vmem:[#allocation2 + $0x1a8] sm:$0xff]  ;;  %v1035_v50 = vld [vmem:[#allocation2 + $0x1d0] sm:$0xf]  ;;  %v441_v63 = vsel %vm434_vm3, %v438_v38, %v8865_v57  ;;  %v8898_v6 = vsel %vm1037_vm5, %v1038_v2, %v1039_v3  ;;  %s8472_s11 = scalar_lea.vmem %s9429_s23, 16  ;;  %p9516_p7 = scmp.ne.s32.totalorder %s9493_s15, 0 }
  0xca   : > { %v7197_v47 = vpack.c.bf16 %v1024_v44, %v1019_v41  ;;  %v422_v51 = vld [vmem:[#allocation2 + $0x100] sm:$0xff]  ;;  %v7199_v52 = vpack.c.bf16 %v1035_v50, %v1030_v49  ;;  %v427_v53 = vld [vmem:[#allocation2 + $0x128] sm:$0xf]  ;;  %v424_v4 = vld [vmem:[#allocation2 + $0x110] sm:$0xff]  ;;  %v8908_v11 = vsel %vm1037_vm5, %v1039_v3, %v1041_v7  ;;  %v8923_v14 = vsel %vm1037_vm5, %v1041_v7, %v8911_v12  ;;  %p8473_p4 = scmp.ne.s32.totalorder %s9429_s23, %s8472_s11  ;;  %s8567_s9 = smov [#allocation13]  }
  0xcb   : > { %5899 = vmatmul.mubr.msk.f32.vlgmr.msra.gmra.mrb[0].mxu0 %vm442_vm4, %v8851_v37  ;;  %7196 = vmatprep.subr.bf16.mxu1 %v7195_v43  ;;  %v1029_v54 = vld [vmem:[#allocation2 + $0x1a0] sm:$0xff]  ;;  %v1034_v55 = vld [vmem:[#allocation2 + $0x1c8] sm:$0xf]  ;;  %v7142_v60 = vpack.c.bf16 %v427_v53, %v422_v51  ;;  %v429_v5 = vld [vmem:[#allocation2 + $0x138] sm:$0xf]  ;;  %s8476_s16 = sshll.u32 %s8567_s9, 4  ;;  %s8477_s16 = int_to_ptr.vmem [resolvable:$false] %s8476_s16 }
  0xcc   : > { %5922 = vmatmul.mubr.msk.f32.vlgmr.msra.gmra.mrb[0].mxu1 %vm442_vm4, %v8834_v25  ;;  %537 = vmatprep.mubr.f32.mxu0 %v8562_v0  ;;  %v414_v58 = vld [vmem:[#allocation2 + $0xc0] sm:$0xff]  ;;  %v419_v59 = vld [vmem:[#allocation2 + $0xe8] sm:$0xff]  ;;  %v7202_v61 = vpack.c.bf16 %v1034_v55, %v1029_v54  ;;  %v7149_v8 = vpack.c.bf16 %v429_v5, %v424_v4  ;;  %v395_v10 = vld [vmem:[#allocation2 + $0x30] sm:$0xff]  ;;  %p8474_p8 = pnand %p8473_p4, %p9516_p7  ;;  %s8478_s14 = scalar_lea.vmem %s8477_s16, 32 }
  0xcd   : > { %912 = vmatprep.mubr.f32.mxu1 %v8562_v0  ;;  %7138 = vmatpush1.bf16.msra.mxu0 %v7137_v42  ;;  %v7145_v62 = vpack.c.bf16 %v419_v59, %v414_v58  ;;  %v390_v9 = vld [vmem:[#allocation2 + $0x8] sm:$0xff]  ;;  %v389_v15 = vld [vmem:[#allocation2] sm:$0xff]  ;;  %v400_v17 = vld [vmem:[#allocation2 + $0x58] sm:$0xff]  ;;  %p8479_p13 = scmp.lt.s32.totalorder %s9429_s23, %s8477_s16  ;;  %p8480_p1 = scmp.lt.s32.totalorder %s8478_s14, %s8472_s11 }
  0xce   : > { %7198 = vmatpush1.bf16.msra.mxu1 %v7197_v47  ;;  %7141 = vmatprep.subr.msk.bf16.mxu0 %vm8827_vm2, %v7139_v48  ;;  %v7155_v13 = vpack.c.bf16 %v395_v10, %v390_v9  ;;  %v394_v16 = vld [vmem:[#allocation2 + $0x28] sm:$0xff]  ;;  %v405_v18 = vld [vmem:[#allocation2 + $0x80] sm:$0xf]  ;;  %v399_v21 = vld [vmem:[#allocation2 + $0x50] sm:$0xff]  ;;  %v1353_v9 = vlaneseq  ;;  %p8475_p11 = pneg %p8474_p8 }
  0xcf   : > { %5900 = vmatmul.mubr.msk.f32.gmra.mrb[2].mxu0 %vm442_vm4, %v8862_v56  ;;  %7201 = vmatprep.subr.msk.bf16.mxu1 %vm8827_vm2, %v7199_v52  ;;  %v7157_v19 = vpack.c.bf16 %v394_v16, %v389_v15  ;;  %v7159_v20 = vpack.c.bf16 %v405_v18, %v400_v17  ;;  %v404_v22 = vld [vmem:[#allocation2 + $0x78] sm:$0xf]  ;;  %v393_v23 = vld [vmem:[#allocation2 + $0x20] sm:$0xff]  ;;  %v398_v24 = vld [vmem:[#allocation2 + $0x48] sm:$0xff]  ;;  %p8481_p0 = por %p8480_p1, %p8479_p13 }
  0xd0   : > { %5923 = vmatmul.mubr.msk.f32.gmra.mrb[2].mxu1 %vm442_vm4, %v8836_v26  ;;  %543 = vmatprep.mubr.f32.mxu0 %v8562_v0  ;;  %v7162_v27 = vpack.c.bf16 %v404_v22, %v399_v21  ;;  %v7175_v28 = vpack.c.bf16 %v398_v24, %v393_v23  ;;  %v403_v29 = vld [vmem:[#allocation2 + $0x70] sm:$0xff]  ;;  %v408_v31 = vld [vmem:[#allocation2 + $0x98] sm:$0xf]  ;;  %v1018_v33 = vld [vmem:[#allocation2 + $0x148] sm:$0xff]  ;;  %v1354_v10 = vshrl.u32 %v1353_v9, 7 }
  0xd1   : > { %918 = vmatprep.mubr.f32.mxu1 %v8562_v0  ;;  %7144 = vmatpush1.bf16.msk.msra.mxu0 %vm8827_vm2, %v7142_v60  ;;  %v7179_v32 = vpack.c.bf16 %v408_v31, %v403_v29  ;;  %v1023_v35 = vld [vmem:[#allocation2 + $0x170] sm:$0xff]  ;;  %v1022_v38 = vld [vmem:[#allocation2 + $0x168] sm:$0xff]  ;;  %v1028_v39 = vld [vmem:[#allocation2 + $0x198] sm:$0xff]  ;;  %p8482_p6 = pnand %p8481_p0, %p8475_p11 }
  0xd2   : > { %7204 = vmatpush1.bf16.msk.msra.mxu1 %vm8827_vm2, %v7202_v61  ;;  %7146 = vmatprep.subr.bf16.mxu0 %v7145_v62  ;;  %v7185_v36 = vpack.c.bf16 %v1023_v35, %v1018_v33  ;;  %v1033_v40 = vld [vmem:[#allocation2 + $0x1c0] sm:$0xf]  ;;  %v1027_v43 = vld [vmem:[#allocation2 + $0x190] sm:$0xff]  ;;  %v1032_v44 = vld [vmem:[#allocation2 + $0x1b8] sm:$0xf] }
  0xd3   : > { %5901 = vmatmul.mubr.msk.f32.gmra.mrb[4].mxu0 %vm442_vm4, %v441_v63  ;;  %v7189_v42 = vpack.c.bf16 %v1033_v40, %v1028_v39  ;;  %v1021_v45 = vld [vmem:[#allocation2 + $0x160] sm:$0xff]  ;;  %v1026_v46 = vld [vmem:[#allocation2 + $0x188] sm:$0xff]  ;;  %v7192_v47 = vpack.c.bf16 %v1032_v44, %v1027_v43  ;;  %v1031_v49 = vld [vmem:[#allocation2 + $0x1b0] sm:$0xff] }
  0xd4   : > { %5924 = vmatmul.mubr.msk.f32.gmra.mrb[4].mxu1 %vm442_vm4, %v8844_v30  ;;  %549 = vmatprep.mubr.f32.mxu0 %v8562_v0  ;;  %v7205_v48 = vpack.c.bf16 %v1026_v46, %v1021_v45  ;;  %vm9154_vm8 = vmpackc.low %vm1619_vm7, %vm8563_vm1 }
  0xd5   : > { %924 = vmatprep.mubr.f32.mxu1 %v8562_v0 }
  0xd7   : > { %5902 = vmatmul.mubr.msk.f32.gmra.mrb[6].mxu0 %vm442_vm4, %v8865_v57 }
  0xd8   : > { %5925 = vmatmul.mubr.msk.f32.gmra.mrb[6].mxu1 %vm442_vm4, %v8846_v34  ;;  %620 = vmatprep.mubr.f32.mxu0 %v8562_v0 }
  0xd9   : > { %1221 = vmatprep.mubr.f32.mxu1 %v8562_v0 }
  0xdb   : > { %5905 = vmatmul.mubr.msk.f32.vlgmr.msra.gmra.mrb[8].mxu0 %vm442_vm4, %v8851_v37 }
  0xdc   : > { %5939 = vmatmul.mubr.msk.f32.vlgmr.msra.gmra.mrb[0].mxu1 %vm442_vm4, %v8898_v6  ;;  %626 = vmatprep.mubr.f32.mxu0 %v8562_v0 }
  0xdd   : > { %1227 = vmatprep.mubr.f32.mxu1 %v8562_v0  ;;  %7148 = vmatpush3.bf16.msra.mxu0 %v7145_v62 }
  0xde   : > { %7151 = vmatprep.subr.msk.bf16.mxu0 %vm8827_vm2, %v7149_v8 }
  0xdf   : > { %5906 = vmatmul.mubr.msk.f32.gmra.mrb[10].mxu0 %vm442_vm4, %v8862_v56 }
  0xe0   : > { %5940 = vmatmul.mubr.msk.f32.gmra.mrb[2].mxu1 %vm442_vm4, %v8908_v11  ;;  %632 = vmatprep.mubr.f32.mxu0 %v8562_v0 }
  0xe1   : > { %1233 = vmatprep.mubr.f32.mxu1 %v8562_v0  ;;  %7154 = vmatpush3.bf16.msk.msra.mxu0 %vm8827_vm2, %v7149_v8 }
  0xe2   : > { %7156 = vmatprep.subr.bf16.mxu0 %v7155_v13  ;;  %v1351_v13 = vld [vmem:[#allocation5] sm:$0x1f] }
  0xe3   : > { %5907 = vmatmul.mubr.msk.f32.gmra.mrb[12].mxu0 %vm442_vm4, %v441_v63 }
  0xe4   : > { %5941 = vmatmul.mubr.msk.f32.gmra.mrb[4].mxu1 %vm442_vm4, %v8923_v14  ;;  %638 = vmatprep.mubr.f32.mxu0 %v8562_v0 }
  0xe5   : > { %1239 = vmatprep.mubr.f32.mxu1 %v8562_v0 }
  0xe7   : > { %5908 = vmatmul.mubr.msk.f32.gmra.mrb[14].mxu0 %vm442_vm4, %v8865_v57 }
  0xe8   : > { %5942 = vmatmul.mubr.msk.f32.gmra.mrb[6].mxu1 %vm442_vm4, %v8911_v12  ;;  %6980 = vmatprep.mubr.msk.f32.mxu0 %vm442_vm4, %v8851_v37  ;;  %v1017_v37 = vld [vmem:[#allocation2 + $0x140] sm:$0xff] }
  0xe9   : > { %1699 = vmatprep.mubr.f32.mxu1 %v8562_v0  ;;  %v7187_v41 = vpack.c.bf16 %v1022_v38, %v1017_v37  ;;  %v1371_v37 = vsub.s32 4, %v1354_v10  ;;  %v1367_v38 = vsub.s32 3, %v1354_v10 }
  0xeb   : > { %6981 = vmatmul.mubr.msk.f32.vlgmr.msra.gmra.mrb[16].mxu0 %vm442_vm4, %v8862_v56  ;;  %v1372_v46 = vrot.slane %v1351_v13, %v1371_v37 }
  0xec   : > { %7158 = vmatpush1.bf16.msra.mxu0 %v7157_v19  ;;  %6983 = vmatprep.mubr.msk.f32.mxu0 %vm442_vm4, %v441_v63 }
  0xed   : > { %7161 = vmatprep.subr.msk.bf16.mxu0 %vm8827_vm2, %v7159_v20 }
  0xef   : > { %6984 = vmatmul.mubr.msk.f32.gmra.mrb[18].mxu0 %vm442_vm4, %v8865_v57 }
  0xf0   : > { %7164 = vmatpush1.bf16.msk.msra.mxu0 %vm8827_vm2, %v7162_v27  ;;  %817 = vmatprep.mubr.f32.mxu0 %v8562_v0 }
  0xf1   : > { %7176 = vmatprep.subr.bf16.mxu0 %v7175_v28 }
  0xf3   : > { %5916 = vmatmul.mubr.msk.f32.vlgmr.msra.gmra.mrb[0].mxu0 %vm442_vm4, %v8834_v25 }
  0xf4   : > { %823 = vmatprep.mubr.f32.mxu0 %v8562_v0  ;;  %7178 = vmatpush3.bf16.msra.mxu0 %v7175_v28 }
  0xf5   : > { %7181 = vmatprep.subr.msk.bf16.mxu0 %vm8827_vm2, %v7179_v32 }
  0xf7   : > { %5917 = vmatmul.mubr.msk.f32.gmra.mrb[2].mxu0 %vm442_vm4, %v8836_v26 }
  0xf8   : > { %829 = vmatprep.mubr.f32.mxu0 %v8562_v0  ;;  %7184 = vmatpush3.bf16.msk.msra.mxu0 %vm8827_vm2, %v7179_v32 }
  0xf9   : > { %7186 = vmatprep.subr.bf16.mxu0 %v7185_v36 }
  0xfb   : > { %5918 = vmatmul.mubr.msk.f32.gmra.mrb[4].mxu0 %vm442_vm4, %v8844_v30 }
  0xfc   : > { %835 = vmatprep.mubr.f32.mxu0 %v8562_v0 }
  0xff   : > { %5919 = vmatmul.mubr.msk.f32.gmra.mrb[6].mxu0 %vm442_vm4, %v8846_v34 }
 0x100   : > { %6994 = vmatprep.mubr.msk.f32.mxu0 %vm442_vm4, %v8834_v25  ;;  %v1036_v25 = vld [vmem:[#allocation2 + $0x1d8] sm:$0xf] }
 0x103   : > { %6995 = vmatmul.mubr.msk.f32.vlgmr.msra.gmra.mrb[16].mxu0 %vm442_vm4, %v8836_v26  ;;  %v7209_v26 = vpack.c.bf16 %v1036_v25, %v1031_v49 }
 0x104   : > { %7188 = vmatpush1.bf16.msra.mxu0 %v7187_v41  ;;  %6997 = vmatprep.mubr.msk.f32.mxu0 %vm442_vm4, %v8844_v30 }
 0x105   : > { %7191 = vmatprep.subr.msk.bf16.mxu0 %vm8827_vm2, %v7189_v42 }
 0x107   : > { %6998 = vmatmul.mubr.msk.f32.gmra.mrb[18].mxu0 %vm442_vm4, %v8846_v34 }
 0x108   : > { %7194 = vmatpush1.bf16.msk.msra.mxu0 %vm8827_vm2, %v7192_v47  ;;  %1132 = vmatprep.mubr.f32.mxu0 %v8562_v0  ;;  %v1368_v47 = vrot.slane %v1351_v13, %v1367_v38  ;;  %v1948_v38 = vld [vmem:[#allocation8 + $0x248] sm:$0xff] }
 0x109   : > { %7206 = vmatprep.subr.bf16.mxu0 %v7205_v48 }
 0x10b   : > { %5933 = vmatmul.mubr.msk.f32.vlgmr.msra.gmra.mrb[0].mxu0 %vm442_vm4, %v8898_v6 }
 0x10c   : > { %1138 = vmatprep.mubr.f32.mxu0 %v8562_v0  ;;  %7208 = vmatpush3.bf16.msra.mxu0 %v7205_v48 }
 0x10d   : > { %7211 = vmatprep.subr.msk.bf16.mxu0 %vm8827_vm2, %v7209_v26 }
 0x10f   : > { %5934 = vmatmul.mubr.msk.f32.gmra.mrb[2].mxu0 %vm442_vm4, %v8908_v11 }
 0x110   : > { %1144 = vmatprep.mubr.f32.mxu0 %v8562_v0  ;;  %7214 = vmatpush3.bf16.msk.msra.mxu0 %vm8827_vm2, %v7209_v26 }
 0x113   : > { %5935 = vmatmul.mubr.msk.f32.gmra.mrb[4].mxu0 %vm442_vm4, %v8923_v14 }
 0x114   : > { %1150 = vmatprep.mubr.f32.mxu0 %v8562_v0 }
 0x117   : > { %5936 = vmatmul.mubr.msk.f32.gmra.mrb[6].mxu0 %vm442_vm4, %v8911_v12 }
 0x118   : > { %7008 = vmatprep.mubr.msk.f32.mxu0 %vm442_vm4, %v8898_v6 }
 0x11b   : > { %7009 = vmatmul.mubr.msk.f32.vlgmr.msra.gmra.mrb[16].mxu0 %vm442_vm4, %v8908_v11  ;;  %v1363_v11 = vsub.s32 2, %v1354_v10 }
 0x11c   : > { %7011 = vmatprep.mubr.msk.f32.mxu0 %vm442_vm4, %v8923_v14  ;;  %v1355_v14 = vsub.s32 0, %v1354_v10 }
 0x11d   : > { %v1364_v15 = vrot.slane %v1351_v13, %v1363_v11  ;;  %v1943_v11 = vld [vmem:[#allocation8 + $0x220] sm:$0xff] }
 0x11e   : > { %v1356_v18 = vrot.slane %v1351_v13, %v1355_v14  ;;  %v1961_v14 = vld [vmem:[#allocation8 + $0x2b0] sm:$0xff] }
 0x11f   : > { %7012 = vmatmul.mubr.msk.f32.gmra.mrb[18].mxu0 %vm442_vm4, %v8911_v12  ;;  %v1359_v12 = vsub.s32 1, %v1354_v10  ;;  %v1942_v10 = vld [vmem:[#allocation8 + $0x218] sm:$0xff] }
 0x121   : > { %v1360_v16 = vrot.slane %v1351_v13, %v1359_v12  ;;  %v7251_v12 = vpack.c.bf16 %v1943_v11, %v1942_v10  ;;  %v1960_v13 = vld [vmem:[#allocation8 + $0x2a8] sm:$0xff] }
 0x1ae   : > { %v622_v1 = vpop.f32.mrb[8].mxu0 }
 0x1af   : > { %v1223_v30 = vpop.f32.mrb[0].mxu1  ;;  %v624_v34 = vpop.f32.mrb[9].mxu0 }
 0x1b0   : > { %v8101_v50 = vadd.f32 %v1223_v30, %v622_v1  ;;  %v1225_v51 = vpop.f32.mrb[1].mxu1 }
 0x1b1   : > { %v9000_v52 = vadd.f32 %v1225_v51, %v624_v34 }
 0x1b2   : > { %v628_v53 = vpop.f32.mrb[10].mxu0  ;;  %v9004_v20 = vadd.f32 %v8101_v50, %v1364_v15 }
 0x1b3   : > { %v1229_v54 = vpop.f32.mrb[2].mxu1  ;;  %v630_v55 = vpop.f32.mrb[11].mxu0  ;;  %v9049_v51 = vadd.f32 %v9000_v52, %v1368_v47 }
 0x1b4   : > { %v8103_v56 = vadd.f32 %v1229_v54, %v628_v53  ;;  %v1231_v57 = vpop.f32.mrb[3].mxu1 }
 0x1b5   : > { %v8104_v58 = vadd.f32 %v1231_v57, %v630_v55 }
 0x1b6   : > { %v634_v59 = vpop.f32.mrb[12].mxu0  ;;  %v9014_v29 = vadd.f32 %v8103_v56, %v1364_v15 }
 0x1b7   : > { %v1235_v60 = vpop.f32.mrb[4].mxu1  ;;  %v636_v61 = vpop.f32.mrb[13].mxu0  ;;  %v9044_v30 = vadd.f32 %v8104_v58, %v1368_v47 }
 0x1b8   : > { %v8105_v62 = vadd.f32 %v1235_v60, %v634_v59  ;;  %v1237_v63 = vpop.f32.mrb[5].mxu1 }
 0x1b9   : > { %v9002_v2 = vadd.f32 %v1237_v63, %v636_v61  ;;  %v1956_v63 = vld [vmem:[#allocation8 + $0x288] sm:$0xff] }
 0x1ba   : > { %v640_v3 = vpop.f32.mrb[14].mxu0  ;;  %v9024_v39 = vadd.f32 %v8105_v62, %v1364_v15 }
 0x1bb   : > { %v1241_v4 = vpop.f32.mrb[6].mxu1  ;;  %v642_v5 = vpop.f32.mrb[15].mxu0  ;;  %v9064_v52 = vadd.f32 %v9002_v2, %v1368_v47  ;;  %v1940_v2 = vld [vmem:[#allocation8 + $0x208] sm:$0xff] }
 0x1bc   : > { %v8107_v6 = vadd.f32 %v1241_v4, %v640_v3  ;;  %v1243_v7 = vpop.f32.mrb[7].mxu1  ;;  %v1957_v3 = vld [vmem:[#allocation8 + $0x290] sm:$0xff] }
 0x1bd   : > { %v8108_v8 = vadd.f32 %v1243_v7, %v642_v5  ;;  %v7245_v4 = vpack.c.bf16 %v1957_v3, %v1956_v63  ;;  %v1941_v5 = vld [vmem:[#allocation8 + $0x210] sm:$0xff]  ;;  %v1958_v7 = vld [vmem:[#allocation8 + $0x298] sm:$0xff] }
 0x1be   : > { %v9031_v43 = vadd.f32 %v8107_v6, %v1364_v15  ;;  %v7247_v6 = vpack.c.bf16 %v1941_v5, %v1940_v2  ;;  %v7253_v15 = vpack.c.bf16 %v1961_v14, %v1960_v13 }
 0x1bf   : > { %v9059_v57 = vadd.f32 %v8108_v8, %v1368_v47  ;;  %v1959_v8 = vld [vmem:[#allocation8 + $0x2a0] sm:$0xff]  ;;  %7246 = vmatprep.subr.bf16.mxu0 %v7245_v4 }
 0x1c0   : > { %v7249_v9 = vpack.c.bf16 %v1959_v8, %v1958_v7  ;;  %7248 = vmatpush3.bf16.msra.mxu0 %v7247_v6 }
 0x1c2   : > { %7250 = vmatprep.subr.bf16.mxu0 %v7249_v9 }
 0x1c4   : > { %7252 = vmatpush3.bf16.msra.mxu0 %v7251_v12 }
 0x1c5   : > { %7254 = vmatprep.subr.bf16.mxu0 %v7253_v15 }
 0x1de   : > { %v1134_v17 = vpop.f32.mrb[0].mxu0 }
 0x1df   : > { %v1136_v19 = vpop.f32.mrb[1].mxu0  ;;  %v9010_v24 = vadd.f32 %v1356_v18, %v1134_v17  ;;  %v1945_v17 = vld [vmem:[#allocation8 + $0x230] sm:$0xff] }
 0x1e0   : > { %v9006_v21 = vadd.f32 %v1360_v16, %v1136_v19  ;;  %v1963_v19 = vld [vmem:[#allocation8 + $0x2c0] sm:$0xff] }
 0x1e2   : > { %v1140_v22 = vpop.f32.mrb[2].mxu0  ;;  %v8250_v23 = vpack.i.bf16 %v9004_v20, %v9006_v21 }
 0x1e3   : > { %v9012_v27 = vadd.f32 %v1356_v18, %v1140_v22  ;;  %v1142_v28 = vpop.f32.mrb[3].mxu0 }
 0x1e4   : > { %v9016_v31 = vadd.f32 %v1360_v16, %v1142_v28  ;;  %8251 = vrot.lane.b32.xlu0 %v8250_v23, %s8564_s24  ;;  %v1946_v28 = vld [vmem:[#allocation8 + $0x238] sm:$0xff] }
 0x1e5   : > { %v8255_v32 = vpack.i.bf16 %v9012_v27, %v9010_v24 }
 0x1e6   : > { %v8260_v33 = vpack.i.bf16 %v9014_v29, %v9016_v31  ;;  %v1146_v35 = vpop.f32.mrb[4].mxu0 }
 0x1e7   : > { %8256 = vrot.lane.b32.xlu1 %v8255_v32, %s8564_s24  ;;  %v1148_v36 = vpop.f32.mrb[5].mxu0  ;;  %v9035_v48 = vadd.f32 %v1356_v18, %v1146_v35  ;;  %v1947_v32 = vld [vmem:[#allocation8 + $0x240] sm:$0xff]  ;;  %v1965_v35 = vld [vmem:[#allocation8 + $0x2d0] sm:$0xff] }
 0x1e8   : > { %v9026_v40 = vadd.f32 %v1360_v16, %v1148_v36  ;;  %8261 = vrot.lane.b32.xlu0 %v8260_v33, %s8564_s24  ;;  %v1964_v33 = vld [vmem:[#allocation8 + $0x2c8] sm:$0xff]  ;;  %v7259_v36 = vpack.c.bf16 %v1947_v32, %v1946_v28 }
 0x1e9   : > { %v7261_v37 = vpack.c.bf16 %v1965_v35, %v1964_v33 }
 0x1ea   : > { %v8265_v41 = vpack.i.bf16 %v9024_v39, %v9026_v40  ;;  %v1152_v42 = vpop.f32.mrb[6].mxu0 }
 0x1eb   : > { %v9033_v44 = vadd.f32 %v1356_v18, %v1152_v42  ;;  %v1154_v45 = vpop.f32.mrb[7].mxu0  ;;  %v1962_v18 = vld [vmem:[#allocation8 + $0x2b8] sm:$0xff] }
 0x1ec   : > { %v9037_v49 = vadd.f32 %v1360_v16, %v1154_v45  ;;  %8266 = vrot.lane.b32.xlu1 %v8265_v41, %s8564_s24  ;;  %v1944_v16 = vld [vmem:[#allocation8 + $0x228] sm:$0xff]  ;;  %v7257_v23 = vpack.c.bf16 %v1963_v19, %v1962_v18  ;;  %v1949_v41 = vld [vmem:[#allocation8 + $0x250] sm:$0xff]  ;;  %v1966_v42 = vld [vmem:[#allocation8 + $0x2d8] sm:$0xff] }
 0x1ed   : > { %v8270_v25 = vpack.i.bf16 %v9033_v44, %v9031_v43  ;;  %v7255_v22 = vpack.c.bf16 %v1945_v17, %v1944_v16  ;;  %v1967_v45 = vld [vmem:[#allocation8 + $0x2e0] sm:$0xff] }
 0x1ee   : > { %v8275_v26 = vpack.i.bf16 %v9037_v49, %v9035_v48  ;;  %v7010_v1 = vpop.f32.mrb[16].mxu0  ;;  %v7265_v47 = vpack.c.bf16 %v1967_v45, %v1966_v42 }
 0x1ef   : > { %v9046_v34 = vadd.f32 %v7010_v1, %v1372_v46  ;;  %v1312_v50 = vpop.f32.mrb[17].mxu0  ;;  %7256 = vmatpush3.bf16.msra.mxu0 %v7255_v22  ;;  %v1968_v1 = vld [vmem:[#allocation8 + $0x2e8] sm:$0xff] }
 0x1f0   : > { %v9051_v53 = vadd.f32 %v1372_v46, %v1312_v50  ;;  %8271 = vrot.lane.b32.xlu1 %v8270_v25, %s8564_s24  ;;  %8276 = vrot.lane.b32.xlu0 %v8275_v26, %s8564_s24  ;;  %v1950_v25 = vld [vmem:[#allocation8 + $0x258] sm:$0xff]  ;;  %v1951_v26 = vld [vmem:[#allocation8 + $0x260] sm:$0xff]  ;;  %v1969_v50 = vld [vmem:[#allocation8 + $0x2f0] sm:$0xff] }
 0x1f1   : > { %v8280_v54 = vpack.i.bf16 %v9046_v34, %v9044_v30  ;;  %7258 = vmatprep.subr.bf16.mxu0 %v7257_v23 }
 0x1f2   : > { %v8285_v55 = vpack.i.bf16 %v9051_v53, %v9049_v51  ;;  %v7013_v56 = vpop.f32.mrb[18].mxu0 }
 0x1f3   : > { %v9061_v58 = vadd.f32 %v7013_v56, %v1372_v46  ;;  %v1322_v59 = vpop.f32.mrb[19].mxu0  ;;  %7260 = vmatpush3.bf16.msra.mxu0 %v7259_v36 }
 0x1f4   : > { %v9066_v60 = vadd.f32 %v1372_v46, %v1322_v59  ;;  %8281 = vrot.lane.b32.xlu1 %v8280_v54, %s8564_s24  ;;  %8286 = vrot.lane.b32.xlu0 %v8285_v55, %s8564_s24  ;;  %v7263_v46 = vpack.c.bf16 %v1949_v41, %v1948_v38  ;;  %v7267_v54 = vpack.c.bf16 %v1951_v26, %v1950_v25 }
 0x1f5   : > { %v8295_v61 = vpack.i.bf16 %v9061_v58, %v9059_v57  ;;  %7262 = vmatprep.subr.bf16.mxu0 %v7261_v37  ;;  %v7269_v55 = vpack.c.bf16 %v1969_v50, %v1968_v1 }
 0x1f6   : > { %v8290_v62 = vpack.i.bf16 %v9066_v60, %v9064_v52 }
 0x1f7   : > { %7264 = vmatpush3.bf16.msra.mxu0 %v7263_v46 }
 0x1f8   : > { %8296 = vrot.lane.b32.xlu1 %v8295_v61, %s8564_s24  ;;  %8291 = vrot.lane.b32.xlu0 %v8290_v62, %s8564_s24 }
 0x1f9   : > { %7266 = vmatprep.subr.bf16.mxu0 %v7265_v47 }
 0x1fb   : > { %7268 = vmatpush3.bf16.msra.mxu0 %v7267_v54 }
 0x1fc   : > { %7270 = vmatprep.subr.bf16.mxu0 %v7269_v55 }
 0x256   : > { %v9076_v56 = vpop.permute.xlu0 %8251 }
 0x257   : > { %v8254_v61 = vunpack.i.h.bf16 %v9076_v56  ;;  %v8253_v62 = vunpack.i.l.bf16 %v9076_v56 }
 0x259   : > { %v8257_v59 = vpop.permute.xlu1 %8256  ;;  %v1460_v6 = vsel %vm1458_vm6, %v8253_v62, %v8254_v61 }
 0x25a   : > { %v8262_v63 = vpop.permute.xlu0 %8261  ;;  %v8258_v3 = vunpack.i.l.bf16 %v8257_v59  ;;  %v8259_v5 = vunpack.i.h.bf16 %v8257_v59  ;;  %v1496_v14 = vmax.f32 %v9006_v21, %v1460_v6 }
 0x25b   : > { %v8264_v2 = vunpack.i.h.bf16 %v8262_v63  ;;  %v8263_v4 = vunpack.i.l.bf16 %v8262_v63 }
 0x25c   : > { %v1459_v8 = vsel %vm1458_vm6, %v8258_v3, %v8253_v62  ;;  %v1538_v21 = vrot.slane %v1496_v14, 1 }
 0x25d   : > { %v1464_v9 = vsel %vm1458_vm6, %v8263_v4, %v8264_v2  ;;  %v1463_v12 = vsel %vm1458_vm6, %v8259_v5, %v8263_v4  ;;  %v9093_v15 = vmax.f32 %v9010_v24, %v1459_v8 }
 0x25e   : > { %v9081_v7 = vpop.permute.xlu1 %8266  ;;  %v1501_v16 = vmax.f32 %v9016_v31, %v1464_v9  ;;  %v9100_v33 = vmax.f32 %v9012_v27, %v1463_v12 }
 0x25f   : > { %v8269_v10 = vunpack.i.h.bf16 %v9081_v7  ;;  %v8268_v11 = vunpack.i.l.bf16 %v9081_v7  ;;  %v1535_v38 = vrot.slane %v9093_v15, 1 }
 0x260   : > { %v1539_v36 = vrot.slane %v1501_v16, 1  ;;  %v1536_v46 = vrot.slane %v9100_v33, 1 }
 0x261   : > { %v1468_v13 = vsel %vm1458_vm6, %v8268_v11, %v8269_v10 }
 0x262   : > { %v9097_v17 = vmax.f32 %v9026_v40, %v1468_v13  ;;  %v8272_v18 = vpop.permute.xlu1 %8271  ;;  %v8277_v19 = vpop.permute.xlu0 %8276  ;;  %v1540_v55 = vsel %vm434_vm3, %v1538_v21, %v1539_v36  ;;  %v1537_v4 = vsel %vm434_vm3, %v1535_v38, %v1536_v46 }
 0x263   : > { %v8274_v22 = vunpack.i.h.bf16 %v8272_v18  ;;  %v8273_v23 = vunpack.i.l.bf16 %v8272_v18  ;;  %v8279_v28 = vunpack.i.h.bf16 %v8277_v19  ;;  %v8278_v32 = vunpack.i.l.bf16 %v8277_v19 }
 0x264   : > { %v1552_v35 = vrot.slane %v9097_v17, 1 }
 0x265   : > { %v1471_v24 = vsel %vm1458_vm6, %v8274_v22, %v8279_v28  ;;  %v1472_v31 = vsel %vm1458_vm6, %v8279_v28, %v8273_v23  ;;  %v1467_v41 = vsel %vm1458_vm6, %v8278_v32, %v8268_v11 }
 0x266   : > { %v8282_v37 = vpop.permute.xlu1 %8281  ;;  %v8287_v40 = vpop.permute.xlu0 %8286  ;;  %v1553_v25 = vsel %vm434_vm3, %v1539_v36, %v1552_v35  ;;  %v1510_v26 = vmax.f32 %v9033_v44, %v1471_v24  ;;  %v1511_v1 = vmax.f32 %v9037_v49, %v1472_v31  ;;  %v9112_v50 = vmax.f32 %v9035_v48, %v1467_v41 }
 0x267   : > { %v8284_v42 = vunpack.i.h.bf16 %v8282_v37  ;;  %v8283_v45 = vunpack.i.l.bf16 %v8282_v37  ;;  %v8289_v27 = vunpack.i.h.bf16 %v8287_v40  ;;  %v8288_v47 = vunpack.i.l.bf16 %v8287_v40 }
 0x268   : > { %v1596_v59 = vmax.f32 %v1501_v16, %v1553_v25  ;;  %v1560_v5 = vrot.slane %v1510_v26, 1  ;;  %v1562_v6 = vrot.slane %v1511_v1, 1  ;;  %v1591_v49 = vmax.f32 %v1496_v14, %v1540_v55  ;;  %v1998_v25 = vld [vmem:[#allocation8 + $0x3d8] sm:$0xff] }
 0x269   : > { %v1466_v56 = vsel %vm1458_vm6, %v8283_v45, %v8284_v42  ;;  %v1462_v62 = vsel %vm1458_vm6, %v8288_v47, %v8289_v27  ;;  %v1465_v44 = vsel %vm1458_vm6, %v8264_v2, %v8283_v45  ;;  %v1550_v48 = vrot.slane %v9112_v50, 1 }
 0x26a   : > { %v8297_v54 = vpop.permute.xlu1 %8296  ;;  %v8292_v3 = vpop.permute.xlu0 %8291  ;;  %v1503_v8 = vmax.f32 %v9044_v30, %v1466_v56  ;;  %v1461_v9 = vsel %vm1458_vm6, %v8254_v61, %v8288_v47  ;;  %v1498_v12 = vmax.f32 %v9049_v51, %v1462_v62  ;;  %v7215_v18 = vpack.c.bf16 %v1596_v59, %v1591_v49 }
 0x26b   : > { %v8299_v63 = vunpack.i.h.bf16 %v8297_v54  ;;  %v8298_v11 = vunpack.i.l.bf16 %v8297_v54  ;;  %v8294_v13 = vunpack.i.h.bf16 %v8292_v3  ;;  %v8293_v16 = vunpack.i.l.bf16 %v8292_v3 }
 0x26c   : > { %v1502_v19 = vmax.f32 %v9014_v29, %v1465_v44  ;;  %v1606_v28 = vmax.f32 %v1511_v1, %v1562_v6  ;;  %v9126_v2 = vmax.f32 %v9046_v34, %v8284_v42  ;;  %v1497_v14 = vmax.f32 %v9004_v20, %v1461_v9  ;;  %7216 = vmatprep.subr.bf16.mxu1 %v7215_v18 }
 0x26d   : > { %v1474_v22 = vsel %vm1458_vm6, %v8298_v11, %v8299_v63  ;;  %v1590_v30 = vmax.f32 %v9093_v15, %v1537_v4  ;;  %v1473_v61 = vsel %vm1458_vm6, %v8273_v23, %v8298_v11  ;;  %v1469_v29 = vsel %vm1458_vm6, %v8269_v10, %v8293_v16 }
 0x26e   : > { %v1513_v51 = vmax.f32 %v9059_v57, %v1474_v22  ;;  %v1470_v32 = vsel %vm1458_vm6, %v8293_v16, %v8294_v13  ;;  %v1561_v21 = vsel %vm434_vm3, %v1550_v48, %v1560_v5  ;;  %v1545_v36 = vrot.slane %v1503_v8, 1  ;;  %v1611_v16 = vld [vmem:[#allocation7 + $0x8] sm:$0x1f] }
 0x26f   : > { %v1544_v34 = vrot.slane %v1498_v12, 1  ;;  %v1507_v24 = vmax.f32 %v9024_v39, %v1469_v29  ;;  %v1542_v20 = vrot.slane %v1502_v19, 1  ;;  %v1508_v31 = vmax.f32 %v9064_v52, %v1470_v32  ;;  %v1972_v29 = vld [vmem:[#allocation8 + $0x308] sm:$0xff]  ;;  %v1973_v32 = vld [vmem:[#allocation8 + $0x310] sm:$0xff] }
 0x270   : > { %v1551_v15 = vsel %vm434_vm3, %v1536_v46, %v1550_v48  ;;  %v1563_v23 = vsel %vm434_vm3, %v1552_v35, %v1562_v6  ;;  %v1541_v57 = vrot.slane %v1497_v14, 1  ;;  %v1512_v7 = vmax.f32 %v9031_v43, %v1473_v61  ;;  %v1610_v6 = vld [vmem:[#allocation7] sm:$0xff] }
 0x271   : > { %v9143_v10 = vmax.f32 %v9066_v60, %v8294_v13  ;;  %v1554_v37 = vrot.slane %v1507_v24, 1  ;;  %v1566_v40 = vrot.slane %v1513_v51, 1  ;;  %v1556_v38 = vrot.slane %v1508_v31, 1 }
 0x272   : > { %v1595_v41 = vmax.f32 %v9100_v33, %v1551_v15  ;;  %v1601_v39 = vmax.f32 %v9097_v17, %v1563_v23  ;;  %v1605_v42 = vmax.f32 %v1510_v26, %v1560_v5  ;;  %v1499_v52 = vmax.f32 %v9051_v53, %v8289_v27  ;;  %v1992_v15 = vld [vmem:[#allocation8 + $0x3a8] sm:$0xff]  ;;  %v1993_v23 = vld [vmem:[#allocation8 + $0x3b0] sm:$0xff] }
 0x273   : > { %v1546_v45 = vsel %vm434_vm3, %v1544_v34, %v1545_v36  ;;  %v1555_v35 = vsel %vm434_vm3, %v1542_v20, %v1554_v37  ;;  %v1600_v46 = vmax.f32 %v9112_v50, %v1561_v21  ;;  %v1514_v43 = vmax.f32 %v9061_v58, %v8299_v63  ;;  %v1990_v21 = vld [vmem:[#allocation8 + $0x398] sm:$0xff] }
 0x274   : > { %v7217_v60 = vpack.c.bf16 %v1595_v41, %v1590_v30  ;;  %v7219_v47 = vpack.c.bf16 %v1606_v28, %v1601_v39  ;;  %v1543_v17 = vsel %vm434_vm3, %v1541_v57, %v1542_v20  ;;  %v1564_v33 = vrot.slane %v1512_v7, 1  ;;  %v1989_v30 = vld [vmem:[#allocation8 + $0x390] sm:$0xff]  ;;  %v1974_v20 = vld [vmem:[#allocation8 + $0x318] sm:$0xff] }
 0x275   : > { %v1558_v53 = vrot.slane %v9143_v10, 1  ;;  %v1557_v27 = vsel %vm434_vm3, %v1545_v36, %v1556_v38  ;;  %v1567_v26 = vsel %vm434_vm3, %v1556_v38, %v1566_v40  ;;  %v1593_v1 = vmax.f32 %v1498_v12, %v1546_v45  ;;  %v1991_v36 = vld [vmem:[#allocation8 + $0x3a0] sm:$0xff]  ;;  %v1996_v45 = vld [vmem:[#allocation8 + $0x3c8] sm:$0xff] }
 0x276   : > { %7218 = vmatpush1.bf16.msra.mxu1 %v7217_v60  ;;  %v1598_v58 = vmax.f32 %v1503_v8, %v1557_v27  ;;  %v1597_v50 = vmax.f32 %v1502_v19, %v1555_v35  ;;  %v1548_v54 = vrot.slane %v9126_v2, 1  ;;  %v7222_v55 = vpack.c.bf16 %v1605_v42, %v1600_v46  ;;  %v1995_v38 = vld [vmem:[#allocation8 + $0x3c0] sm:$0xff]  ;;  %v1978_v42 = vld [vmem:[#allocation8 + $0x338] sm:$0xff]  ;;  %v1997_v35 = vld [vmem:[#allocation8 + $0x3d0] sm:$0xff] }
 0x277   : > { %7221 = vmatprep.subr.msk.bf16.mxu1 %vm9154_vm8, %v7219_v47  ;;  %v1547_v56 = vrot.slane %v1499_v52, 1  ;;  %v1592_v59 = vmax.f32 %v1497_v14, %v1543_v17  ;;  %v1608_v63 = vmax.f32 %v1513_v51, %v1566_v40  ;;  %v1565_v3 = vsel %vm434_vm3, %v1554_v37, %v1564_v33  ;;  %v1977_v37 = vld [vmem:[#allocation8 + $0x330] sm:$0xff]  ;;  %v1994_v40 = vld [vmem:[#allocation8 + $0x3b8] sm:$0xff]  ;;  %v1980_v60 = vld [vmem:[#allocation8 + $0x348] sm:$0xff] }
 0x278   : > { %v7225_v62 = vpack.c.bf16 %v1598_v58, %v1593_v1  ;;  %v1603_v4 = vmax.f32 %v1508_v31, %v1567_v26  ;;  %v1568_v5 = vrot.slane %v1514_v43, 1  ;;  %v1559_v49 = vsel %vm434_vm3, %v1548_v54, %v1558_v53  ;;  %v1975_v31 = vld [vmem:[#allocation8 + $0x320] sm:$0xff]  ;;  %v1981_v47 = vld [vmem:[#allocation8 + $0x350] sm:$0xff]  ;;  %v1982_v27 = vld [vmem:[#allocation8 + $0x358] sm:$0xff] }
 0x279   : > { %v7227_v44 = vpack.c.bf16 %v1597_v50, %v1592_v59  ;;  %v1549_v48 = vsel %vm434_vm3, %v1547_v56, %v1548_v54  ;;  %v1607_v8 = vmax.f32 %v1512_v7, %v1564_v33  ;;  %v1602_v9 = vmax.f32 %v1507_v24, %v1565_v3  ;;  %v1999_v17 = vld [vmem:[#allocation8 + $0x3e0] sm:$0xff]  ;;  %v1952_v58 = vld [vmem:[#allocation8 + $0x268] sm:$0xff]  ;;  %v1953_v50 = vld [vmem:[#allocation8 + $0x270] sm:$0xff] }
 0x27a   : > { %7224 = vmatpush1.bf16.msk.msra.mxu1 %vm9154_vm8, %v7222_v55  ;;  %v7229_v11 = vpack.c.bf16 %v1608_v63, %v1603_v4  ;;  %v1599_v12 = vmax.f32 %v9126_v2, %v1559_v49  ;;  %v1569_v13 = vsel %vm434_vm3, %v1558_v53, %v1568_v5  ;;  %v1594_v18 = vmax.f32 %v1499_v52, %v1549_v48  ;;  %v1988_v2 = vld [vmem:[#allocation8 + $0x388] sm:$0xff]  ;;  %v1979_v52 = vld [vmem:[#allocation8 + $0x340] sm:$0xff]  ;;  %v1970_v55 = vld [vmem:[#allocation8 + $0x2f8] sm:$0xff] }
 0x27b   : > { %7226 = vmatprep.subr.bf16.mxu1 %v7225_v62  ;;  %v7232_v19 = vpack.c.bf16 %v1607_v8, %v1602_v9  ;;  %v1609_v22 = vmax.f32 %v1514_v43, %v1568_v5  ;;  %v1604_v28 = vmax.f32 %v9143_v10, %v1569_v13  ;;  %v7277_v51 = vpack.c.bf16 %v1989_v30, %v1988_v2  ;;  %v1976_v10 = vld [vmem:[#allocation8 + $0x328] sm:$0xff]  ;;  %v1983_v26 = vld [vmem:[#allocation8 + $0x360] sm:$0xff]  ;;  %v1954_v62 = vld [vmem:[#allocation8 + $0x278] sm:$0xff] }
 0x27c   : > { %v7235_v14 = vpack.c.bf16 %v1599_v12, %v1594_v18  ;;  %v7279_v34 = vpack.c.bf16 %v1973_v32, %v1972_v29  ;;  %v7281_v24 = vpack.c.bf16 %v1991_v36, %v1990_v21  ;;  %v7283_v57 = vpack.c.bf16 %v1975_v31, %v1974_v20  ;;  %v1971_v56 = vld [vmem:[#allocation8 + $0x300] sm:$0xff]  ;;  %v2000_v4 = vld [vmem:[#allocation8 + $0x3e8] sm:$0xff]  ;;  %v2001_v5 = vld [vmem:[#allocation8 + $0x3f0] sm:$0xff] }
 0x27d   : > { %5950 = vmatmul.mubr.msk.f32.vlgmr.msra.gmra.mrb[8].mxu1 %vm1612_vm9, %v1610_v6  ;;  %v7239_v61 = vpack.c.bf16 %v1609_v22, %v1604_v28  ;;  %v7285_v7 = vpack.c.bf16 %v1993_v23, %v1992_v15  ;;  %v7287_v41 = vpack.c.bf16 %v1977_v37, %v1976_v10  ;;  %v7289_v39 = vpack.c.bf16 %v1995_v38, %v1994_v40  ;;  %v1955_v63 = vld [vmem:[#allocation8 + $0x280] sm:$0xff]  ;;  %v1985_v49 = vld [vmem:[#allocation8 + $0x370] sm:$0xff]  ;;  %v2002_v8 = vld [vmem:[#allocation8 + $0x3f8] sm:$0xff] }
 0x27e   : > { %7228 = vmatpush1.bf16.msra.mxu1 %v7227_v44  ;;  %1705 = vmatprep.mubr.f32.mxu1 %v8562_v0  ;;  %v7291_v46 = vpack.c.bf16 %v1979_v52, %v1978_v42  ;;  %v7293_v43 = vpack.c.bf16 %v1997_v35, %v1996_v45  ;;  %v7295_v33 = vpack.c.bf16 %v1981_v47, %v1980_v60  ;;  %v1984_v44 = vld [vmem:[#allocation8 + $0x368] sm:$0xff]  ;;  %v2003_v9 = vld [vmem:[#allocation8 + $0x400] sm:$0xff]  ;;  %v1986_v12 = vld [vmem:[#allocation8 + $0x378] sm:$0xff] }
 0x27f   : > { %7231 = vmatprep.subr.msk.bf16.mxu1 %vm9154_vm8, %v7229_v11  ;;  %v7297_v53 = vpack.c.bf16 %v1999_v17, %v1998_v25  ;;  %v7299_v1 = vpack.c.bf16 %v1983_v26, %v1982_v27  ;;  %v7271_v54 = vpack.c.bf16 %v1953_v50, %v1952_v58  ;;  %v7273_v59 = vpack.c.bf16 %v1971_v56, %v1970_v55  ;;  %v1987_v13 = vld [vmem:[#allocation8 + $0x380] sm:$0xff]  ;;  %v1892_v10 = vld [vmem:[#allocation8 + $0x90] sm:$0xff]  ;;  %v1893_v37 = vld [vmem:[#allocation8 + $0x98] sm:$0xff] }
 0x280   : > { %v7275_v3 = vpack.c.bf16 %v1955_v63, %v1954_v62  ;;  %v7303_v48 = vpack.c.bf16 %v1985_v49, %v1984_v44  ;;  %v7305_v11 = vpack.c.bf16 %v2003_v9, %v2002_v8  ;;  %v1890_v18 = vld [vmem:[#allocation8 + $0x80] sm:$0xff]  ;;  %v7313_v52 = vpack.c.bf16 %v1893_v37, %v1892_v10  ;;  %v1876_v45 = vld [vmem:[#allocation8 + $0x10] sm:$0xff]  ;;  %v1877_v35 = vld [vmem:[#allocation8 + $0x18] sm:$0xff] }
 0x281   : > { %5951 = vmatmul.mubr.msk.f32.gmra.mrb[10].mxu1 %vm1612_vm9, %v1611_v16  ;;  %7272 = vmatpush3.bf16.msra.mxu0 %v7271_v54  ;;  %v1874_v23 = vld [vmem:[#allocation8] sm:$0xff]  ;;  %v7315_v47 = vpack.c.bf16 %v1877_v35, %v1876_v45  ;;  %v1907_v17 = vld [vmem:[#allocation8 + $0x108] sm:$0xff]  ;;  %v1925_v58 = vld [vmem:[#allocation8 + $0x198] sm:$0xff] }
 0x282   : > { %7234 = vmatpush1.bf16.msk.msra.mxu1 %vm9154_vm8, %v7232_v19  ;;  %1776 = vmatprep.mubr.f32.mxu1 %v8562_v0  ;;  %v1891_v19 = vld [vmem:[#allocation8 + $0x88] sm:$0xff]  ;;  %v1906_v25 = vld [vmem:[#allocation8 + $0x100] sm:$0xff]  ;;  %v1896_v54 = vld [vmem:[#allocation8 + $0xb0] sm:$0xff] }
 0x283   : > { %7236 = vmatprep.subr.bf16.mxu1 %v7235_v14  ;;  %7274 = vmatprep.subr.bf16.mxu0 %v7273_v59  ;;  %v7309_v22 = vpack.c.bf16 %v1891_v19, %v1890_v18  ;;  %v1879_v26 = vld [vmem:[#allocation8 + $0x28] sm:$0xff]  ;;  %v1897_v55 = vld [vmem:[#allocation8 + $0xb8] sm:$0xff]  ;;  %v7343_v56 = vpack.c.bf16 %v1907_v17, %v1906_v25  ;;  %v1926_v49 = vld [vmem:[#allocation8 + $0x1a0] sm:$0xff] }
 0x284   : > { %v1881_v44 = vld [vmem:[#allocation8 + $0x38] sm:$0xff]  ;;  %v1898_v8 = vld [vmem:[#allocation8 + $0xc0] sm:$0xff]  ;;  %v1899_v9 = vld [vmem:[#allocation8 + $0xc8] sm:$0xff] }
 0x285   : > { %5954 = vmatmul.mubr.msk.f32.vlgmr.msra.gmra.mrb[12].mxu1 %vm1612_vm9, %v1610_v6  ;;  %7276 = vmatpush3.bf16.msra.mxu0 %v7275_v3  ;;  %v1908_v3 = vld [vmem:[#allocation8 + $0x110] sm:$0xff]  ;;  %v1911_v18 = vld [vmem:[#allocation8 + $0x128] sm:$0xff]  ;;  %v1882_v19 = vld [vmem:[#allocation8 + $0x40] sm:$0xff] }
 0x286   : > { %7238 = vmatpush3.bf16.msra.mxu1 %v7235_v14  ;;  %1782 = vmatprep.mubr.f32.mxu1 %v8562_v0  ;;  %v1885_v10 = vld [vmem:[#allocation8 + $0x58] sm:$0xff]  ;;  %v1930_v37 = vld [vmem:[#allocation8 + $0x1c0] sm:$0xff]  ;;  %v1887_v17 = vld [vmem:[#allocation8 + $0x68] sm:$0xff] }
 0x287   : > { %7241 = vmatprep.subr.msk.bf16.mxu1 %vm9154_vm8, %v7239_v61  ;;  %7025 = vmatprep.subr.mxu0 %v8562_v0 }
 0x289   : > { %5955 = vmatmul.mubr.msk.f32.gmra.mrb[14].mxu1 %vm1612_vm9, %v1611_v16 }
 0x28a   : > { %7244 = vmatpush3.bf16.msk.msra.mxu1 %vm9154_vm8, %v7239_v61  ;;  %7022 = vmatprep.mubr.msk.f32.mxu1 %vm1612_vm9, %v1610_v6  ;;  %v7301_v6 = vpack.c.bf16 %v2001_v5, %v2000_v4  ;;  %v1922_v61 = vld [vmem:[#allocation8 + $0x180] sm:$0xff]  ;;  %v1909_v4 = vld [vmem:[#allocation8 + $0x118] sm:$0xff]  ;;  %v1880_v5 = vld [vmem:[#allocation8 + $0x30] sm:$0xff] }
 0x28b   : > { %7278 = vmatprep.subr.bf16.mxu1 %v7277_v51  ;;  %v1923_v51 = vld [vmem:[#allocation8 + $0x188] sm:$0xff] }
 0x28d   : > { %7023 = vmatmul.mubr.msk.f32.vlgmr.msra.gmra.mrb[16].mxu1 %vm1612_vm9, %v1611_v16  ;;  %v7307_v16 = vpack.c.bf16 %v1987_v13, %v1986_v12  ;;  %v7323_v12 = vpack.c.bf16 %v1881_v44, %v1880_v5 }
 0x28e   : > { %7280 = vmatpush3.bf16.msra.mxu1 %v7279_v34  ;;  %v2004_v34 = vld [vmem:[#allocation8 + $0x408] sm:$0x7f] }
 0x28f   : > { %7282 = vmatprep.subr.bf16.mxu1 %v7281_v24  ;;  %v7341_v24 = vpack.c.bf16 %v1923_v51, %v1922_v61  ;;  %v1929_v61 = vld [vmem:[#allocation8 + $0x1b8] sm:$0xff]  ;;  %v1900_v51 = vld [vmem:[#allocation8 + $0xd0] sm:$0xff] }
 0x292   : > { %7284 = vmatpush3.bf16.msra.mxu1 %v7283_v57  ;;  %v1875_v57 = vld [vmem:[#allocation8 + $0x8] sm:$0xff] }
 0x293   : > { %7286 = vmatprep.subr.bf16.mxu1 %v7285_v7 }
 0x296   : > { %7288 = vmatpush3.bf16.msra.mxu1 %v7287_v41  ;;  %v7311_v41 = vpack.c.bf16 %v1875_v57, %v1874_v23  ;;  %v1884_v23 = vld [vmem:[#allocation8 + $0x50] sm:$0xff] }
 0x297   : > { %7290 = vmatprep.subr.bf16.mxu1 %v7289_v39  ;;  %v7331_v45 = vpack.c.bf16 %v1885_v10, %v1884_v23  ;;  %v2452_v23 = vld [vmem:[#allocation8 + $0x418] sm:$0xff] }
 0x29a   : > { %7292 = vmatpush3.bf16.msra.mxu1 %v7291_v46  ;;  %v1894_v46 = vld [vmem:[#allocation8 + $0xa0] sm:$0xff] }
 0x29b   : > { %7294 = vmatprep.subr.bf16.mxu1 %v7293_v43  ;;  %v1895_v43 = vld [vmem:[#allocation8 + $0xa8] sm:$0xff] }
 0x29c   : > { %v7317_v27 = vpack.c.bf16 %v1895_v43, %v1894_v46  ;;  %v1914_v46 = vld [vmem:[#allocation8 + $0x140] sm:$0xff]  ;;  %v1915_v43 = vld [vmem:[#allocation8 + $0x148] sm:$0xff] }
 0x29e   : > { %7296 = vmatpush3.bf16.msra.mxu1 %v7295_v33  ;;  %v1878_v33 = vld [vmem:[#allocation8 + $0x20] sm:$0xff] }
 0x29f   : > { %7298 = vmatprep.subr.bf16.mxu1 %v7297_v53  ;;  %v7319_v62 = vpack.c.bf16 %v1879_v26, %v1878_v33  ;;  %v1932_v33 = vld [vmem:[#allocation8 + $0x1d0] sm:$0xff]  ;;  %v1905_v26 = vld [vmem:[#allocation8 + $0xf8] sm:$0xff] }
 0x2a2   : > { %7300 = vmatpush3.bf16.msra.mxu1 %v7299_v1  ;;  %v1924_v1 = vld [vmem:[#allocation8 + $0x190] sm:$0xff] }
 0x2a3   : > { %7302 = vmatprep.subr.bf16.mxu1 %v7301_v6  ;;  %v7345_v63 = vpack.c.bf16 %v1925_v58, %v1924_v1  ;;  %v7321_v6 = vpack.c.bf16 %v1897_v55, %v1896_v54  ;;  %v7359_v1 = vpack.c.bf16 %v1915_v43, %v1914_v46  ;;  %v1916_v55 = vld [vmem:[#allocation8 + $0x150] sm:$0xff] }
 0x2a6   : > { %7304 = vmatpush3.bf16.msra.mxu1 %v7303_v48  ;;  %v1927_v48 = vld [vmem:[#allocation8 + $0x1a8] sm:$0xff] }
 0x2a7   : > { %7306 = vmatprep.subr.bf16.mxu1 %v7305_v11  ;;  %v7347_v11 = vpack.c.bf16 %v1909_v4, %v1908_v3  ;;  %v7349_v13 = vpack.c.bf16 %v1927_v48, %v1926_v49  ;;  %v1934_v3 = vld [vmem:[#allocation8 + $0x1e0] sm:$0xff]  ;;  %v1935_v4 = vld [vmem:[#allocation8 + $0x1e8] sm:$0xff] }
 0x2a8   : > { %v7365_v44 = vpack.c.bf16 %v1935_v4, %v1934_v3  ;;  %v1918_v49 = vld [vmem:[#allocation8 + $0x160] sm:$0xff]  ;;  %v1919_v48 = vld [vmem:[#allocation8 + $0x168] sm:$0xff]  ;;  %v2456_v3 = vld [vmem:[#allocation8 + $0x438] sm:$0xff] }
 0x2a9   : > { %v2489_v4 = vld [vmem:[#allocation8 + $0x540] sm:$0xff] }
 0x2aa   : > { %7308 = vmatpush3.bf16.msra.mxu1 %v7307_v16  ;;  %v1910_v16 = vld [vmem:[#allocation8 + $0x120] sm:$0xff] }
 0x2ab   : > { %7310 = vmatprep.subr.bf16.mxu1 %v7309_v22  ;;  %v7325_v22 = vpack.c.bf16 %v1899_v9, %v1898_v8  ;;  %v1936_v8 = vld [vmem:[#allocation8 + $0x1f0] sm:$0xff]  ;;  %v1937_v9 = vld [vmem:[#allocation8 + $0x1f8] sm:$0xff] }
 0x350   : > { %v1701_v28 = vpop.f32.mrb[8].mxu1 }
 0x351   : > { %v9191_v14 = vmax.f32 %v1701_v28, 0.0  ;;  %v1703_v2 = vpop.f32.mrb[9].mxu1  ;;  %v1883_v28 = vld [vmem:[#allocation8 + $0x48] sm:$0xff] }
 0x352   : > { %v9193_v30 = vmax.f32 %v1703_v2, 0.0  ;;  %v1928_v2 = vld [vmem:[#allocation8 + $0x1b0] sm:$0xff] }
 0x353   : > { %v2010_v29 = vrot.slane %v9191_v14, 1 }
 0x354   : > { %v9196_v32 = vpop.f32.mrb[10].mxu1  ;;  %v2011_v21 = vrot.slane %v9193_v30, 1 }
 0x355   : > { %v9199_v36 = vpop.f32.mrb[11].mxu1 }
 0x356   : > { %2089 = vmatprep.mubr.f32.mxu0 %v2011_v21  ;;  %v7351_v21 = vpack.c.bf16 %v1911_v18, %v1910_v16  ;;  %v1938_v16 = vld [vmem:[#allocation8 + $0x200] sm:$0x7f]  ;;  %v7369_v18 = vpack.c.bf16 %v1937_v9, %v1936_v8  ;;  %v2508_v8 = vld [vmem:[#allocation8 + $0x5d8] sm:$0xff] }
 0x357   : > { %2090 = vmatmul.mubr.f32.vlgmr.msra.gmra.mrb[20].mxu0 %v2010_v29  ;;  %v1901_v29 = vld [vmem:[#allocation8 + $0xd8] sm:$0xff] }
 0x358   : > { %v1778_v20 = vpop.f32.mrb[12].mxu1  ;;  %7026 = vmatpush3.msk.msra.mxu0 %vm434_vm3, %v2004_v34  ;;  %7027 = vmatprep.mubr.msk.f32.mxu0 %vm8565_vm10, %v8562_v0  ;;  %v7327_v34 = vpack.c.bf16 %v1883_v28, %v1882_v19  ;;  %v7329_v57 = vpack.c.bf16 %v1901_v29, %v1900_v51  ;;  %v1920_v19 = vld [vmem:[#allocation8 + $0x170] sm:$0xff]  ;;  %v2468_v29 = vld [vmem:[#allocation8 + $0x498] sm:$0xff] }
 0x359   : > { %v9204_v31 = vmax.f32 %v1778_v20, 0.0  ;;  %v1780_v15 = vpop.f32.mrb[13].mxu1  ;;  %7342 = vmatprep.subr.bf16.mxu0 %v7341_v24  ;;  %v7353_v24 = vpack.c.bf16 %v1929_v61, %v1928_v2  ;;  %v1912_v20 = vld [vmem:[#allocation8 + $0x130] sm:$0xff]  ;;  %v2484_v61 = vld [vmem:[#allocation8 + $0x518] sm:$0xff] }
 0x35a   : > { %v9206_v7 = vmax.f32 %v1780_v15, 0.0  ;;  %v1913_v15 = vld [vmem:[#allocation8 + $0x138] sm:$0xff]  ;;  %v2483_v2 = vld [vmem:[#allocation8 + $0x510] sm:$0xff] }
 0x35b   : > { %v2012_v42 = vrot.slane %v9204_v31, 1  ;;  %v2467_v51 = vld [vmem:[#allocation8 + $0x490] sm:$0xff] }
 0x35c   : > { %v9208_v40 = vpop.f32.mrb[14].mxu1  ;;  %v2013_v38 = vrot.slane %v9206_v7, 1  ;;  %v7373_v10 = vpack.c.bf16 %v2468_v29, %v2467_v51  ;;  %v2510_v51 = vld [vmem:[#allocation8 + $0x5e8] sm:$0xff] }
 0x35d   : > { %v9211_v39 = vpop.f32.mrb[15].mxu1 }
 0x35e   : > { %2159 = vmatprep.mubr.f32.mxu1 %v2013_v38  ;;  %v1931_v38 = vld [vmem:[#allocation8 + $0x1c8] sm:$0xff] }
 0x35f   : > { %2160 = vmatmul.mubr.f32.vlgmr.msra.gmra.mrb[18].mxu1 %v2012_v42  ;;  %v1903_v42 = vld [vmem:[#allocation8 + $0xe8] sm:$0xff]  ;;  %v7357_v35 = vpack.c.bf16 %v1931_v38, %v1930_v37 }
 0x360   : > { %7312 = vmatpush3.bf16.msra.mxu1 %v7311_v41  ;;  %v9214_v60 = vpop.f32.mrb[16].mxu1  ;;  %2304 = vmatprep.mubr.f32.mxu1 %v9193_v30  ;;  %v1902_v41 = vld [vmem:[#allocation8 + $0xe0] sm:$0xff]  ;;  %v2486_v38 = vld [vmem:[#allocation8 + $0x528] sm:$0xff] }
 0x361   : > { %v1855_v53 = vpop.f32.mrb[17].mxu1  ;;  %7314 = vmatprep.subr.bf16.mxu1 %v7313_v52  ;;  %v7355_v52 = vpack.c.bf16 %v1913_v15, %v1912_v20  ;;  %v7333_v25 = vpack.c.bf16 %v1903_v42, %v1902_v41  ;;  %v7407_v20 = vpack.c.bf16 %v2484_v61, %v2483_v2  ;;  %v2451_v15 = vld [vmem:[#allocation8 + $0x410] sm:$0xff]  ;;  %v2469_v41 = vld [vmem:[#allocation8 + $0x4a0] sm:$0xff]  ;;  %v2470_v42 = vld [vmem:[#allocation8 + $0x4a8] sm:$0xff] }
 0x362   : > { %v9217_v50 = vmax.f32 %v1855_v53, 0.0  ;;  %v1933_v53 = vld [vmem:[#allocation8 + $0x1d8] sm:$0xff]  ;;  %v7375_v46 = vpack.c.bf16 %v2452_v23, %v2451_v15  ;;  %v2509_v61 = vld [vmem:[#allocation8 + $0x5e0] sm:$0xff] }
 0x363   : > { %v7361_v54 = vpack.c.bf16 %v1933_v53, %v1932_v33  ;;  %v2487_v33 = vld [vmem:[#allocation8 + $0x530] sm:$0xff]  ;;  %v2517_v53 = vrot.slane %v9193_v30, 2  ;;  %v2476_v2 = vld [vmem:[#allocation8 + $0x4d8] sm:$0xff]  ;;  %v2493_v15 = vld [vmem:[#allocation8 + $0x560] sm:$0xff]  ;;  %v7425_v23 = vpack.c.bf16 %v2510_v51, %v2509_v61 }
 0x364   : > { %7316 = vmatpush3.bf16.msra.mxu1 %v7315_v47  ;;  %v2014_v59 = vrot.slane %v9217_v50, 1  ;;  %v1886_v47 = vld [vmem:[#allocation8 + $0x60] sm:$0xff]  ;;  %v2745_v61 = vld [vmem:[#allocation8 + $0x630] sm:$0xff]  ;;  %v2790_v51 = vld [vmem:[#allocation8 + $0x798] sm:$0xff] }
 0x365   : > { %7318 = vmatprep.subr.bf16.mxu1 %v7317_v27  ;;  %v1904_v27 = vld [vmem:[#allocation8 + $0xf0] sm:$0xff]  ;;  %v7335_v58 = vpack.c.bf16 %v1887_v17, %v1886_v47  ;;  %v7377_v47 = vpack.c.bf16 %v2470_v42, %v2469_v41  ;;  %v2454_v17 = vld [vmem:[#allocation8 + $0x428] sm:$0xff]  ;;  %v2512_v41 = vld [vmem:[#allocation8 + $0x5f8] sm:$0xff] }
 0x366   : > { %7028 = vmatmul.mubr.msk.f32.vlgmr.msra.gmra.mrb[22].mxu0 %vm2019_vm11, %v2014_v59  ;;  %v1888_v59 = vld [vmem:[#allocation8 + $0x70] sm:$0xff] }
 0x367   : > { %7344 = vmatpush3.bf16.msra.mxu0 %v7343_v56  ;;  %2374 = vmatprep.mubr.f32.mxu0 %v9206_v7  ;;  %v1917_v56 = vld [vmem:[#allocation8 + $0x158] sm:$0xff] }
 0x368   : > { %7320 = vmatpush3.bf16.msra.mxu1 %v7319_v62  ;;  %7346 = vmatprep.subr.bf16.mxu0 %v7345_v63  ;;  %v7337_v62 = vpack.c.bf16 %v1905_v26, %v1904_v27  ;;  %v1889_v63 = vld [vmem:[#allocation8 + $0x78] sm:$0xff]  ;;  %v7363_v5 = vpack.c.bf16 %v1917_v56, %v1916_v55  ;;  %v2506_v55 = vld [vmem:[#allocation8 + $0x5c8] sm:$0xff] }
 0x369   : > { %7322 = vmatprep.subr.bf16.mxu1 %v7321_v6  ;;  %v7339_v6 = vpack.c.bf16 %v1889_v63, %v1888_v59  ;;  %v2488_v26 = vld [vmem:[#allocation8 + $0x538] sm:$0xff]  ;;  %v2455_v63 = vld [vmem:[#allocation8 + $0x430] sm:$0xff] }
 0x36a   : > { %v7415_v59 = vpack.c.bf16 %v2488_v26, %v2487_v33  ;;  %v7383_v9 = vpack.c.bf16 %v2456_v3, %v2455_v63  ;;  %v2480_v33 = vld [vmem:[#allocation8 + $0x4f8] sm:$0xff]  ;;  %v2481_v63 = vld [vmem:[#allocation8 + $0x500] sm:$0xff]  ;;  %v2482_v3 = vld [vmem:[#allocation8 + $0x508] sm:$0xff] }
 0x36b   : > { %7348 = vmatpush3.bf16.msra.mxu0 %v7347_v11  ;;  %v2499_v11 = vld [vmem:[#allocation8 + $0x590] sm:$0xff] }
 0x36c   : > { %7324 = vmatpush3.bf16.msra.mxu1 %v7323_v12  ;;  %7350 = vmatprep.subr.bf16.mxu0 %v7349_v13  ;;  %v2500_v12 = vld [vmem:[#allocation8 + $0x598] sm:$0xff]  ;;  %v7367_v13 = vpack.c.bf16 %v1919_v48, %v1918_v49  ;;  %v2474_v49 = vld [vmem:[#allocation8 + $0x4c8] sm:$0xff]  ;;  %v2507_v48 = vld [vmem:[#allocation8 + $0x5d0] sm:$0xff] }
 0x36d   : > { %7326 = vmatprep.subr.bf16.mxu1 %v7325_v22  ;;  %v1921_v22 = vld [vmem:[#allocation8 + $0x178] sm:$0xff]  ;;  %v7405_v28 = vpack.c.bf16 %v2500_v12, %v2499_v11 }
 0x36f   : > { %7352 = vmatpush3.bf16.msra.mxu0 %v7351_v21  ;;  %v2501_v21 = vld [vmem:[#allocation8 + $0x5a0] sm:$0xff] }
 0x370   : > { %7328 = vmatpush3.bf16.msra.mxu1 %v7327_v34  ;;  %7354 = vmatprep.subr.bf16.mxu0 %v7353_v24  ;;  %v2502_v34 = vld [vmem:[#allocation8 + $0x5a8] sm:$0xff]  ;;  %v7371_v24 = vpack.c.bf16 %v1921_v22, %v1920_v19  ;;  %v7421_v19 = vpack.c.bf16 %v2508_v8, %v2507_v48  ;;  %v2492_v22 = vld [vmem:[#allocation8 + $0x558] sm:$0xff]  ;;  %v2465_v48 = vld [vmem:[#allocation8 + $0x480] sm:$0xff] }
 0x371   : > { %7330 = vmatprep.subr.bf16.mxu1 %v7329_v57  ;;  %v2485_v57 = vld [vmem:[#allocation8 + $0x520] sm:$0xff]  ;;  %v7409_v37 = vpack.c.bf16 %v2502_v34, %v2501_v21  ;;  %v2466_v8 = vld [vmem:[#allocation8 + $0x488] sm:$0xff] }
 0x372   : > { %v7411_v43 = vpack.c.bf16 %v2486_v38, %v2485_v57  ;;  %v2494_v57 = vld [vmem:[#allocation8 + $0x568] sm:$0xff]  ;;  %v2511_v38 = vld [vmem:[#allocation8 + $0x5f0] sm:$0xff] }
 0x373   : > { %7356 = vmatpush3.bf16.msra.mxu0 %v7355_v52  ;;  %v2519_v52 = vrot.slane %v9206_v7, 2 }
 0x374   : > { %7332 = vmatpush3.bf16.msra.mxu1 %v7331_v45  ;;  %7358 = vmatprep.subr.bf16.mxu0 %v7357_v35  ;;  %v2503_v45 = vld [vmem:[#allocation8 + $0x5b0] sm:$0xff]  ;;  %v2504_v35 = vld [vmem:[#allocation8 + $0x5b8] sm:$0xff] }
 0x375   : > { %7334 = vmatprep.subr.bf16.mxu1 %v7333_v25  ;;  %v2453_v25 = vld [vmem:[#allocation8 + $0x420] sm:$0xff]  ;;  %v7413_v27 = vpack.c.bf16 %v2504_v35, %v2503_v45 }
 0x376   : > { %v7379_v56 = vpack.c.bf16 %v2454_v17, %v2453_v25  ;;  %v2461_v35 = vld [vmem:[#allocation8 + $0x460] sm:$0xff]  ;;  %v2496_v25 = vld [vmem:[#allocation8 + $0x578] sm:$0xff]  ;;  %v2479_v17 = vld [vmem:[#allocation8 + $0x4f0] sm:$0xff] }
 0x377   : > { %7360 = vmatpush3.bf16.msra.mxu0 %v7359_v1  ;;  %v2471_v1 = vld [vmem:[#allocation8 + $0x4b0] sm:$0xff] }
 0x378   : > { %7336 = vmatpush3.bf16.msra.mxu1 %v7335_v58  ;;  %7362 = vmatprep.subr.bf16.mxu0 %v7361_v54  ;;  %v2472_v58 = vld [vmem:[#allocation8 + $0x4b8] sm:$0xff]  ;;  %v2505_v54 = vld [vmem:[#allocation8 + $0x5c0] sm:$0xff] }
 0x379   : > { %7338 = vmatprep.subr.bf16.mxu1 %v7337_v62  ;;  %v7381_v62 = vpack.c.bf16 %v2472_v58, %v2471_v1  ;;  %v7397_v58 = vpack.c.bf16 %v2480_v33, %v2479_v17  ;;  %v2776_v33 = vld [vmem:[#allocation8 + $0x728] sm:$0xff] }
 0x37b   : > { %7364 = vmatpush3.bf16.msra.mxu0 %v7363_v5  ;;  %v7417_v5 = vpack.c.bf16 %v2506_v55, %v2505_v54  ;;  %v2463_v54 = vld [vmem:[#allocation8 + $0x470] sm:$0xff]  ;;  %v2464_v55 = vld [vmem:[#allocation8 + $0x478] sm:$0xff] }
 0x37c   : > { %7340 = vmatpush3.bf16.msra.mxu1 %v7339_v6  ;;  %7366 = vmatprep.subr.bf16.mxu0 %v7365_v44  ;;  %v2490_v6 = vld [vmem:[#allocation8 + $0x548] sm:$0xff]  ;;  %v2473_v44 = vld [vmem:[#allocation8 + $0x4c0] sm:$0xff] }
 0x37d   : > { %7030 = vmatprep.subr.mxu1 %v8562_v0  ;;  %v7419_v11 = vpack.c.bf16 %v2490_v6, %v2489_v4  ;;  %v7385_v12 = vpack.c.bf16 %v2474_v49, %v2473_v44  ;;  %v2758_v4 = vld [vmem:[#allocation8 + $0x698] sm:$0xff]  ;;  %v7399_v6 = vpack.c.bf16 %v2464_v55, %v2463_v54  ;;  %v7401_v49 = vpack.c.bf16 %v2482_v3, %v2481_v63  ;;  %v2795_v55 = vld [vmem:[#allocation8 + $0x7c0] sm:$0xff] }
 0x37e   : > { %v2794_v54 = vld [vmem:[#allocation8 + $0x7b8] sm:$0xff] }
 0x37f   : > { %2305 = vmatmul.mubr.f32.vlgmr.msra.gmra.mrb[20].mxu1 %v9191_v14  ;;  %7368 = vmatpush3.bf16.msra.mxu0 %v7367_v13  ;;  %v2457_v13 = vld [vmem:[#allocation8 + $0x440] sm:$0xff]  ;;  %v7477_v3 = vpack.c.bf16 %v2795_v55, %v2794_v54  ;;  %v2786_v54 = vld [vmem:[#allocation8 + $0x778] sm:$0xff] }
 0x380   : > { %7031 = vmatpush3.msk.msra.mxu1 %vm434_vm3, %v1938_v16  ;;  %7370 = vmatprep.subr.bf16.mxu0 %v7369_v18  ;;  %v2458_v16 = vld [vmem:[#allocation8 + $0x448] sm:$0xff]  ;;  %v2491_v18 = vld [vmem:[#allocation8 + $0x550] sm:$0xff]  ;;  %v2787_v55 = vld [vmem:[#allocation8 + $0x780] sm:$0xff] }
 0x381   : > { %7032 = vmatprep.mubr.msk.f32.mxu1 %vm8565_vm10, %v8562_v0  ;;  %7406 = vmatprep.subr.bf16.mxu1 %v7405_v28  ;;  %v2475_v28 = vld [vmem:[#allocation8 + $0x4d0] sm:$0xff]  ;;  %v7387_v29 = vpack.c.bf16 %v2458_v16, %v2457_v13  ;;  %v7423_v21 = vpack.c.bf16 %v2492_v22, %v2491_v18  ;;  %v2760_v13 = vld [vmem:[#allocation8 + $0x6a8] sm:$0xff]  ;;  %v7403_v18 = vpack.c.bf16 %v2466_v8, %v2465_v48 }
 0x382   : > { %v7389_v34 = vpack.c.bf16 %v2476_v2, %v2475_v28  ;;  %v2761_v16 = vld [vmem:[#allocation8 + $0x6b0] sm:$0xff]  ;;  %v2744_v22 = vld [vmem:[#allocation8 + $0x628] sm:$0xff]  ;;  %v2518_v28 = vrot.slane %v9204_v31, 2 }
 0x383   : > { %7372 = vmatpush3.bf16.msra.mxu0 %v7371_v24  ;;  %7033 = vmatmul.mubr.msk.f32.vlgmr.msra.gmra.mrb[22].mxu1 %vm2019_vm11, %v9217_v50  ;;  %v2459_v24 = vld [vmem:[#allocation8 + $0x450] sm:$0xff]  ;;  %v7441_v2 = vpack.c.bf16 %v2761_v16, %v2760_v13  ;;  %v2796_v48 = vld [vmem:[#allocation8 + $0x7c8] sm:$0xff] }
 0x384   : > { %7408 = vmatpush3.bf16.msra.mxu1 %v7407_v20  ;;  %2664 = vmatprep.mubr.f32.mxu1 %v2519_v52  ;;  %v2460_v20 = vld [vmem:[#allocation8 + $0x458] sm:$0xff]  ;;  %v7427_v52 = vpack.c.bf16 %v2494_v57, %v2493_v15  ;;  %v2516_v15 = vrot.slane %v9191_v14, 2  ;;  %v2797_v8 = vld [vmem:[#allocation8 + $0x7d0] sm:$0xff] }
 0x385   : > { %7374 = vmatprep.subr.bf16.mxu0 %v7373_v10  ;;  %7410 = vmatprep.subr.bf16.mxu1 %v7409_v37  ;;  %v2477_v10 = vld [vmem:[#allocation8 + $0x4e0] sm:$0xff]  ;;  %v2478_v37 = vld [vmem:[#allocation8 + $0x4e8] sm:$0xff]  ;;  %v7391_v42 = vpack.c.bf16 %v2460_v20, %v2459_v24  ;;  %v2515_v20 = vld [vmem:[#allocation8 + $0x610] sm:$0x7f]  ;;  %v7481_v16 = vpack.c.bf16 %v2797_v8, %v2796_v48 }
 0x386   : > { %2375 = vmatmul.mubr.f32.vlgmr.msra.gmra.mrb[24].mxu0 %v9204_v31  ;;  %v7393_v45 = vpack.c.bf16 %v2478_v37, %v2477_v10  ;;  %v2763_v24 = vld [vmem:[#allocation8 + $0x6c0] sm:$0xff]  ;;  %v2774_v10 = vld [vmem:[#allocation8 + $0x718] sm:$0xff] }
 0x387   : > { %7376 = vmatpush3.bf16.msra.mxu0 %v7375_v46  ;;  %2594 = vmatprep.mubr.f32.mxu0 %v2517_v53  ;;  %v2462_v46 = vld [vmem:[#allocation8 + $0x468] sm:$0xff]  ;;  %v2513_v53 = vld [vmem:[#allocation8 + $0x600] sm:$0xff] }
 0x388   : > { %7412 = vmatpush3.bf16.msra.mxu1 %v7411_v43  ;;  %7378 = vmatprep.subr.bf16.mxu0 %v7377_v47  ;;  %v2495_v43 = vld [vmem:[#allocation8 + $0x570] sm:$0xff]  ;;  %v7429_v47 = vpack.c.bf16 %v2512_v41, %v2511_v38  ;;  %v7395_v26 = vpack.c.bf16 %v2462_v46, %v2461_v35  ;;  %v2775_v37 = vld [vmem:[#allocation8 + $0x720] sm:$0xff]  ;;  %v2746_v38 = vld [vmem:[#allocation8 + $0x638] sm:$0xff] }
 0x389   : > { %7414 = vmatprep.subr.bf16.mxu1 %v7413_v27  ;;  %v2514_v27 = vld [vmem:[#allocation8 + $0x608] sm:$0xff]  ;;  %v7431_v1 = vpack.c.bf16 %v2496_v25, %v2495_v43  ;;  %v2765_v46 = vld [vmem:[#allocation8 + $0x6d0] sm:$0xff]  ;;  %v7471_v43 = vpack.c.bf16 %v2775_v37, %v2774_v10  ;;  %v2755_v37 = vld [vmem:[#allocation8 + $0x680] sm:$0xff] }
 0x38a   : > { %v2764_v35 = vld [vmem:[#allocation8 + $0x6c8] sm:$0xff]  ;;  %v3065_v8 = vld [vmem:[#allocation8 + $0x920] sm:$0xff] }
 0x38b   : > { %7380 = vmatpush3.bf16.msra.mxu0 %v7379_v56  ;;  %v2497_v56 = vld [vmem:[#allocation8 + $0x580] sm:$0xff] }
 0x38c   : > { %7416 = vmatpush3.bf16.msra.mxu1 %v7415_v59  ;;  %7382 = vmatprep.subr.bf16.mxu0 %v7381_v62  ;;  %v7433_v59 = vpack.c.bf16 %v2514_v27, %v2513_v53  ;;  %v2498_v62 = vld [vmem:[#allocation8 + $0x588] sm:$0xff]  ;;  %v2777_v53 = vld [vmem:[#allocation8 + $0x730] sm:$0xff] }
 0x38d   : > { %7418 = vmatprep.subr.bf16.mxu1 %v7417_v5  ;;  %v2759_v5 = vld [vmem:[#allocation8 + $0x6a0] sm:$0xff]  ;;  %v7435_v44 = vpack.c.bf16 %v2498_v62, %v2497_v56  ;;  %v2748_v27 = vld [vmem:[#allocation8 + $0x648] sm:$0xff]  ;;  %v2766_v56 = vld [vmem:[#allocation8 + $0x6d8] sm:$0xff]  ;;  %v7475_v62 = vpack.c.bf16 %v2777_v53, %v2776_v33 }
 0x38e   : > { %v2757_v33 = vld [vmem:[#allocation8 + $0x690] sm:$0xff]  ;;  %v2802_v53 = vld [vmem:[#allocation8 + $0x7f8] sm:$0xff] }
 0x38f   : > { %7384 = vmatpush3.bf16.msra.mxu0 %v7383_v9  ;;  %v7437_v9 = vpack.c.bf16 %v2759_v5, %v2758_v4  ;;  %v2778_v4 = vld [vmem:[#allocation8 + $0x738] sm:$0xff]  ;;  %v2779_v5 = vld [vmem:[#allocation8 + $0x740] sm:$0xff] }
 0x390   : > { %7420 = vmatpush3.bf16.msra.mxu1 %v7419_v11  ;;  %7386 = vmatprep.subr.bf16.mxu0 %v7385_v12  ;;  %v2742_v11 = vld [vmem:[#allocation8 + $0x618] sm:$0xff]  ;;  %v2743_v12 = vld [vmem:[#allocation8 + $0x620] sm:$0xff] }
 0x391   : > { %7422 = vmatprep.subr.bf16.mxu1 %v7421_v19  ;;  %v7439_v19 = vpack.c.bf16 %v2743_v12, %v2742_v11  ;;  %v2769_v11 = vld [vmem:[#allocation8 + $0x6f0] sm:$0xff]  ;;  %v7479_v12 = vpack.c.bf16 %v2779_v5, %v2778_v4  ;;  %v2806_v4 = vld [vmem:[#allocation8 + $0x818] sm:$0x7f] }
 0x393   : > { %7388 = vmatpush3.bf16.msra.mxu0 %v7387_v29  ;;  %v2791_v29 = vld [vmem:[#allocation8 + $0x7a0] sm:$0xff] }
 0x394   : > { %7424 = vmatpush3.bf16.msra.mxu1 %v7423_v21  ;;  %7390 = vmatprep.subr.bf16.mxu0 %v7389_v34  ;;  %v2808_v21 = vrot.slane %v9193_v30, 3  ;;  %v2762_v34 = vld [vmem:[#allocation8 + $0x6b8] sm:$0xff]  ;;  %v7469_v57 = vpack.c.bf16 %v2791_v29, %v2790_v51  ;;  %v2799_v51 = vld [vmem:[#allocation8 + $0x7e0] sm:$0xff] }
 0x395   : > { %7426 = vmatprep.subr.bf16.mxu1 %v7425_v23  ;;  %v7443_v23 = vpack.c.bf16 %v2745_v61, %v2744_v22  ;;  %v7445_v41 = vpack.c.bf16 %v2763_v24, %v2762_v34  ;;  %v2752_v22 = vld [vmem:[#allocation8 + $0x668] sm:$0xff]  ;;  %v2798_v61 = vld [vmem:[#allocation8 + $0x7d8] sm:$0xff] }
 0x396   : > { %v2770_v29 = vld [vmem:[#allocation8 + $0x6f8] sm:$0xff] }
 0x397   : > { %7392 = vmatpush3.bf16.msra.mxu0 %v7391_v42  ;;  %v2747_v42 = vld [vmem:[#allocation8 + $0x640] sm:$0xff] }
 0x398   : > { %7428 = vmatpush3.bf16.msra.mxu1 %v7427_v52  ;;  %7394 = vmatprep.subr.bf16.mxu0 %v7393_v45  ;;  %v2792_v52 = vld [vmem:[#allocation8 + $0x7a8] sm:$0xff]  ;;  %v2793_v45 = vld [vmem:[#allocation8 + $0x7b0] sm:$0xff]  ;;  %v7447_v25 = vpack.c.bf16 %v2747_v42, %v2746_v38 }
 0x399   : > { %7430 = vmatprep.subr.bf16.mxu1 %v7429_v47  ;;  %v2520_v47 = vrot.slane %v9217_v50, 2  ;;  %v7473_v17 = vpack.c.bf16 %v2793_v45, %v2792_v52  ;;  %v2800_v38 = vld [vmem:[#allocation8 + $0x7e8] sm:$0xff]  ;;  %v2773_v52 = vld [vmem:[#allocation8 + $0x710] sm:$0xff] }
 0x39a   : > { %v2772_v42 = vld [vmem:[#allocation8 + $0x708] sm:$0xff] }
 0x39b   : > { %7396 = vmatpush3.bf16.msra.mxu0 %v7395_v26  ;;  %v2810_v26 = vrot.slane %v9206_v7, 3 }
 0x39c   : > { %7432 = vmatpush3.bf16.msra.mxu1 %v7431_v1  ;;  %7398 = vmatprep.subr.bf16.mxu0 %v7397_v58  ;;  %v7449_v1 = vpack.c.bf16 %v2765_v46, %v2764_v35  ;;  %v2749_v58 = vld [vmem:[#allocation8 + $0x650] sm:$0xff] }
 0x39d   : > { %7434 = vmatprep.subr.bf16.mxu1 %v7433_v59  ;;  %v2767_v59 = vld [vmem:[#allocation8 + $0x6e0] sm:$0xff]  ;;  %v7451_v63 = vpack.c.bf16 %v2749_v58, %v2748_v27 }
 0x39e   : > { %v2803_v27 = vld [vmem:[#allocation8 + $0x800] sm:$0xff] }
 0x39f   : > { %7400 = vmatpush3.bf16.msra.mxu0 %v7399_v6  ;;  %v2750_v6 = vld [vmem:[#allocation8 + $0x658] sm:$0xff]  ;;  %v7493_v58 = vpack.c.bf16 %v2803_v27, %v2802_v53 }
 0x3a0   : > { %7436 = vmatpush3.bf16.msra.mxu1 %v7435_v44  ;;  %7402 = vmatprep.subr.bf16.mxu0 %v7401_v49  ;;  %v7453_v44 = vpack.c.bf16 %v2767_v59, %v2766_v56  ;;  %v2751_v49 = vld [vmem:[#allocation8 + $0x660] sm:$0xff]  ;;  %v2804_v56 = vld [vmem:[#allocation8 + $0x808] sm:$0xff]  ;;  %v2805_v59 = vld [vmem:[#allocation8 + $0x810] sm:$0xff] }
 0x3a1   : > { %7438 = vmatprep.subr.bf16.mxu1 %v7437_v9  ;;  %v2768_v9 = vld [vmem:[#allocation8 + $0x6e8] sm:$0xff]  ;;  %v7455_v13 = vpack.c.bf16 %v2751_v49, %v2750_v6  ;;  %v7497_v5 = vpack.c.bf16 %v2805_v59, %v2804_v56  ;;  %v2807_v49 = vrot.slane %v9191_v14, 3  ;;  %v3055_v56 = vld [vmem:[#allocation8 + $0x8d0] sm:$0xff]  ;;  %v3056_v59 = vld [vmem:[#allocation8 + $0x8d8] sm:$0xff] }
 0x3a2   : > { %v2788_v6 = vld [vmem:[#allocation8 + $0x788] sm:$0xff] }
 0x3a3   : > { %2665 = vmatmul.mubr.f32.vlgmr.msra.gmra.mrb[24].mxu1 %v2518_v28  ;;  %7404 = vmatpush3.bf16.msra.mxu0 %v7403_v18  ;;  %v2780_v18 = vld [vmem:[#allocation8 + $0x748] sm:$0xff]  ;;  %v7457_v28 = vpack.c.bf16 %v2769_v11, %v2768_v9  ;;  %v3049_v11 = vld [vmem:[#allocation8 + $0x8a0] sm:$0xff] }
 0x3a4   : > { %7440 = vmatpush3.bf16.msra.mxu1 %v7439_v19  ;;  %2885 = vmatprep.mubr.f32.mxu1 %v2808_v21  ;;  %v2781_v19 = vld [vmem:[#allocation8 + $0x750] sm:$0xff]  ;;  %v2771_v21 = vld [vmem:[#allocation8 + $0x700] sm:$0xff]  ;;  %v3066_v9 = vld [vmem:[#allocation8 + $0x928] sm:$0xff] }
 0x3a5   : > { %7442 = vmatprep.subr.bf16.mxu1 %v7441_v2  ;;  %7035 = vmatprep.subr.mxu0 %v8562_v0  ;;  %v2753_v2 = vld [vmem:[#allocation8 + $0x670] sm:$0xff]  ;;  %v7483_v34 = vpack.c.bf16 %v2781_v19, %v2780_v18  ;;  %v7461_v10 = vpack.c.bf16 %v2771_v21, %v2770_v29  ;;  %v7535_v19 = vpack.c.bf16 %v3066_v9, %v3065_v8  ;;  %v3068_v21 = vld [vmem:[#allocation8 + $0x938] sm:$0xff]  ;;  %v3074_v8 = vld [vmem:[#allocation8 + $0x968] sm:$0xff] }
 0x3a6   : > { %2595 = vmatmul.mubr.f32.vlgmr.msra.gmra.mrb[26].mxu0 %v2516_v15  ;;  %v7459_v24 = vpack.c.bf16 %v2753_v2, %v2752_v22  ;;  %v2782_v15 = vld [vmem:[#allocation8 + $0x758] sm:$0xff]  ;;  %v3033_v22 = vld [vmem:[#allocation8 + $0x820] sm:$0xff]  ;;  %v3067_v2 = vld [vmem:[#allocation8 + $0x930] sm:$0xff] }
 0x3a7   : > { %7036 = vmatpush3.msk.msra.mxu0 %vm434_vm3, %v2515_v20  ;;  %7037 = vmatprep.mubr.msk.f32.mxu0 %vm8565_vm10, %v8562_v0  ;;  %v7485_v20 = vpack.c.bf16 %v2799_v51, %v2798_v61  ;;  %v2811_v61 = vrot.slane %v9217_v50, 3  ;;  %v3057_v9 = vld [vmem:[#allocation8 + $0x8e0] sm:$0xff] }
 0x3a8   : > { %7444 = vmatpush3.bf16.msra.mxu1 %v7443_v23  ;;  %7470 = vmatprep.subr.bf16.mxu0 %v7469_v57  ;;  %v2783_v23 = vld [vmem:[#allocation8 + $0x760] sm:$0xff]  ;;  %v2754_v57 = vld [vmem:[#allocation8 + $0x678] sm:$0xff] }
 0x3a9   : > { %7446 = vmatprep.subr.bf16.mxu1 %v7445_v41  ;;  %v2801_v41 = vld [vmem:[#allocation8 + $0x7f0] sm:$0xff]  ;;  %v7487_v45 = vpack.c.bf16 %v2783_v23, %v2782_v15  ;;  %v7463_v35 = vpack.c.bf16 %v2755_v37, %v2754_v57  ;;  %v3085_v15 = vld [vmem:[#allocation8 + $0x9c0] sm:$0xff]  ;;  %v3086_v23 = vld [vmem:[#allocation8 + $0x9c8] sm:$0xff]  ;;  %v7539_v37 = vpack.c.bf16 %v3068_v21, %v3067_v2 }
 0x3aa   : > { %7038 = vmatmul.mubr.msk.f32.vlgmr.msra.gmra.mrb[28].mxu0 %vm2019_vm11, %v2520_v47  ;;  %v7489_v46 = vpack.c.bf16 %v2801_v41, %v2800_v38  ;;  %v2785_v47 = vld [vmem:[#allocation8 + $0x770] sm:$0xff]  ;;  %v3060_v21 = vld [vmem:[#allocation8 + $0x8f8] sm:$0xff] }
 0x3ab   : > { %7472 = vmatpush3.bf16.msra.mxu0 %v7471_v43  ;;  %2955 = vmatprep.mubr.f32.mxu0 %v2810_v26  ;;  %v2784_v43 = vld [vmem:[#allocation8 + $0x768] sm:$0xff]  ;;  %v3035_v41 = vld [vmem:[#allocation8 + $0x830] sm:$0xff] }
 0x3ac   : > { %7448 = vmatpush3.bf16.msra.mxu1 %v7447_v25  ;;  %7474 = vmatprep.subr.bf16.mxu0 %v7473_v17  ;;  %v2756_v25 = vld [vmem:[#allocation8 + $0x688] sm:$0xff]  ;;  %v7465_v17 = vpack.c.bf16 %v2773_v52, %v2772_v42  ;;  %v7491_v26 = vpack.c.bf16 %v2785_v47, %v2784_v43  ;;  %v3036_v42 = vld [vmem:[#allocation8 + $0x838] sm:$0xff]  ;;  %v3069_v52 = vld [vmem:[#allocation8 + $0x940] sm:$0xff] }
 0x3ad   : > { %7450 = vmatprep.subr.bf16.mxu1 %v7449_v1  ;;  %v7467_v1 = vpack.c.bf16 %v2757_v33, %v2756_v25  ;;  %v3053_v43 = vld [vmem:[#allocation8 + $0x8c0] sm:$0xff]  ;;  %v3054_v47 = vld [vmem:[#allocation8 + $0x8c8] sm:$0xff]  ;;  %v3087_v25 = vld [vmem:[#allocation8 + $0x9d0] sm:$0xff]  ;;  %v7507_v33 = vpack.c.bf16 %v3036_v42, %v3035_v41 }
 0x3ae   : > { %v7509_v27 = vpack.c.bf16 %v3054_v47, %v3053_v43  ;;  %v3075_v2 = vld [vmem:[#allocation8 + $0x970] sm:$0xff]  ;;  %v3078_v41 = vld [vmem:[#allocation8 + $0x988] sm:$0xff]  ;;  %v3061_v42 = vld [vmem:[#allocation8 + $0x900] sm:$0xff] }
 0x3af   : > { %7476 = vmatpush3.bf16.msra.mxu0 %v7475_v62  ;;  %v3081_v62 = vld [vmem:[#allocation8 + $0x9a0] sm:$0xff] }
 0x3b0   : > { %7452 = vmatpush3.bf16.msra.mxu1 %v7451_v63  ;;  %7478 = vmatprep.subr.bf16.mxu0 %v7477_v3  ;;  %v3082_v63 = vld [vmem:[#allocation8 + $0x9a8] sm:$0xff]  ;;  %v7495_v3 = vpack.c.bf16 %v2787_v55, %v2786_v54  ;;  %v3072_v55 = vld [vmem:[#allocation8 + $0x958] sm:$0xff] }
 0x3b1   : > { %7454 = vmatprep.subr.bf16.mxu1 %v7453_v44  ;;  %v2789_v44 = vld [vmem:[#allocation8 + $0x790] sm:$0xff]  ;;  %v7533_v48 = vpack.c.bf16 %v3082_v63, %v3081_v62  ;;  %v3089_v62 = vld [vmem:[#allocation8 + $0x9e0] sm:$0xff]  ;;  %v3090_v63 = vld [vmem:[#allocation8 + $0x9e8] sm:$0xff] }
 0x3b2   : > { %v7499_v18 = vpack.c.bf16 %v2789_v44, %v2788_v6  ;;  %v3039_v6 = vld [vmem:[#allocation8 + $0x850] sm:$0xff]  ;;  %v3040_v44 = vld [vmem:[#allocation8 + $0x858] sm:$0xff] }
 0x3b3   : > { %7480 = vmatpush3.bf16.msra.mxu0 %v7479_v12  ;;  %v3050_v12 = vld [vmem:[#allocation8 + $0x8a8] sm:$0xff] }
 0x3b4   : > { %7456 = vmatpush3.bf16.msra.mxu1 %v7455_v13  ;;  %7482 = vmatprep.subr.bf16.mxu0 %v7481_v16  ;;  %v3083_v13 = vld [vmem:[#allocation8 + $0x9b0] sm:$0xff]  ;;  %v3084_v16 = vld [vmem:[#allocation8 + $0x9b8] sm:$0xff]  ;;  %v7501_v51 = vpack.c.bf16 %v3050_v12, %v3049_v11  ;;  %v3058_v11 = vld [vmem:[#allocation8 + $0x8e8] sm:$0xff] }
 0x3b5   : > { %7458 = vmatprep.subr.bf16.mxu1 %v7457_v28  ;;  %v3034_v28 = vld [vmem:[#allocation8 + $0x828] sm:$0xff]  ;;  %v7537_v29 = vpack.c.bf16 %v3084_v16, %v3083_v13  ;;  %v3091_v12 = vld [vmem:[#allocation8 + $0x9f0] sm:$0xff]  ;;  %v3092_v13 = vld [vmem:[#allocation8 + $0x9f8] sm:$0xff]  ;;  %v7515_v16 = vpack.c.bf16 %v3040_v44, %v3039_v6 }
 0x3b6   : > { %v7503_v57 = vpack.c.bf16 %v3034_v28, %v3033_v22  ;;  %v3041_v22 = vld [vmem:[#allocation8 + $0x860] sm:$0xff]  ;;  %v3042_v28 = vld [vmem:[#allocation8 + $0x868] sm:$0xff]  ;;  %v3342_v6 = vld [vmem:[#allocation8 + $0xab8] sm:$0xff] }
 0x3b7   : > { %7484 = vmatpush3.bf16.msra.mxu0 %v7483_v34  ;;  %v3051_v34 = vld [vmem:[#allocation8 + $0x8b0] sm:$0xff]  ;;  %v3343_v44 = vld [vmem:[#allocation8 + $0xac0] sm:$0xff] }
 0x3b8   : > { %7460 = vmatpush3.bf16.msra.mxu1 %v7459_v24  ;;  %7486 = vmatprep.subr.bf16.mxu0 %v7485_v20  ;;  %v3052_v24 = vld [vmem:[#allocation8 + $0x8b8] sm:$0xff]  ;;  %v3101_v20 = vrot.slane %v9206_v7, 4 }
 0x3b9   : > { %7462 = vmatprep.subr.bf16.mxu1 %v7461_v10  ;;  %v2809_v10 = vrot.slane %v9204_v31, 3  ;;  %v7505_v38 = vpack.c.bf16 %v3052_v24, %v3051_v34  ;;  %v3093_v34 = vld [vmem:[#allocation8 + $0xa00] sm:$0xff]  ;;  %v3094_v24 = vld [vmem:[#allocation8 + $0xa08] sm:$0xff] }
 0x3bb   : > { %7488 = vmatpush3.bf16.msra.mxu0 %v7487_v45  ;;  %v3099_v45 = vrot.slane %v9193_v30, 4 }
 0x3bc   : > { %7464 = vmatpush3.bf16.msra.mxu1 %v7463_v35  ;;  %7490 = vmatprep.subr.bf16.mxu0 %v7489_v46  ;;  %v7541_v35 = vpack.c.bf16 %v3086_v23, %v3085_v15  ;;  %v3070_v46 = vld [vmem:[#allocation8 + $0x948] sm:$0xff] }
 0x3bd   : > { %7466 = vmatprep.subr.bf16.mxu1 %v7465_v17  ;;  %v3088_v17 = vld [vmem:[#allocation8 + $0x9d8] sm:$0xff]  ;;  %v7543_v53 = vpack.c.bf16 %v3070_v46, %v3069_v52  ;;  %v3062_v52 = vld [vmem:[#allocation8 + $0x908] sm:$0xff] }
 0x3be   : > { %v7545_v54 = vpack.c.bf16 %v3088_v17, %v3087_v25  ;;  %v7525_v47 = vpack.c.bf16 %v3062_v52, %v3061_v42  ;;  %v3045_v25 = vld [vmem:[#allocation8 + $0x880] sm:$0xff]  ;;  %v3046_v17 = vld [vmem:[#allocation8 + $0x888] sm:$0xff]  ;;  %v3358_v52 = vld [vmem:[#allocation8 + $0xb38] sm:$0xff] }
 0x3bf   : > { %7492 = vmatpush3.bf16.msra.mxu0 %v7491_v26  ;;  %v3037_v26 = vld [vmem:[#allocation8 + $0x840] sm:$0xff] }
 0x3c0   : > { %7468 = vmatpush3.bf16.msra.mxu1 %v7467_v1  ;;  %7494 = vmatprep.subr.bf16.mxu0 %v7493_v58  ;;  %v3038_v1 = vld [vmem:[#allocation8 + $0x848] sm:$0xff]  ;;  %v3071_v58 = vld [vmem:[#allocation8 + $0x950] sm:$0xff] }
 0x3c1   : > { %7040 = vmatprep.subr.mxu1 %v8562_v0 }
 0x3c3   : > { %2886 = vmatmul.mubr.f32.vlgmr.msra.gmra.mrb[26].mxu1 %v2807_v49  ;;  %7496 = vmatpush3.bf16.msra.mxu0 %v7495_v3  ;;  %v7511_v3 = vpack.c.bf16 %v3038_v1, %v3037_v26  ;;  %v3073_v49 = vld [vmem:[#allocation8 + $0x960] sm:$0xff]  ;;  %v3063_v26 = vld [vmem:[#allocation8 + $0x910] sm:$0xff]  ;;  %v3064_v1 = vld [vmem:[#allocation8 + $0x918] sm:$0xff] }
 0x3c4   : > { %7041 = vmatpush3.msk.msra.mxu1 %vm434_vm3, %v2806_v4  ;;  %7498 = vmatprep.subr.bf16.mxu0 %v7497_v5  ;;  %v7547_v4 = vpack.c.bf16 %v3072_v55, %v3071_v58  ;;  %v7513_v5 = vpack.c.bf16 %v3056_v59, %v3055_v56  ;;  %v3340_v58 = vld [vmem:[#allocation8 + $0xaa8] sm:$0xff]  ;;  %v7527_v55 = vpack.c.bf16 %v3046_v17, %v3045_v25  ;;  %v3377_v17 = vld [vmem:[#allocation8 + $0xbd0] sm:$0xff] }
 0x3c5   : > { %7042 = vmatprep.mubr.msk.f32.mxu1 %vm8565_vm10, %v8562_v0  ;;  %7534 = vmatprep.subr.bf16.mxu1 %v7533_v48  ;;  %v7549_v48 = vpack.c.bf16 %v3090_v63, %v3089_v62  ;;  %v7529_v59 = vpack.c.bf16 %v3064_v1, %v3063_v26  ;;  %v3047_v62 = vld [vmem:[#allocation8 + $0x890] sm:$0xff]  ;;  %v3048_v63 = vld [vmem:[#allocation8 + $0x898] sm:$0xff]  ;;  %v3376_v25 = vld [vmem:[#allocation8 + $0xbc8] sm:$0xff] }
 0x3c6   : > { %v7605_v1 = vpack.c.bf16 %v3377_v17, %v3376_v25  ;;  %v3368_v25 = vld [vmem:[#allocation8 + $0xb88] sm:$0xff]  ;;  %v3369_v17 = vld [vmem:[#allocation8 + $0xb90] sm:$0xff] }
 0x3c7   : > { %7500 = vmatpush3.bf16.msra.mxu0 %v7499_v18  ;;  %7043 = vmatmul.mubr.msk.f32.vlgmr.msra.gmra.mrb[28].mxu1 %vm2019_vm11, %v2811_v61  ;;  %v7551_v18 = vpack.c.bf16 %v3074_v8, %v3073_v49  ;;  %v7553_v61 = vpack.c.bf16 %v3092_v13, %v3091_v12  ;;  %v7531_v49 = vpack.c.bf16 %v3048_v63, %v3047_v62  ;;  %v3326_v8 = vld [vmem:[#allocation8 + $0xa38] sm:$0xff]  ;;  %v3327_v12 = vld [vmem:[#allocation8 + $0xa40] sm:$0xff]  ;;  %v3372_v13 = vld [vmem:[#allocation8 + $0xba8] sm:$0xff] }
 0x3c8   : > { %7536 = vmatpush3.bf16.msra.mxu1 %v7535_v19  ;;  %3246 = vmatprep.mubr.f32.mxu1 %v3101_v20  ;;  %v7517_v19 = vpack.c.bf16 %v3058_v11, %v3057_v9  ;;  %v7519_v20 = vpack.c.bf16 %v3042_v28, %v3041_v22  ;;  %v3100_v9 = vrot.slane %v9204_v31, 4  ;;  %v7569_v11 = vpack.c.bf16 %v3343_v44, %v3342_v6  ;;  %v3345_v22 = vld [vmem:[#allocation8 + $0xad0] sm:$0xff]  ;;  %v3097_v28 = vld [vmem:[#allocation8 + $0xa20] sm:$0x7f]  ;;  %v3378_v62 = vld [vmem:[#allocation8 + $0xbd8] sm:$0xff] }
 0x3c9   : > { %7502 = vmatprep.subr.bf16.mxu0 %v7501_v51  ;;  %7538 = vmatprep.subr.bf16.mxu1 %v7537_v29  ;;  %v3076_v51 = vld [vmem:[#allocation8 + $0x978] sm:$0xff]  ;;  %v3059_v29 = vld [vmem:[#allocation8 + $0x8f0] sm:$0xff]  ;;  %v3379_v63 = vld [vmem:[#allocation8 + $0xbe0] sm:$0xff] }
 0x3ca   : > { %2956 = vmatmul.mubr.f32.vlgmr.msra.gmra.mrb[30].mxu0 %v2809_v10  ;;  %v7555_v15 = vpack.c.bf16 %v3076_v51, %v3075_v2  ;;  %v7521_v23 = vpack.c.bf16 %v3060_v21, %v3059_v29  ;;  %v3044_v10 = vld [vmem:[#allocation8 + $0x878] sm:$0xff]  ;;  %v3098_v2 = vrot.slane %v9191_v14, 4  ;;  %v3356_v29 = vld [vmem:[#allocation8 + $0xb28] sm:$0xff]  ;;  %v3357_v21 = vld [vmem:[#allocation8 + $0xb30] sm:$0xff]  ;;  %v7609_v44 = vpack.c.bf16 %v3379_v63, %v3378_v62 }
 0x3cb   : > { %7504 = vmatpush3.bf16.msra.mxu0 %v7503_v57  ;;  %3176 = vmatprep.mubr.f32.mxu0 %v3099_v45  ;;  %v3043_v57 = vld [vmem:[#allocation8 + $0x870] sm:$0xff] }
 0x3cc   : > { %7540 = vmatpush3.bf16.msra.mxu1 %v7539_v37  ;;  %7506 = vmatprep.subr.bf16.mxu0 %v7505_v38  ;;  %v3077_v37 = vld [vmem:[#allocation8 + $0x980] sm:$0xff]  ;;  %v7557_v38 = vpack.c.bf16 %v3094_v24, %v3093_v34  ;;  %v3095_v45 = vld [vmem:[#allocation8 + $0xa10] sm:$0xff]  ;;  %v7523_v46 = vpack.c.bf16 %v3044_v10, %v3043_v57  ;;  %v3328_v34 = vld [vmem:[#allocation8 + $0xa48] sm:$0xff] }
 0x3cd   : > { %7542 = vmatprep.subr.bf16.mxu1 %v7541_v35  ;;  %v3096_v35 = vld [vmem:[#allocation8 + $0xa18] sm:$0xff]  ;;  %v7559_v43 = vpack.c.bf16 %v3078_v41, %v3077_v37  ;;  %v3347_v10 = vld [vmem:[#allocation8 + $0xae0] sm:$0xff]  ;;  %v7599_v37 = vpack.c.bf16 %v3357_v21, %v3356_v29  ;;  %v3337_v21 = vld [vmem:[#allocation8 + $0xa90] sm:$0xff] }
 0x3ce   : > { %v3346_v57 = vld [vmem:[#allocation8 + $0xad8] sm:$0xff]  ;;  %v3647_v63 = vld [vmem:[#allocation8 + $0xd30] sm:$0xff] }
 0x3cf   : > { %7508 = vmatpush3.bf16.msra.mxu0 %v7507_v33  ;;  %v3079_v33 = vld [vmem:[#allocation8 + $0x990] sm:$0xff] }
 0x3d0   : > { %7544 = vmatpush3.bf16.msra.mxu1 %v7543_v53  ;;  %7510 = vmatprep.subr.bf16.mxu0 %v7509_v27  ;;  %v7561_v53 = vpack.c.bf16 %v3096_v35, %v3095_v45  ;;  %v3080_v27 = vld [vmem:[#allocation8 + $0x998] sm:$0xff]  ;;  %v3359_v45 = vld [vmem:[#allocation8 + $0xb40] sm:$0xff] }
 0x3d1   : > { %7546 = vmatprep.subr.bf16.mxu1 %v7545_v54  ;;  %v3341_v54 = vld [vmem:[#allocation8 + $0xab0] sm:$0xff]  ;;  %v7563_v56 = vpack.c.bf16 %v3080_v27, %v3079_v33  ;;  %v3330_v35 = vld [vmem:[#allocation8 + $0xa58] sm:$0xff]  ;;  %v3348_v33 = vld [vmem:[#allocation8 + $0xae8] sm:$0xff]  ;;  %v7603_v27 = vpack.c.bf16 %v3359_v45, %v3358_v52 }
 0x3d2   : > { %v3339_v52 = vld [vmem:[#allocation8 + $0xaa0] sm:$0xff]  ;;  %v3384_v45 = vld [vmem:[#allocation8 + $0xc08] sm:$0xff] }
 0x3d3   : > { %7512 = vmatpush3.bf16.msra.mxu0 %v7511_v3  ;;  %v7565_v3 = vpack.c.bf16 %v3341_v54, %v3340_v58  ;;  %v3360_v58 = vld [vmem:[#allocation8 + $0xb48] sm:$0xff]  ;;  %v3361_v54 = vld [vmem:[#allocation8 + $0xb50] sm:$0xff] }
 0x3d4   : > { %7548 = vmatpush3.bf16.msra.mxu1 %v7547_v4  ;;  %7514 = vmatprep.subr.bf16.mxu0 %v7513_v5  ;;  %v3324_v4 = vld [vmem:[#allocation8 + $0xa28] sm:$0xff]  ;;  %v3325_v5 = vld [vmem:[#allocation8 + $0xa30] sm:$0xff] }
 0x3d5   : > { %7550 = vmatprep.subr.bf16.mxu1 %v7549_v48  ;;  %v7567_v48 = vpack.c.bf16 %v3325_v5, %v3324_v4  ;;  %v3351_v4 = vld [vmem:[#allocation8 + $0xb00] sm:$0xff]  ;;  %v7607_v5 = vpack.c.bf16 %v3361_v54, %v3360_v58  ;;  %v3388_v58 = vld [vmem:[#allocation8 + $0xc28] sm:$0x7f] }
 0x3d7   : > { %7516 = vmatpush3.bf16.msra.mxu0 %v7515_v16  ;;  %v3373_v16 = vld [vmem:[#allocation8 + $0xbb0] sm:$0xff] }
 0x3d8   : > { %7552 = vmatpush3.bf16.msra.mxu1 %v7551_v18  ;;  %7518 = vmatprep.subr.bf16.mxu0 %v7517_v19  ;;  %v3390_v18 = vrot.slane %v9193_v30, 5  ;;  %v3344_v19 = vld [vmem:[#allocation8 + $0xac8] sm:$0xff]  ;;  %v7597_v51 = vpack.c.bf16 %v3373_v16, %v3372_v13  ;;  %v3381_v13 = vld [vmem:[#allocation8 + $0xbf0] sm:$0xff] }
 0x3d9   : > { %7554 = vmatprep.subr.bf16.mxu1 %v7553_v61  ;;  %v7571_v61 = vpack.c.bf16 %v3327_v12, %v3326_v8  ;;  %v7573_v24 = vpack.c.bf16 %v3345_v22, %v3344_v19  ;;  %v3334_v8 = vld [vmem:[#allocation8 + $0xa78] sm:$0xff]  ;;  %v3380_v12 = vld [vmem:[#allocation8 + $0xbe8] sm:$0xff] }
 0x3da   : > { %v3352_v16 = vld [vmem:[#allocation8 + $0xb08] sm:$0xff] }
 0x3db   : > { %7520 = vmatpush3.bf16.msra.mxu0 %v7519_v20  ;;  %v3329_v20 = vld [vmem:[#allocation8 + $0xa50] sm:$0xff] }
 0x3dc   : > { %7556 = vmatpush3.bf16.msra.mxu1 %v7555_v15  ;;  %7522 = vmatprep.subr.bf16.mxu0 %v7521_v23  ;;  %v3374_v15 = vld [vmem:[#allocation8 + $0xbb8] sm:$0xff]  ;;  %v3375_v23 = vld [vmem:[#allocation8 + $0xbc0] sm:$0xff]  ;;  %v7575_v41 = vpack.c.bf16 %v3329_v20, %v3328_v34 }
 0x3dd   : > { %7558 = vmatprep.subr.bf16.mxu1 %v7557_v38  ;;  %v3102_v38 = vrot.slane %v9217_v50, 4  ;;  %v7601_v42 = vpack.c.bf16 %v3375_v23, %v3374_v15  ;;  %v3382_v34 = vld [vmem:[#allocation8 + $0xbf8] sm:$0xff]  ;;  %v3355_v15 = vld [vmem:[#allocation8 + $0xb20] sm:$0xff] }
 0x3de   : > { %v3354_v20 = vld [vmem:[#allocation8 + $0xb18] sm:$0xff] }
 0x3df   : > { %7524 = vmatpush3.bf16.msra.mxu0 %v7523_v46  ;;  %v3392_v46 = vrot.slane %v9206_v7, 5 }
 0x3e0   : > { %7560 = vmatpush3.bf16.msra.mxu1 %v7559_v43  ;;  %7526 = vmatprep.subr.bf16.mxu0 %v7525_v47  ;;  %v7577_v43 = vpack.c.bf16 %v3347_v10, %v3346_v57  ;;  %v3331_v47 = vld [vmem:[#allocation8 + $0xa60] sm:$0xff] }
 0x3e1   : > { %7562 = vmatprep.subr.bf16.mxu1 %v7561_v53  ;;  %v3349_v53 = vld [vmem:[#allocation8 + $0xaf0] sm:$0xff]  ;;  %v7579_v26 = vpack.c.bf16 %v3331_v47, %v3330_v35 }
 0x3e2   : > { %v3385_v35 = vld [vmem:[#allocation8 + $0xc10] sm:$0xff] }
 0x3e3   : > { %7528 = vmatpush3.bf16.msra.mxu0 %v7527_v55  ;;  %v3332_v55 = vld [vmem:[#allocation8 + $0xa68] sm:$0xff]  ;;  %v7621_v47 = vpack.c.bf16 %v3385_v35, %v3384_v45 }
 0x3e4   : > { %7564 = vmatpush3.bf16.msra.mxu1 %v7563_v56  ;;  %7530 = vmatprep.subr.bf16.mxu0 %v7529_v59  ;;  %v7581_v56 = vpack.c.bf16 %v3349_v53, %v3348_v33  ;;  %v3333_v59 = vld [vmem:[#allocation8 + $0xa70] sm:$0xff]  ;;  %v3386_v33 = vld [vmem:[#allocation8 + $0xc18] sm:$0xff]  ;;  %v3387_v53 = vld [vmem:[#allocation8 + $0xc20] sm:$0xff] }
 0x3e5   : > { %7566 = vmatprep.subr.bf16.mxu1 %v7565_v3  ;;  %v3350_v3 = vld [vmem:[#allocation8 + $0xaf8] sm:$0xff]  ;;  %v7583_v6 = vpack.c.bf16 %v3333_v59, %v3332_v55  ;;  %v7625_v54 = vpack.c.bf16 %v3387_v53, %v3386_v33  ;;  %v3389_v59 = vrot.slane %v9191_v14, 5  ;;  %v3637_v33 = vld [vmem:[#allocation8 + $0xce0] sm:$0xff]  ;;  %v3638_v53 = vld [vmem:[#allocation8 + $0xce8] sm:$0xff] }
 0x3e6   : > { %v3370_v55 = vld [vmem:[#allocation8 + $0xb98] sm:$0xff] }
 0x3e7   : > { %3247 = vmatmul.mubr.f32.vlgmr.msra.gmra.mrb[30].mxu1 %v3100_v9  ;;  %7532 = vmatpush3.bf16.msra.mxu0 %v7531_v49  ;;  %v3362_v49 = vld [vmem:[#allocation8 + $0xb58] sm:$0xff]  ;;  %v7585_v9 = vpack.c.bf16 %v3351_v4, %v3350_v3  ;;  %v3631_v4 = vld [vmem:[#allocation8 + $0xcb0] sm:$0xff] }
 0x3e8   : > { %7568 = vmatpush3.bf16.msra.mxu1 %v7567_v48  ;;  %3467 = vmatprep.mubr.f32.mxu1 %v3390_v18  ;;  %v3363_v48 = vld [vmem:[#allocation8 + $0xb60] sm:$0xff]  ;;  %v3353_v18 = vld [vmem:[#allocation8 + $0xb10] sm:$0xff]  ;;  %v3648_v3 = vld [vmem:[#allocation8 + $0xd38] sm:$0xff] }
 0x3e9   : > { %7570 = vmatprep.subr.bf16.mxu1 %v7569_v11  ;;  %7045 = vmatprep.subr.mxu0 %v8562_v0  ;;  %v3335_v11 = vld [vmem:[#allocation8 + $0xa80] sm:$0xff]  ;;  %v7611_v19 = vpack.c.bf16 %v3363_v48, %v3362_v49  ;;  %v7589_v29 = vpack.c.bf16 %v3353_v18, %v3352_v16  ;;  %v7663_v48 = vpack.c.bf16 %v3648_v3, %v3647_v63  ;;  %v3650_v18 = vld [vmem:[#allocation8 + $0xd48] sm:$0xff]  ;;  %v3656_v63 = vld [vmem:[#allocation8 + $0xd78] sm:$0xff] }
 0x3ea   : > { %3177 = vmatmul.mubr.f32.vlgmr.msra.gmra.mrb[32].mxu0 %v3098_v2  ;;  %v7587_v22 = vpack.c.bf16 %v3335_v11, %v3334_v8  ;;  %v3364_v2 = vld [vmem:[#allocation8 + $0xb68] sm:$0xff]  ;;  %v3615_v8 = vld [vmem:[#allocation8 + $0xc30] sm:$0xff]  ;;  %v3649_v11 = vld [vmem:[#allocation8 + $0xd40] sm:$0xff] }
 0x3eb   : > { %7046 = vmatpush3.msk.msra.mxu0 %vm434_vm3, %v3097_v28  ;;  %7047 = vmatprep.mubr.msk.f32.mxu0 %vm8565_vm10, %v8562_v0  ;;  %v7613_v28 = vpack.c.bf16 %v3381_v13, %v3380_v12  ;;  %v3393_v12 = vrot.slane %v9217_v50, 5  ;;  %v3639_v3 = vld [vmem:[#allocation8 + $0xcf0] sm:$0xff] }
 0x3ec   : > { %7572 = vmatpush3.bf16.msra.mxu1 %v7571_v61  ;;  %7598 = vmatprep.subr.bf16.mxu0 %v7597_v51  ;;  %v3365_v61 = vld [vmem:[#allocation8 + $0xb70] sm:$0xff]  ;;  %v3336_v51 = vld [vmem:[#allocation8 + $0xa88] sm:$0xff] }
 0x3ed   : > { %7574 = vmatprep.subr.bf16.mxu1 %v7573_v24  ;;  %v3383_v24 = vld [vmem:[#allocation8 + $0xc00] sm:$0xff]  ;;  %v7615_v23 = vpack.c.bf16 %v3365_v61, %v3364_v2  ;;  %v7591_v57 = vpack.c.bf16 %v3337_v21, %v3336_v51  ;;  %v3667_v2 = vld [vmem:[#allocation8 + $0xdd0] sm:$0xff]  ;;  %v3668_v61 = vld [vmem:[#allocation8 + $0xdd8] sm:$0xff]  ;;  %v7667_v21 = vpack.c.bf16 %v3650_v18, %v3649_v11 }
 0x3ee   : > { %7048 = vmatmul.mubr.msk.f32.vlgmr.msra.gmra.mrb[34].mxu0 %vm2019_vm11, %v3102_v38  ;;  %v7617_v10 = vpack.c.bf16 %v3383_v24, %v3382_v34  ;;  %v3367_v38 = vld [vmem:[#allocation8 + $0xb80] sm:$0xff]  ;;  %v3642_v18 = vld [vmem:[#allocation8 + $0xd08] sm:$0xff] }
 0x3ef   : > { %7600 = vmatpush3.bf16.msra.mxu0 %v7599_v37  ;;  %3537 = vmatprep.mubr.f32.mxu0 %v3392_v46  ;;  %v3366_v37 = vld [vmem:[#allocation8 + $0xb78] sm:$0xff]  ;;  %v3617_v24 = vld [vmem:[#allocation8 + $0xc40] sm:$0xff] }
 0x3f0   : > { %7576 = vmatpush3.bf16.msra.mxu1 %v7575_v41  ;;  %7602 = vmatprep.subr.bf16.mxu0 %v7601_v42  ;;  %v3338_v41 = vld [vmem:[#allocation8 + $0xa98] sm:$0xff]  ;;  %v7593_v42 = vpack.c.bf16 %v3355_v15, %v3354_v20  ;;  %v7619_v46 = vpack.c.bf16 %v3367_v38, %v3366_v37  ;;  %v3618_v20 = vld [vmem:[#allocation8 + $0xc48] sm:$0xff]  ;;  %v3651_v15 = vld [vmem:[#allocation8 + $0xd50] sm:$0xff] }
 0x3f1   : > { %7578 = vmatprep.subr.bf16.mxu1 %v7577_v43  ;;  %v7595_v43 = vpack.c.bf16 %v3339_v52, %v3338_v41  ;;  %v3635_v37 = vld [vmem:[#allocation8 + $0xcd0] sm:$0xff]  ;;  %v3636_v38 = vld [vmem:[#allocation8 + $0xcd8] sm:$0xff]  ;;  %v3669_v41 = vld [vmem:[#allocation8 + $0xde0] sm:$0xff]  ;;  %v7635_v52 = vpack.c.bf16 %v3618_v20, %v3617_v24 }
 0x3f2   : > { %v7637_v35 = vpack.c.bf16 %v3636_v38, %v3635_v37  ;;  %v3657_v11 = vld [vmem:[#allocation8 + $0xd80] sm:$0xff]  ;;  %v3660_v24 = vld [vmem:[#allocation8 + $0xd98] sm:$0xff]  ;;  %v3643_v20 = vld [vmem:[#allocation8 + $0xd10] sm:$0xff] }
 0x3f3   : > { %7604 = vmatpush3.bf16.msra.mxu0 %v7603_v27  ;;  %v3663_v27 = vld [vmem:[#allocation8 + $0xdb0] sm:$0xff] }
 0x3f4   : > { %7580 = vmatpush3.bf16.msra.mxu1 %v7579_v26  ;;  %7606 = vmatprep.subr.bf16.mxu0 %v7605_v1  ;;  %v3664_v26 = vld [vmem:[#allocation8 + $0xdb8] sm:$0xff]  ;;  %v7623_v1 = vpack.c.bf16 %v3369_v17, %v3368_v25  ;;  %v3654_v17 = vld [vmem:[#allocation8 + $0xd68] sm:$0xff] }
 0x3f5   : > { %7582 = vmatprep.subr.bf16.mxu1 %v7581_v56  ;;  %v3371_v56 = vld [vmem:[#allocation8 + $0xba0] sm:$0xff]  ;;  %v7661_v62 = vpack.c.bf16 %v3664_v26, %v3663_v27  ;;  %v3671_v27 = vld [vmem:[#allocation8 + $0xdf0] sm:$0xff]  ;;  %v3672_v26 = vld [vmem:[#allocation8 + $0xdf8] sm:$0xff] }
 0x3f6   : > { %v7627_v49 = vpack.c.bf16 %v3371_v56, %v3370_v55  ;;  %v3621_v55 = vld [vmem:[#allocation8 + $0xc60] sm:$0xff]  ;;  %v3622_v56 = vld [vmem:[#allocation8 + $0xc68] sm:$0xff] }
 0x3f7   : > { %7608 = vmatpush3.bf16.msra.mxu0 %v7607_v5  ;;  %v3632_v5 = vld [vmem:[#allocation8 + $0xcb8] sm:$0xff] }
 0x3f8   : > { %7584 = vmatpush3.bf16.msra.mxu1 %v7583_v6  ;;  %7610 = vmatprep.subr.bf16.mxu0 %v7609_v44  ;;  %v3665_v6 = vld [vmem:[#allocation8 + $0xdc0] sm:$0xff]  ;;  %v3666_v44 = vld [vmem:[#allocation8 + $0xdc8] sm:$0xff]  ;;  %v7629_v13 = vpack.c.bf16 %v3632_v5, %v3631_v4  ;;  %v3640_v4 = vld [vmem:[#allocation8 + $0xcf8] sm:$0xff] }
 0x3f9   : > { %7586 = vmatprep.subr.bf16.mxu1 %v7585_v9  ;;  %v3616_v9 = vld [vmem:[#allocation8 + $0xc38] sm:$0xff]  ;;  %v7665_v16 = vpack.c.bf16 %v3666_v44, %v3665_v6  ;;  %v3673_v5 = vld [vmem:[#allocation8 + $0xe00] sm:$0xff]  ;;  %v3674_v6 = vld [vmem:[#allocation8 + $0xe08] sm:$0xff]  ;;  %v7643_v44 = vpack.c.bf16 %v3622_v56, %v3621_v55 }
 0x3fa   : > { %v7631_v51 = vpack.c.bf16 %v3616_v9, %v3615_v8  ;;  %v3623_v8 = vld [vmem:[#allocation8 + $0xc70] sm:$0xff]  ;;  %v3624_v9 = vld [vmem:[#allocation8 + $0xc78] sm:$0xff]  ;;  %v3924_v55 = vld [vmem:[#allocation8 + $0xec8] sm:$0xff] }
 0x3fb   : > { %7612 = vmatpush3.bf16.msra.mxu0 %v7611_v19  ;;  %v3633_v19 = vld [vmem:[#allocation8 + $0xcc0] sm:$0xff]  ;;  %v3925_v56 = vld [vmem:[#allocation8 + $0xed0] sm:$0xff] }
 0x3fc   : > { %7588 = vmatpush3.bf16.msra.mxu1 %v7587_v22  ;;  %7614 = vmatprep.subr.bf16.mxu0 %v7613_v28  ;;  %v3634_v22 = vld [vmem:[#allocation8 + $0xcc8] sm:$0xff]  ;;  %v3683_v28 = vrot.slane %v9206_v7, 6 }
 0x3fd   : > { %7590 = vmatprep.subr.bf16.mxu1 %v7589_v29  ;;  %v3391_v29 = vrot.slane %v9204_v31, 5  ;;  %v7633_v34 = vpack.c.bf16 %v3634_v22, %v3633_v19  ;;  %v3675_v19 = vld [vmem:[#allocation8 + $0xe10] sm:$0xff]  ;;  %v3676_v22 = vld [vmem:[#allocation8 + $0xe18] sm:$0xff] }
 0x3ff   : > { %7616 = vmatpush3.bf16.msra.mxu0 %v7615_v23  ;;  %v3681_v23 = vrot.slane %v9193_v30, 6 }
 0x400   : > { %7592 = vmatpush3.bf16.msra.mxu1 %v7591_v57  ;;  %7618 = vmatprep.subr.bf16.mxu0 %v7617_v10  ;;  %v7669_v57 = vpack.c.bf16 %v3668_v61, %v3667_v2  ;;  %v3652_v10 = vld [vmem:[#allocation8 + $0xd58] sm:$0xff] }
 0x401   : > { %7594 = vmatprep.subr.bf16.mxu1 %v7593_v42  ;;  %v3670_v42 = vld [vmem:[#allocation8 + $0xde8] sm:$0xff]  ;;  %v7671_v45 = vpack.c.bf16 %v3652_v10, %v3651_v15  ;;  %v3644_v15 = vld [vmem:[#allocation8 + $0xd18] sm:$0xff] }
 0x402   : > { %v7673_v25 = vpack.c.bf16 %v3670_v42, %v3669_v41  ;;  %v7653_v38 = vpack.c.bf16 %v3644_v15, %v3643_v20  ;;  %v3627_v41 = vld [vmem:[#allocation8 + $0xc90] sm:$0xff]  ;;  %v3628_v42 = vld [vmem:[#allocation8 + $0xc98] sm:$0xff]  ;;  %v3684_v20 = vrot.slane %v9217_v50, 6 }
 0x403   : > { %7620 = vmatpush3.bf16.msra.mxu0 %v7619_v46  ;;  %v3619_v46 = vld [vmem:[#allocation8 + $0xc50] sm:$0xff] }
 0x404   : > { %7596 = vmatpush3.bf16.msra.mxu1 %v7595_v43  ;;  %7622 = vmatprep.subr.bf16.mxu0 %v7621_v47  ;;  %v3620_v43 = vld [vmem:[#allocation8 + $0xc58] sm:$0xff]  ;;  %v3653_v47 = vld [vmem:[#allocation8 + $0xd60] sm:$0xff] }
 0x405   : > { %7050 = vmatprep.subr.mxu1 %v8562_v0 }
 0x407   : > { %3468 = vmatmul.mubr.f32.vlgmr.msra.gmra.mrb[32].mxu1 %v3389_v59  ;;  %7624 = vmatpush3.bf16.msra.mxu0 %v7623_v1  ;;  %v7639_v1 = vpack.c.bf16 %v3620_v43, %v3619_v46  ;;  %v3655_v59 = vld [vmem:[#allocation8 + $0xd70] sm:$0xff]  ;;  %v3645_v46 = vld [vmem:[#allocation8 + $0xd20] sm:$0xff]  ;;  %v3646_v43 = vld [vmem:[#allocation8 + $0xd28] sm:$0xff] }
 0x408   : > { %7051 = vmatpush3.msk.msra.mxu1 %vm434_vm3, %v3388_v58  ;;  %7626 = vmatprep.subr.bf16.mxu0 %v7625_v54  ;;  %v7675_v58 = vpack.c.bf16 %v3654_v17, %v3653_v47  ;;  %v7641_v54 = vpack.c.bf16 %v3638_v53, %v3637_v33  ;;  %v3922_v47 = vld [vmem:[#allocation8 + $0xeb8] sm:$0xff]  ;;  %v7655_v17 = vpack.c.bf16 %v3628_v42, %v3627_v41  ;;  %v3913_v42 = vld [vmem:[#allocation8 + $0xe70] sm:$0xff] }
 0x409   : > { %7052 = vmatprep.mubr.msk.f32.mxu1 %vm8565_vm10, %v8562_v0  ;;  %7662 = vmatprep.subr.bf16.mxu1 %v7661_v62  ;;  %v7677_v62 = vpack.c.bf16 %v3672_v26, %v3671_v27  ;;  %v7657_v53 = vpack.c.bf16 %v3646_v43, %v3645_v46  ;;  %v3629_v27 = vld [vmem:[#allocation8 + $0xca0] sm:$0xff]  ;;  %v3630_v26 = vld [vmem:[#allocation8 + $0xca8] sm:$0xff]  ;;  %v3930_v46 = vld [vmem:[#allocation8 + $0xef8] sm:$0xff] }
 0x40a   : > { %v3931_v43 = vld [vmem:[#allocation8 + $0xf00] sm:$0xff] }
 0x40b   : > { %7628 = vmatpush3.bf16.msra.mxu0 %v7627_v49  ;;  %7053 = vmatmul.mubr.msk.f32.vlgmr.msra.gmra.mrb[34].mxu1 %vm2019_vm11, %v3393_v12  ;;  %v7679_v49 = vpack.c.bf16 %v3656_v63, %v3655_v59  ;;  %v7681_v12 = vpack.c.bf16 %v3674_v6, %v3673_v5  ;;  %v7659_v59 = vpack.c.bf16 %v3630_v26, %v3629_v27  ;;  %v3908_v63 = vld [vmem:[#allocation8 + $0xe48] sm:$0xff]  ;;  %v3909_v5 = vld [vmem:[#allocation8 + $0xe50] sm:$0xff]  ;;  %v3954_v6 = vld [vmem:[#allocation8 + $0xfb8] sm:$0xff] }
 0x40c   : > { %7664 = vmatpush3.bf16.msra.mxu1 %v7663_v48  ;;  %3828 = vmatprep.mubr.f32.mxu1 %v3683_v28  ;;  %v7645_v48 = vpack.c.bf16 %v3640_v4, %v3639_v3  ;;  %v7647_v28 = vpack.c.bf16 %v3624_v9, %v3623_v8  ;;  %v3682_v3 = vrot.slane %v9204_v31, 6  ;;  %v7697_v4 = vpack.c.bf16 %v3925_v56, %v3924_v55  ;;  %v3926_v8 = vld [vmem:[#allocation8 + $0xed8] sm:$0xff]  ;;  %v3927_v9 = vld [vmem:[#allocation8 + $0xee0] sm:$0xff]  ;;  %v3961_v55 = vld [vmem:[#allocation8 + $0xff0] sm:$0xff] }
 0x40d   : > { %7630 = vmatprep.subr.bf16.mxu0 %v7629_v13  ;;  %7666 = vmatprep.subr.bf16.mxu1 %v7665_v16  ;;  %v3658_v13 = vld [vmem:[#allocation8 + $0xd88] sm:$0xff]  ;;  %v3641_v16 = vld [vmem:[#allocation8 + $0xd00] sm:$0xff]  ;;  %v3942_v27 = vld [vmem:[#allocation8 + $0xf58] sm:$0xff] }
 0x40e   : > { %3538 = vmatmul.mubr.f32.vlgmr.msra.gmra.mrb[36].mxu0 %v3391_v29  ;;  %v7683_v2 = vpack.c.bf16 %v3658_v13, %v3657_v11  ;;  %v7649_v61 = vpack.c.bf16 %v3642_v18, %v3641_v16  ;;  %v3626_v29 = vld [vmem:[#allocation8 + $0xc88] sm:$0xff]  ;;  %v3679_v11 = vld [vmem:[#allocation8 + $0xe30] sm:$0x7f]  ;;  %v3680_v13 = vrot.slane %v9191_v14, 6  ;;  %v7699_v16 = vpack.c.bf16 %v3909_v5, %v3908_v63  ;;  %v3914_v26 = vld [vmem:[#allocation8 + $0xe78] sm:$0xff] }
 0x40f   : > { %7632 = vmatpush3.bf16.msra.mxu0 %v7631_v51  ;;  %3758 = vmatprep.mubr.f32.mxu0 %v3681_v23  ;;  %v3625_v51 = vld [vmem:[#allocation8 + $0xc80] sm:$0xff]  ;;  %v3944_v5 = vld [vmem:[#allocation8 + $0xf68] sm:$0xff] }
 0x410   : > { %7668 = vmatpush3.bf16.msra.mxu1 %v7667_v21  ;;  %7634 = vmatprep.subr.bf16.mxu0 %v7633_v34  ;;  %v3659_v21 = vld [vmem:[#allocation8 + $0xd90] sm:$0xff]  ;;  %v7685_v34 = vpack.c.bf16 %v3676_v22, %v3675_v19  ;;  %v3677_v23 = vld [vmem:[#allocation8 + $0xe20] sm:$0xff]  ;;  %v7651_v10 = vpack.c.bf16 %v3626_v29, %v3625_v51  ;;  %v3938_v22 = vld [vmem:[#allocation8 + $0xf38] sm:$0xff] }
 0x411   : > { %7670 = vmatprep.subr.bf16.mxu1 %v7669_v57  ;;  %v3678_v57 = vld [vmem:[#allocation8 + $0xe28] sm:$0xff]  ;;  %v7687_v37 = vpack.c.bf16 %v3660_v24, %v3659_v21  ;;  %v3957_v29 = vld [vmem:[#allocation8 + $0xfd0] sm:$0xff] }
 0x412   : > { %v3956_v51 = vld [vmem:[#allocation8 + $0xfc8] sm:$0xff] }
 0x413   : > { %7636 = vmatpush3.bf16.msra.mxu0 %v7635_v52  ;;  %v3661_v52 = vld [vmem:[#allocation8 + $0xda0] sm:$0xff]  ;;  %v3928_v21 = vld [vmem:[#allocation8 + $0xee8] sm:$0xff] }
 0x414   : > { %7672 = vmatpush3.bf16.msra.mxu1 %v7671_v45  ;;  %7638 = vmatprep.subr.bf16.mxu0 %v7637_v35  ;;  %v7689_v45 = vpack.c.bf16 %v3678_v57, %v3677_v23  ;;  %v3662_v35 = vld [vmem:[#allocation8 + $0xda8] sm:$0xff]  ;;  %v7729_v23 = vpack.c.bf16 %v3957_v29, %v3956_v51  ;;  %v3919_v29 = vld [vmem:[#allocation8 + $0xea0] sm:$0xff] }
 0x415   : > { %7674 = vmatprep.subr.bf16.mxu1 %v7673_v25  ;;  %v3923_v25 = vld [vmem:[#allocation8 + $0xec0] sm:$0xff]  ;;  %v7691_v33 = vpack.c.bf16 %v3662_v35, %v3661_v52  ;;  %v3940_v57 = vld [vmem:[#allocation8 + $0xf48] sm:$0xff]  ;;  %v3958_v52 = vld [vmem:[#allocation8 + $0xfd8] sm:$0xff] }
 0x417   : > { %7640 = vmatpush3.bf16.msra.mxu0 %v7639_v1  ;;  %v7693_v1 = vpack.c.bf16 %v3923_v25, %v3922_v47 }
 0x418   : > { %7676 = vmatpush3.bf16.msra.mxu1 %v7675_v58  ;;  %7642 = vmatprep.subr.bf16.mxu0 %v7641_v54  ;;  %v3906_v58 = vld [vmem:[#allocation8 + $0xe38] sm:$0xff]  ;;  %v3907_v54 = vld [vmem:[#allocation8 + $0xe40] sm:$0xff] }
 0x419   : > { %7678 = vmatprep.subr.bf16.mxu1 %v7677_v62  ;;  %v7695_v62 = vpack.c.bf16 %v3907_v54, %v3906_v58  ;;  %v3915_v58 = vld [vmem:[#allocation8 + $0xe80] sm:$0xff]  ;;  %v3960_v54 = vld [vmem:[#allocation8 + $0xfe8] sm:$0xff] }
 0x41b   : > { %7644 = vmatpush3.bf16.msra.mxu0 %v7643_v44  ;;  %v3955_v44 = vld [vmem:[#allocation8 + $0xfc0] sm:$0xff] }
 0x41c   : > { %7680 = vmatpush3.bf16.msra.mxu1 %v7679_v49  ;;  %7646 = vmatprep.subr.bf16.mxu0 %v7645_v48  ;;  %v3972_v49 = vrot.slane %v9193_v30, 7  ;;  %v7725_v18 = vpack.c.bf16 %v3955_v44, %v3954_v6  ;;  %v7701_v30 = vpack.c.bf16 %v3927_v9, %v3926_v8  ;;  %v3945_v6 = vld [vmem:[#allocation8 + $0xf70] sm:$0xff]  ;;  %v3916_v44 = vld [vmem:[#allocation8 + $0xe88] sm:$0xff]  ;;  %v3962_v9 = vld [vmem:[#allocation8 + $0xff8] sm:$0xff] }
 0x41d   : > { %7682 = vmatprep.subr.bf16.mxu1 %v7681_v12  ;;  %v3917_v8 = vld [vmem:[#allocation8 + $0xe90] sm:$0xff] }
 0x41f   : > { %7648 = vmatpush3.bf16.msra.mxu0 %v7647_v28  ;;  %v3939_v28 = vld [vmem:[#allocation8 + $0xf40] sm:$0xff] }
 0x420   : > { %7684 = vmatpush3.bf16.msra.mxu1 %v7683_v2  ;;  %7650 = vmatprep.subr.bf16.mxu0 %v7649_v61  ;;  %v3910_v2 = vld [vmem:[#allocation8 + $0xe58] sm:$0xff]  ;;  %v3911_v61 = vld [vmem:[#allocation8 + $0xe60] sm:$0xff]  ;;  %v7727_v24 = vpack.c.bf16 %v3939_v28, %v3938_v22  ;;  %v7715_v22 = vpack.c.bf16 %v3917_v8, %v3916_v44  ;;  %v4231_v8 = vld [vmem:[#allocation8 + $0x1150] sm:$0xff] }
 0x421   : > { %7686 = vmatprep.subr.bf16.mxu1 %v7685_v34  ;;  %v3929_v34 = vld [vmem:[#allocation8 + $0xef0] sm:$0xff]  ;;  %v7703_v15 = vpack.c.bf16 %v3911_v61, %v3910_v2  ;;  %v3946_v2 = vld [vmem:[#allocation8 + $0xf78] sm:$0xff] }
 0x422   : > { %v7705_v41 = vpack.c.bf16 %v3929_v34, %v3928_v21  ;;  %v3918_v61 = vld [vmem:[#allocation8 + $0xe98] sm:$0xff]  ;;  %v3964_v21 = vld [vmem:[#allocation8 + $0x1008] sm:$0xff]  ;;  %v3965_v34 = vld [vmem:[#allocation8 + $0x1010] sm:$0xff] }
 0x423   : > { %7652 = vmatpush3.bf16.msra.mxu0 %v7651_v10  ;;  %v3941_v10 = vld [vmem:[#allocation8 + $0xf50] sm:$0xff] }
 0x424   : > { %7688 = vmatpush3.bf16.msra.mxu1 %v7687_v37  ;;  %7654 = vmatprep.subr.bf16.mxu0 %v7653_v38  ;;  %v3912_v37 = vld [vmem:[#allocation8 + $0xe68] sm:$0xff]  ;;  %v3974_v38 = vrot.slane %v9206_v7, 7  ;;  %v7731_v25 = vpack.c.bf16 %v3941_v10, %v3940_v57  ;;  %v3943_v7 = vld [vmem:[#allocation8 + $0xf60] sm:$0xff]  ;;  %v7745_v57 = vpack.c.bf16 %v3965_v34, %v3964_v21  ;;  %v9297_v34 = vmax.f32 %v9199_v36, 0.0 }
 0x425   : > { %7690 = vmatprep.subr.bf16.mxu1 %v7689_v45  ;;  %v3959_v45 = vld [vmem:[#allocation8 + $0xfe0] sm:$0xff]  ;;  %v7735_v63 = vpack.c.bf16 %v3943_v7, %v3942_v27  ;;  %v3948_v10 = vld [vmem:[#allocation8 + $0xf88] sm:$0xff] }
 0x426   : > { %v4246_v27 = vld [vmem:[#allocation8 + $0x11c8] sm:$0xff]  ;;  %v4233_v21 = vld [vmem:[#allocation8 + $0x1160] sm:$0xff] }
 0x427   : > { %7656 = vmatpush3.bf16.msra.mxu0 %v7655_v17 }
 0x428   : > { %7692 = vmatpush3.bf16.msra.mxu1 %v7691_v33  ;;  %7658 = vmatprep.subr.bf16.mxu0 %v7657_v53  ;;  %v7707_v33 = vpack.c.bf16 %v3913_v42, %v3912_v37  ;;  %v7733_v53 = vpack.c.bf16 %v3959_v45, %v3958_v52  ;;  %v3949_v37 = vld [vmem:[#allocation8 + $0xf90] sm:$0xff]  ;;  %v3966_v52 = vld [vmem:[#allocation8 + $0x1018] sm:$0xff]  ;;  %v3967_v45 = vld [vmem:[#allocation8 + $0x1020] sm:$0xff] }
 0x429   : > { %7694 = vmatprep.subr.bf16.mxu1 %v7693_v1  ;;  %v7709_v1 = vpack.c.bf16 %v3931_v43, %v3930_v46  ;;  %v3921_v42 = vld [vmem:[#allocation8 + $0xeb0] sm:$0xff]  ;;  %v7749_v43 = vpack.c.bf16 %v3967_v45, %v3966_v52  ;;  %v4202_v52 = vld [vmem:[#allocation8 + $0x1068] sm:$0xff] }
 0x42a   : > { %v6051_v48 = vpop.f32.mrb[20].mxu0  ;;  %v4235_v45 = vld [vmem:[#allocation8 + $0x1170] sm:$0xff] }
 0x42b   : > { %3829 = vmatmul.mubr.f32.vlgmr.msra.gmra.mrb[36].mxu1 %v3682_v3  ;;  %7660 = vmatpush3.bf16.msra.mxu0 %v7659_v59  ;;  %v6052_v12 = vpop.f32.mrb[21].mxu0  ;;  %v3932_v59 = vld [vmem:[#allocation8 + $0xf08] sm:$0xff]  ;;  %v7711_v3 = vpack.c.bf16 %v3915_v58, %v3914_v26  ;;  %v3970_v26 = vld [vmem:[#allocation8 + $0x1038] sm:$0x7f] }
 0x42c   : > { %7696 = vmatpush3.bf16.msra.mxu1 %v7695_v62  ;;  %4049 = vmatprep.mubr.f32.mxu1 %v3972_v49  ;;  %v6053_v19 = vadd.f32 %v6052_v12, %v6051_v48  ;;  %v3933_v62 = vld [vmem:[#allocation8 + $0xf10] sm:$0xff]  ;;  %v3952_v58 = vld [vmem:[#allocation8 + $0xfa8] sm:$0xff] }
 0x42d   : > { %7698 = vmatprep.subr.bf16.mxu1 %v7697_v4  ;;  %7055 = vmatprep.subr.mxu0 %v8562_v0  ;;  %v7737_v4 = vpack.c.bf16 %v3961_v55, %v3960_v54  ;;  %v7713_v48 = vpack.c.bf16 %v3933_v62, %v3932_v59  ;;  %v3953_v54 = vld [vmem:[#allocation8 + $0xfb0] sm:$0xff]  ;;  %v3971_v55 = vrot.slane %v9191_v14, 7  ;;  %v4229_v59 = vld [vmem:[#allocation8 + $0x1140] sm:$0xff]  ;;  %v4230_v62 = vld [vmem:[#allocation8 + $0x1148] sm:$0xff]  ;;  %v3975_v14 = vrot.slane %v9217_v50, 7 }
 0x42e   : > { %3759 = vmatmul.mubr.f32.vlgmr.msra.gmra.mrb[38].mxu0 %v3680_v13  ;;  %v7791_v44 = vpack.c.bf16 %v4230_v62, %v4229_v59  ;;  %v4238_v62 = vld [vmem:[#allocation8 + $0x1188] sm:$0xff] }
 0x42f   : > { %7056 = vmatpush3.msk.msra.mxu0 %vm434_vm3, %v3679_v11  ;;  %7057 = vmatprep.mubr.msk.f32.mxu0 %vm8565_vm10, %v8562_v0  ;;  %v3963_v11 = vld [vmem:[#allocation8 + $0x1000] sm:$0xff] }
 0x430   : > { %7700 = vmatpush3.bf16.msra.mxu1 %v7699_v16  ;;  %7726 = vmatprep.subr.bf16.mxu0 %v7725_v18  ;;  %v3934_v16 = vld [vmem:[#allocation8 + $0xf18] sm:$0xff]  ;;  %v3935_v18 = vld [vmem:[#allocation8 + $0xf20] sm:$0xff]  ;;  %v7741_v28 = vpack.c.bf16 %v3963_v11, %v3962_v9 }
 0x431   : > { %7702 = vmatprep.subr.bf16.mxu1 %v7701_v30  ;;  %v3947_v30 = vld [vmem:[#allocation8 + $0xf80] sm:$0xff]  ;;  %v7717_v51 = vpack.c.bf16 %v3935_v18, %v3934_v16  ;;  %v4215_v16 = vld [vmem:[#allocation8 + $0x10d0] sm:$0xff]  ;;  %v4216_v18 = vld [vmem:[#allocation8 + $0x10d8] sm:$0xff] }
 0x432   : > { %7058 = vmatmul.mubr.msk.f32.vlgmr.msra.gmra.mrb[40].mxu0 %vm2019_vm11, %v3684_v20  ;;  %v6086_v35 = vpop.f32.mrb[18].mxu1  ;;  %v3937_v20 = vld [vmem:[#allocation8 + $0xf30] sm:$0xff] }
 0x433   : > { %7728 = vmatpush3.bf16.msra.mxu0 %v7727_v24  ;;  %4119 = vmatprep.mubr.f32.mxu0 %v3974_v38  ;;  %v6087_v47 = vpop.f32.mrb[19].mxu1  ;;  %v3936_v24 = vld [vmem:[#allocation8 + $0xf28] sm:$0xff] }
 0x434   : > { %7704 = vmatpush3.bf16.msra.mxu1 %v7703_v15  ;;  %7730 = vmatprep.subr.bf16.mxu0 %v7729_v23  ;;  %v6088_v17 = vadd.f32 %v6087_v47, %v6086_v35  ;;  %v7743_v15 = vpack.c.bf16 %v3947_v30, %v3946_v2  ;;  %v7719_v23 = vpack.c.bf16 %v3919_v29, %v3918_v61  ;;  %v3920_v38 = vld [vmem:[#allocation8 + $0xea8] sm:$0xff]  ;;  %v3950_v47 = vld [vmem:[#allocation8 + $0xf98] sm:$0xff]  ;;  %v3973_v30 = vrot.slane %v9204_v31, 7 }
 0x435   : > { %7706 = vmatprep.subr.bf16.mxu1 %v7705_v41  ;;  %v7721_v41 = vpack.c.bf16 %v3937_v20, %v3936_v24  ;;  %v7747_v35 = vpack.c.bf16 %v3949_v37, %v3948_v10  ;;  %v7723_v46 = vpack.c.bf16 %v3921_v42, %v3920_v38  ;;  %v7761_v61 = vpack.c.bf16 %v4216_v18, %v4215_v16  ;;  %v4200_v29 = vld [vmem:[#allocation8 + $0x1058] sm:$0xff]  ;;  %v4234_v24 = vld [vmem:[#allocation8 + $0x1168] sm:$0xff]  ;;  %v4217_v20 = vld [vmem:[#allocation8 + $0x10e0] sm:$0xff] }
 0x436   : > { %v2162_v56 = vadd.f32 %v6088_v17, %v6053_v19  ;;  %v7739_v19 = vpack.c.bf16 %v3945_v6, %v3944_v5  ;;  %v3968_v17 = vld [vmem:[#allocation8 + $0x1028] sm:$0xff]  ;;  %v4248_v5 = vld [vmem:[#allocation8 + $0x11d8] sm:$0xff]  ;;  %v7755_v6 = vpack.c.bf16 %v3953_v54, %v3952_v58  ;;  %v7799_v36 = vpack.c.bf16 %v4234_v24, %v4233_v21  ;;  %v4201_v42 = vld [vmem:[#allocation8 + $0x1060] sm:$0xff] }
 0x437   : > { %7732 = vmatpush3.bf16.msra.mxu0 %v7731_v25  ;;  %v3951_v25 = vld [vmem:[#allocation8 + $0xfa0] sm:$0xff]  ;;  %v4252_v10 = vld [vmem:[#allocation8 + $0x11f8] sm:$0xff]  ;;  %v4203_v58 = vld [vmem:[#allocation8 + $0x1070] sm:$0xff] }
 0x438   : > { %7708 = vmatpush3.bf16.msra.mxu1 %v7707_v33  ;;  %7734 = vmatprep.subr.bf16.mxu0 %v7733_v53  ;;  %v3969_v33 = vld [vmem:[#allocation8 + $0x1030] sm:$0xff]  ;;  %v4245_v53 = vld [vmem:[#allocation8 + $0x11c0] sm:$0xff]  ;;  %v7751_v7 = vpack.c.bf16 %v3951_v25, %v3950_v47  ;;  %v4220_v47 = vld [vmem:[#allocation8 + $0x10f8] sm:$0xff] }
 0x439   : > { %7710 = vmatprep.subr.bf16.mxu1 %v7709_v1  ;;  %v2231_v49 = vpop.f32.mrb[22].mxu0  ;;  %v7753_v1 = vpack.c.bf16 %v3969_v33, %v3968_v17  ;;  %v4253_v33 = vld [vmem:[#allocation8 + $0x1200] sm:$0xff]  ;;  %v4204_v54 = vld [vmem:[#allocation8 + $0x1078] sm:$0xff]  ;;  %v4223_v18 = vld [vmem:[#allocation8 + $0x1110] sm:$0xff] }
 0x43a   : > { %v9282_v12 = vadd.f32 %v2231_v49, %v2162_v56  ;;  %v7029_v13 = vpop.f32.mrb[23].mxu0  ;;  %v7789_v56 = vpack.c.bf16 %v4246_v27, %v4245_v53  ;;  %v4197_v49 = vld [vmem:[#allocation8 + $0x1040] sm:$0xff]  ;;  %v4254_v53 = vld [vmem:[#allocation8 + $0x1208] sm:$0xff]  ;;  %v4240_v16 = vld [vmem:[#allocation8 + $0x1198] sm:$0xff] }
 0x43b   : > { %7736 = vmatpush3.bf16.msra.mxu0 %v7735_v63  ;;  %v4213_v63 = vld [vmem:[#allocation8 + $0x10c0] sm:$0xff]  ;;  %v4232_v13 = vld [vmem:[#allocation8 + $0x1158] sm:$0xff]  ;;  %v7805_v59 = vpack.c.bf16 %v4254_v53, %v4253_v33  ;;  %v4211_v53 = vld [vmem:[#allocation8 + $0x10b0] sm:$0xff] }
 0x43c   : > { %7712 = vmatpush3.bf16.msra.mxu1 %v7711_v3  ;;  %7738 = vmatprep.subr.bf16.mxu0 %v7737_v4  ;;  %v4214_v3 = vld [vmem:[#allocation8 + $0x10c8] sm:$0xff]  ;;  %v4247_v4 = vld [vmem:[#allocation8 + $0x11d0] sm:$0xff]  ;;  %v7795_v50 = vpack.c.bf16 %v4232_v13, %v4231_v8  ;;  %v4205_v8 = vld [vmem:[#allocation8 + $0x1080] sm:$0xff] }
 0x43d   : > { %7714 = vmatprep.subr.bf16.mxu1 %v7713_v48  ;;  %v4198_v48 = vld [vmem:[#allocation8 + $0x1048] sm:$0xff]  ;;  %v7757_v9 = vpack.c.bf16 %v4214_v3, %v4213_v63  ;;  %v7793_v11 = vpack.c.bf16 %v4248_v5, %v4247_v4  ;;  %v4221_v63 = vld [vmem:[#allocation8 + $0x1100] sm:$0xff]  ;;  %v4255_v4 = vld [vmem:[#allocation8 + $0x1210] sm:$0xff] }
 0x43e   : > { %v7759_v2 = vpack.c.bf16 %v4198_v48, %v4197_v49  ;;  %v4222_v3 = vld [vmem:[#allocation8 + $0x1108] sm:$0xff]  ;;  %v4256_v5 = vld [vmem:[#allocation8 + $0x1218] sm:$0xff] }
 0x43f   : > { %7740 = vmatpush3.bf16.msra.mxu0 %v7739_v19  ;;  %v9291_v19 = vmax.f32 %v9211_v39, 0.0  ;;  %v7773_v48 = vpack.c.bf16 %v4222_v3, %v4221_v63  ;;  %v7809_v13 = vpack.c.bf16 %v4256_v5, %v4255_v4  ;;  %v4208_v21 = vld [vmem:[#allocation8 + $0x1098] sm:$0xff]  ;;  %v4483_v3 = vld [vmem:[#allocation8 + $0x1260] sm:$0xff]  ;;  %v4529_v4 = vld [vmem:[#allocation8 + $0x13d0] sm:$0xff]  ;;  %v4550_v5 = vrot.slane %v9297_v34, 1 }
 0x440   : > { %7716 = vmatpush3.bf16.msra.mxu1 %v7715_v22  ;;  %7742 = vmatprep.subr.bf16.mxu0 %v7741_v28  ;;  %v4249_v22 = vld [vmem:[#allocation8 + $0x11e0] sm:$0xff]  ;;  %v4250_v28 = vld [vmem:[#allocation8 + $0x11e8] sm:$0xff] }
 0x441   : > { %7718 = vmatprep.subr.bf16.mxu1 %v7717_v51  ;;  %v4199_v51 = vld [vmem:[#allocation8 + $0x1050] sm:$0xff]  ;;  %v7797_v39 = vpack.c.bf16 %v4250_v28, %v4249_v22  ;;  %v4224_v22 = vld [vmem:[#allocation8 + $0x1118] sm:$0xff]  ;;  %v4257_v28 = vld [vmem:[#allocation8 + $0x1220] sm:$0xff] }
 0x442   : > { %v7763_v37 = vpack.c.bf16 %v4200_v29, %v4199_v51  ;;  %v7777_v51 = vpack.c.bf16 %v4224_v22, %v4223_v18  ;;  %v4207_v29 = vld [vmem:[#allocation8 + $0x1090] sm:$0xff]  ;;  %v4530_v18 = vld [vmem:[#allocation8 + $0x13d8] sm:$0xff]  ;;  %v4531_v22 = vld [vmem:[#allocation8 + $0x13e0] sm:$0xff] }
 0x443   : > { %7744 = vmatpush3.bf16.msra.mxu0 %v7743_v15  ;;  %v4218_v15 = vld [vmem:[#allocation8 + $0x10e8] sm:$0xff] }
 0x444   : > { %7720 = vmatpush3.bf16.msra.mxu1 %v7719_v23  ;;  %7746 = vmatprep.subr.bf16.mxu0 %v7745_v57  ;;  %v4251_v57 = vld [vmem:[#allocation8 + $0x11f0] sm:$0xff] }
 0x445   : > { %7722 = vmatprep.subr.bf16.mxu1 %v7721_v41  ;;  %v7765_v41 = vpack.c.bf16 %v4218_v15, %v4217_v20  ;;  %v4242_v20 = vld [vmem:[#allocation8 + $0x11a8] sm:$0xff]  ;;  %v4225_v15 = vld [vmem:[#allocation8 + $0x1120] sm:$0xff] }
 0x447   : > { %7748 = vmatpush3.bf16.msra.mxu0 %v7747_v35  ;;  %v7801_v35 = vpack.c.bf16 %v4252_v10, %v4251_v57  ;;  %v4259_v57 = vld [vmem:[#allocation8 + $0x1230] sm:$0xff]  ;;  %v4260_v10 = vld [vmem:[#allocation8 + $0x1238] sm:$0xff] }
 0x448   : > { %7724 = vmatpush3.bf16.msra.mxu1 %v7723_v46  ;;  %7750 = vmatprep.subr.bf16.mxu0 %v7749_v43  ;;  %v4236_v46 = vld [vmem:[#allocation8 + $0x1178] sm:$0xff]  ;;  %v4219_v43 = vld [vmem:[#allocation8 + $0x10f0] sm:$0xff] }
 0x449   : > { %7060 = vmatprep.subr.mxu1 %v8562_v0 }
 0x44b   : > { %4050 = vmatmul.mubr.f32.vlgmr.msra.gmra.mrb[38].mxu1 %v3971_v55  ;;  %7752 = vmatpush3.bf16.msra.mxu0 %v7751_v7  ;;  %v7767_v7 = vpack.c.bf16 %v4202_v52, %v4201_v42  ;;  %v4237_v55 = vld [vmem:[#allocation8 + $0x1180] sm:$0xff]  ;;  %v4243_v42 = vld [vmem:[#allocation8 + $0x11b0] sm:$0xff]  ;;  %v7817_v52 = vpack.c.bf16 %v4260_v10, %v4259_v57 }
 0x44c   : > { %7061 = vmatpush3.msk.msra.mxu1 %vm434_vm3, %v3970_v26  ;;  %7754 = vmatprep.subr.bf16.mxu0 %v7753_v1  ;;  %v7803_v26 = vpack.c.bf16 %v4236_v46, %v4235_v45  ;;  %v7769_v1 = vpack.c.bf16 %v4220_v47, %v4219_v43  ;;  %v7807_v49 = vpack.c.bf16 %v4238_v62, %v4237_v55  ;;  %v4244_v45 = vld [vmem:[#allocation8 + $0x11b8] sm:$0xff]  ;;  %v4496_v43 = vld [vmem:[#allocation8 + $0x12c8] sm:$0xff]  ;;  %v4497_v47 = vld [vmem:[#allocation8 + $0x12d0] sm:$0xff]  ;;  %v9304_v62 = vmax.f32 %v9208_v40, 0.0 }
 0x44d   : > { %7062 = vmatprep.mubr.msk.f32.mxu1 %vm8565_vm10, %v8562_v0  ;;  %7790 = vmatprep.subr.bf16.mxu1 %v7789_v56  ;;  %v4228_v46 = vld [vmem:[#allocation8 + $0x1138] sm:$0xff]  ;;  %v4533_v57 = vld [vmem:[#allocation8 + $0x13f0] sm:$0xff] }
 0x44f   : > { %7756 = vmatpush3.bf16.msra.mxu0 %v7755_v6  ;;  %7063 = vmatmul.mubr.msk.f32.vlgmr.msra.gmra.mrb[40].mxu1 %vm2019_vm11, %v3975_v14  ;;  %v4206_v14 = vld [vmem:[#allocation8 + $0x1088] sm:$0xff] }
 0x450   : > { %7792 = vmatpush3.bf16.msra.mxu1 %v7791_v44  ;;  %4402 = vmatprep.mubr.f32.mxu1 %v9291_v19  ;;  %v7771_v44 = vpack.c.bf16 %v4204_v54, %v4203_v58  ;;  %v4498_v58 = vld [vmem:[#allocation8 + $0x12d8] sm:$0xff]  ;;  %v4499_v54 = vld [vmem:[#allocation8 + $0x12e0] sm:$0xff] }
 0x451   : > { %7758 = vmatprep.subr.bf16.mxu0 %v7757_v9  ;;  %7794 = vmatprep.subr.bf16.mxu1 %v7793_v11  ;;  %v4239_v9 = vld [vmem:[#allocation8 + $0x1190] sm:$0xff]  ;;  %v7825_v63 = vpack.c.bf16 %v4499_v54, %v4498_v58  ;;  %v4518_v54 = vld [vmem:[#allocation8 + $0x1378] sm:$0xff] }
 0x452   : > { %4120 = vmatmul.mubr.f32.vlgmr.msra.gmra.mrb[42].mxu0 %v3973_v30  ;;  %v6123_v23 = vpop.f32.mrb[20].mxu1  ;;  %v7775_v30 = vpack.c.bf16 %v4206_v14, %v4205_v8  ;;  %v4512_v14 = vld [vmem:[#allocation8 + $0x1348] sm:$0xff] }
 0x453   : > { %7760 = vmatpush3.bf16.msra.mxu0 %v7759_v2  ;;  %4332 = vmatprep.mubr.f32.mxu0 %v9297_v34  ;;  %v6124_v31 = vpop.f32.mrb[21].mxu1  ;;  %v4258_v2 = vld [vmem:[#allocation8 + $0x1228] sm:$0xff] }
 0x454   : > { %7796 = vmatpush3.bf16.msra.mxu1 %v7795_v50  ;;  %v6125_v38 = vadd.f32 %v6124_v31, %v6123_v23  ;;  %7762 = vmatprep.subr.bf16.mxu0 %v7761_v61  ;;  %v7811_v61 = vpack.c.bf16 %v4240_v16, %v4239_v9  ;;  %v7813_v24 = vpack.c.bf16 %v4258_v2, %v4257_v28  ;;  %v4226_v23 = vld [vmem:[#allocation8 + $0x1128] sm:$0xff]  ;;  %v4513_v9 = vld [vmem:[#allocation8 + $0x1350] sm:$0xff]  ;;  %v4502_v28 = vld [vmem:[#allocation8 + $0x12f8] sm:$0xff] }
 0x455   : > { %7798 = vmatprep.subr.bf16.mxu1 %v7797_v39  ;;  %v4241_v39 = vld [vmem:[#allocation8 + $0x11a0] sm:$0xff]  ;;  %v7779_v31 = vpack.c.bf16 %v4208_v21, %v4207_v29  ;;  %v4485_v16 = vld [vmem:[#allocation8 + $0x1270] sm:$0xff]  ;;  %v4514_v29 = vld [vmem:[#allocation8 + $0x1358] sm:$0xff] }
 0x456   : > { %v2307_v25 = vadd.f32 %v6125_v38, %v9282_v12  ;;  %v2446_v17 = vpop.f32.mrb[22].mxu1  ;;  %v7781_v38 = vpack.c.bf16 %v4226_v23, %v4225_v15  ;;  %v4503_v2 = vld [vmem:[#allocation8 + $0x1300] sm:$0xff]  ;;  %v4532_v23 = vld [vmem:[#allocation8 + $0x13e8] sm:$0xff] }
 0x457   : > { %7764 = vmatpush3.bf16.msra.mxu0 %v7763_v37  ;;  %v7034_v27 = vpop.f32.mrb[23].mxu1  ;;  %v7815_v37 = vpack.c.bf16 %v4242_v20, %v4241_v39  ;;  %v4515_v21 = vld [vmem:[#allocation8 + $0x1360] sm:$0xff]  ;;  %v4486_v39 = vld [vmem:[#allocation8 + $0x1278] sm:$0xff]  ;;  %v7833_v20 = vpack.c.bf16 %v4503_v2, %v4502_v28  ;;  %v4493_v28 = vld [vmem:[#allocation8 + $0x12b0] sm:$0xff] }
 0x458   : > { %7800 = vmatpush3.bf16.msra.mxu1 %v7799_v36  ;;  %7766 = vmatprep.subr.bf16.mxu0 %v7765_v41  ;;  %v4209_v36 = vld [vmem:[#allocation8 + $0x10a0] sm:$0xff]  ;;  %v4210_v41 = vld [vmem:[#allocation8 + $0x10a8] sm:$0xff]  ;;  %v4212_v27 = vld [vmem:[#allocation8 + $0x10b8] sm:$0xff] }
 0x459   : > { %7802 = vmatprep.subr.bf16.mxu1 %v7801_v35  ;;  %v6158_v56 = vpop.f32.mrb[24].mxu0  ;;  %v4227_v35 = vld [vmem:[#allocation8 + $0x1130] sm:$0xff]  ;;  %v7787_v55 = vpack.c.bf16 %v4212_v27, %v4211_v53  ;;  %v4487_v15 = vld [vmem:[#allocation8 + $0x1280] sm:$0xff]  ;;  %v4506_v53 = vld [vmem:[#allocation8 + $0x1318] sm:$0xff] }
 0x45a   : > { %v6159_v12 = vpop.f32.mrb[25].mxu0  ;;  %v7785_v33 = vpack.c.bf16 %v4228_v46, %v4227_v35  ;;  %v4488_v35 = vld [vmem:[#allocation8 + $0x1288] sm:$0xff]  ;;  %v4507_v27 = vld [vmem:[#allocation8 + $0x1320] sm:$0xff]  ;;  %v4538_v2 = vld [vmem:[#allocation8 + $0x1418] sm:$0xff] }
 0x45b   : > { %7768 = vmatpush3.bf16.msra.mxu0 %v7767_v7  ;;  %v6160_v6 = vadd.f32 %v6159_v12, %v6158_v56  ;;  %v7821_v7 = vpack.c.bf16 %v4497_v47, %v4496_v43  ;;  %v4528_v12 = vld [vmem:[#allocation8 + $0x13c8] sm:$0xff]  ;;  %v4489_v47 = vld [vmem:[#allocation8 + $0x1290] sm:$0xff] }
 0x45c   : > { %7804 = vmatpush3.bf16.msra.mxu1 %v7803_v26  ;;  %7770 = vmatprep.subr.bf16.mxu0 %v7769_v1  ;;  %v4480_v26 = vld [vmem:[#allocation8 + $0x1248] sm:$0xff]  ;;  %v4481_v1 = vld [vmem:[#allocation8 + $0x1250] sm:$0xff]  ;;  %v7853_v8 = vpack.c.bf16 %v4529_v4, %v4528_v12  ;;  %v4491_v12 = vld [vmem:[#allocation8 + $0x12a0] sm:$0xff] }
 0x45d   : > { %v2377_v11 = vadd.f32 %v6160_v6, %v2307_v25  ;;  %7806 = vmatprep.subr.bf16.mxu1 %v7805_v59  ;;  %v7783_v25 = vpack.c.bf16 %v4210_v41, %v4209_v36  ;;  %v7823_v56 = vpack.c.bf16 %v4481_v1, %v4480_v26  ;;  %v4482_v59 = vld [vmem:[#allocation8 + $0x1258] sm:$0xff]  ;;  %v4500_v6 = vld [vmem:[#allocation8 + $0x12e8] sm:$0xff]  ;;  %v7835_v41 = vpack.c.bf16 %v4487_v15, %v4486_v39 }
 0x45e   : > { %v7827_v40 = vpack.c.bf16 %v4483_v3, %v4482_v59  ;;  %v7839_v1 = vpack.c.bf16 %v4489_v47, %v4488_v35  ;;  %v7841_v3 = vpack.c.bf16 %v4507_v27, %v4506_v53  ;;  %v4536_v4 = vld [vmem:[#allocation8 + $0x1408] sm:$0xff]  ;;  %v4494_v15 = vld [vmem:[#allocation8 + $0x12b8] sm:$0xff]  ;;  %v4807_v53 = vld [vmem:[#allocation8 + $0x1550] sm:$0xff] }
 0x45f   : > { %7772 = vmatpush3.bf16.msra.mxu0 %v7771_v44  ;;  %v9301_v50 = vadd.f32 %v2446_v17, %v2377_v11  ;;  %v7819_v17 = vpack.c.bf16 %v4244_v45, %v4243_v42  ;;  %v4501_v44 = vld [vmem:[#allocation8 + $0x12f0] sm:$0xff]  ;;  %v4484_v11 = vld [vmem:[#allocation8 + $0x1268] sm:$0xff]  ;;  %v7861_v42 = vpack.c.bf16 %v4533_v57, %v4532_v23  ;;  %v4526_v47 = vld [vmem:[#allocation8 + $0x13b8] sm:$0xff] }
 0x460   : > { %7808 = vmatpush3.bf16.msra.mxu1 %v7807_v49  ;;  %7774 = vmatprep.subr.bf16.mxu0 %v7773_v48  ;;  %v4261_v49 = vld [vmem:[#allocation8 + $0x1240] sm:$0x7f]  ;;  %v9309_v48 = vmax.f32 %v9196_v32, 0.0  ;;  %v7855_v32 = vpack.c.bf16 %v4513_v9, %v4512_v14  ;;  %v4517_v45 = vld [vmem:[#allocation8 + $0x1370] sm:$0xff]  ;;  %v4540_v57 = vld [vmem:[#allocation8 + $0x1428] sm:$0xff] }
 0x461   : > { %7810 = vmatprep.subr.bf16.mxu1 %v7809_v13  ;;  %v7829_v13 = vpack.c.bf16 %v4501_v44, %v4500_v6  ;;  %v4508_v44 = vld [vmem:[#allocation8 + $0x1328] sm:$0xff]  ;;  %v4808_v27 = vld [vmem:[#allocation8 + $0x1558] sm:$0xff] }
 0x463   : > { %7776 = vmatpush3.bf16.msra.mxu0 %v7775_v30  ;;  %v9317_v30 = vmax.f32 %v9214_v60, 0.0  ;;  %v4504_v60 = vld [vmem:[#allocation8 + $0x1308] sm:$0xff] }
 0x464   : > { %7812 = vmatpush3.bf16.msra.mxu1 %v7811_v61  ;;  %7778 = vmatprep.subr.bf16.mxu0 %v7777_v51  ;;  %v7831_v61 = vpack.c.bf16 %v4485_v16, %v4484_v11  ;;  %v7857_v51 = vpack.c.bf16 %v4531_v22, %v4530_v18  ;;  %v4520_v11 = vld [vmem:[#allocation8 + $0x1388] sm:$0xff] }
 0x465   : > { %7814 = vmatprep.subr.bf16.mxu1 %v7813_v24  ;;  %v4552_v24 = vrot.slane %v9291_v19, 1  ;;  %v4492_v16 = vld [vmem:[#allocation8 + $0x12a8] sm:$0xff] }
 0x467   : > { %7780 = vmatpush3.bf16.msra.mxu0 %v7779_v31  ;;  %v4505_v31 = vld [vmem:[#allocation8 + $0x1310] sm:$0xff] }
 0x468   : > { %7816 = vmatpush3.bf16.msra.mxu1 %v7815_v37  ;;  %7782 = vmatprep.subr.bf16.mxu0 %v7781_v38  ;;  %v7859_v38 = vpack.c.bf16 %v4515_v21, %v4514_v29  ;;  %v7837_v43 = vpack.c.bf16 %v4505_v31, %v4504_v60  ;;  %v7847_v21 = vpack.c.bf16 %v4493_v28, %v4492_v16  ;;  %v4777_v16 = vld [vmem:[#allocation8 + $0x1460] sm:$0xff]  ;;  %v4811_v28 = vld [vmem:[#allocation8 + $0x1570] sm:$0xff] }
 0x469   : > { %7818 = vmatprep.subr.bf16.mxu1 %v7817_v52  ;;  %v4516_v52 = vld [vmem:[#allocation8 + $0x1368] sm:$0xff] }
 0x46a   : > { %v7863_v26 = vpack.c.bf16 %v4517_v45, %v4516_v52  ;;  %v4823_v52 = vld [vmem:[#allocation8 + $0x15d0] sm:$0xff]  ;;  %v4824_v45 = vld [vmem:[#allocation8 + $0x15d8] sm:$0xff] }
 0x46b   : > { %7784 = vmatpush3.bf16.msra.mxu0 %v7783_v25  ;;  %v4534_v25 = vld [vmem:[#allocation8 + $0x13f8] sm:$0xff] }
 0x46c   : > { %7820 = vmatpush3.bf16.msra.mxu1 %v7819_v17  ;;  %7786 = vmatprep.subr.bf16.mxu0 %v7785_v33  ;;  %v4535_v17 = vld [vmem:[#allocation8 + $0x1400] sm:$0xff] }
 0x46d   : > { %7822 = vmatprep.subr.bf16.mxu1 %v7821_v7  ;;  %v7865_v58 = vpack.c.bf16 %v4535_v17, %v4534_v25  ;;  %v4527_v25 = vld [vmem:[#allocation8 + $0x13c0] sm:$0xff]  ;;  %v4549_v17 = vrot.slane %v9309_v48, 1 }
 0x46f   : > { %4403 = vmatmul.mubr.f32.vlgmr.msra.gmra.mrb[42].mxu1 %v9304_v62  ;;  %7788 = vmatpush3.bf16.msra.mxu0 %v7787_v55  ;;  %v4519_v55 = vld [vmem:[#allocation8 + $0x1380] sm:$0xff] }
 0x470   : > { %7824 = vmatpush3.bf16.msra.mxu1 %v7823_v56  ;;  %4627 = vmatprep.mubr.f32.mxu1 %v4550_v5  ;;  %v4490_v56 = vld [vmem:[#allocation8 + $0x1298] sm:$0xff]  ;;  %v4537_v5 = vld [vmem:[#allocation8 + $0x1410] sm:$0xff] }
 0x471   : > { %7826 = vmatprep.subr.bf16.mxu1 %v7825_v63  ;;  %7065 = vmatprep.subr.mxu0 %v8562_v0  ;;  %v7843_v14 = vpack.c.bf16 %v4491_v12, %v4490_v56  ;;  %v7869_v9 = vpack.c.bf16 %v4537_v5, %v4536_v4  ;;  %v4775_v56 = vld [vmem:[#allocation8 + $0x1450] sm:$0xff]  ;;  %v4810_v5 = vld [vmem:[#allocation8 + $0x1568] sm:$0xff] }
 0x472   : > { %4333 = vmatmul.mubr.f32.vlgmr.msra.gmra.mrb[44].mxu0 %v9309_v48 }
 0x473   : > { %7066 = vmatpush3.msk.msra.mxu0 %vm434_vm3, %v4261_v49  ;;  %7067 = vmatprep.mubr.msk.f32.mxu0 %vm8565_vm10, %v8562_v0  ;;  %v4509_v49 = vld [vmem:[#allocation8 + $0x1330] sm:$0xff] }
 0x474   : > { %7828 = vmatpush3.bf16.msra.mxu1 %v7827_v40  ;;  %7854 = vmatprep.subr.bf16.mxu0 %v7853_v8  ;;  %v7867_v8 = vpack.c.bf16 %v4519_v55, %v4518_v54  ;;  %v7845_v22 = vpack.c.bf16 %v4509_v49, %v4508_v44  ;;  %v7883_v54 = vpack.c.bf16 %v4527_v25, %v4526_v47  ;;  %v4794_v44 = vld [vmem:[#allocation8 + $0x14e8] sm:$0xff]  ;;  %v4843_v49 = vrot.slane %v9291_v19, 2  ;;  %v4781_v25 = vld [vmem:[#allocation8 + $0x1480] sm:$0xff] }
 0x475   : > { %7830 = vmatprep.subr.bf16.mxu1 %v7829_v13  ;;  %v4521_v13 = vld [vmem:[#allocation8 + $0x1390] sm:$0xff]  ;;  %v7919_v55 = vpack.c.bf16 %v4808_v27, %v4807_v53 }
 0x476   : > { %7068 = vmatmul.mubr.msk.f32.vlgmr.msra.gmra.mrb[46].mxu0 %vm2019_vm11, %v9317_v30  ;;  %v6230_v10 = vpop.f32.mrb[24].mxu1  ;;  %v7871_v29 = vpack.c.bf16 %v4521_v13, %v4520_v11 }
 0x477   : > { %7856 = vmatpush3.bf16.msra.mxu0 %v7855_v32  ;;  %4697 = vmatprep.mubr.f32.mxu0 %v4552_v24  ;;  %v6231_v37 = vpop.f32.mrb[25].mxu1  ;;  %v4539_v32 = vld [vmem:[#allocation8 + $0x1420] sm:$0xff]  ;;  %v4522_v24 = vld [vmem:[#allocation8 + $0x1398] sm:$0xff] }
 0x478   : > { %7832 = vmatpush3.bf16.msra.mxu1 %v7831_v61  ;;  %v6232_v36 = vadd.f32 %v6231_v37, %v6230_v10  ;;  %7858 = vmatprep.subr.bf16.mxu0 %v7857_v51  ;;  %v4510_v61 = vld [vmem:[#allocation8 + $0x1338] sm:$0xff]  ;;  %v4511_v51 = vld [vmem:[#allocation8 + $0x1340] sm:$0xff]  ;;  %v7873_v39 = vpack.c.bf16 %v4539_v32, %v4538_v2  ;;  %v4541_v10 = vld [vmem:[#allocation8 + $0x1430] sm:$0xff]  ;;  %v4841_v2 = vrot.slane %v9297_v34, 2 }
 0x479   : > { %7834 = vmatprep.subr.bf16.mxu1 %v7833_v20  ;;  %v6195_v46 = vpop.f32.mrb[26].mxu0  ;;  %v4523_v20 = vld [vmem:[#allocation8 + $0x13a0] sm:$0xff]  ;;  %v7849_v23 = vpack.c.bf16 %v4511_v51, %v4510_v61  ;;  %v7877_v37 = vpack.c.bf16 %v4541_v10, %v4540_v57  ;;  %v4812_v61 = vld [vmem:[#allocation8 + $0x1578] sm:$0xff]  ;;  %v4795_v51 = vld [vmem:[#allocation8 + $0x14f0] sm:$0xff] }
 0x47a   : > { %v6196_v33 = vpop.f32.mrb[27].mxu0  ;;  %v7875_v60 = vpack.c.bf16 %v4523_v20, %v4522_v24  ;;  %v4830_v24 = vld [vmem:[#allocation8 + $0x1608] sm:$0xff]  ;;  %v4779_v10 = vld [vmem:[#allocation8 + $0x1470] sm:$0xff] }
 0x47b   : > { %7860 = vmatpush3.bf16.msra.mxu0 %v7859_v38  ;;  %v6197_v7 = vadd.f32 %v6196_v33, %v6195_v46  ;;  %v4524_v38 = vld [vmem:[#allocation8 + $0x13a8] sm:$0xff]  ;;  %v7917_v33 = vpack.c.bf16 %v4824_v45, %v4823_v52  ;;  %v4831_v52 = vld [vmem:[#allocation8 + $0x1610] sm:$0xff]  ;;  %v4832_v45 = vld [vmem:[#allocation8 + $0x1618] sm:$0xff] }
 0x47c   : > { %7836 = vmatpush3.bf16.msra.mxu1 %v7835_v41  ;;  %7862 = vmatprep.subr.bf16.mxu0 %v7861_v42  ;;  %v4542_v41 = vld [vmem:[#allocation8 + $0x1438] sm:$0xff]  ;;  %v4543_v42 = vld [vmem:[#allocation8 + $0x1440] sm:$0xff]  ;;  %v4544_v46 = vld [vmem:[#allocation8 + $0x1448] sm:$0x7f]  ;;  %v7933_v27 = vpack.c.bf16 %v4832_v45, %v4831_v52 }
 0x47d   : > { %7838 = vmatprep.subr.bf16.mxu1 %v7837_v43  ;;  %v2667_v59 = vadd.f32 %v6232_v36, %v6197_v7  ;;  %v2736_v63 = vpop.f32.mrb[28].mxu0  ;;  %v4525_v36 = vld [vmem:[#allocation8 + $0x13b0] sm:$0xff]  ;;  %v7881_v43 = vpack.c.bf16 %v4543_v42, %v4542_v41  ;;  %v4798_v41 = vld [vmem:[#allocation8 + $0x1508] sm:$0xff] }
 0x47e   : > { %v7039_v6 = vpop.f32.mrb[29].mxu0  ;;  %v7879_v35 = vpack.c.bf16 %v4525_v36, %v4524_v38  ;;  %v4791_v7 = vld [vmem:[#allocation8 + $0x14d0] sm:$0xff]  ;;  %v4814_v38 = vld [vmem:[#allocation8 + $0x1588] sm:$0xff]  ;;  %v4797_v36 = vld [vmem:[#allocation8 + $0x1500] sm:$0xff] }
 0x47f   : > { %7864 = vmatpush3.bf16.msra.mxu0 %v7863_v26  ;;  %v2737_v40 = vadd.f32 %v2736_v63, %v2667_v59  ;;  %v4792_v26 = vld [vmem:[#allocation8 + $0x14d8] sm:$0xff]  ;;  %v4809_v63 = vld [vmem:[#allocation8 + $0x1560] sm:$0xff]  ;;  %v7897_v47 = vpack.c.bf16 %v4798_v41, %v4797_v36  ;;  %v4806_v36 = vld [vmem:[#allocation8 + $0x1548] sm:$0xff] }
 0x480   : > { %7840 = vmatpush3.bf16.msra.mxu1 %v7839_v1  ;;  %7866 = vmatprep.subr.bf16.mxu0 %v7865_v58  ;;  %v4825_v1 = vld [vmem:[#allocation8 + $0x15e0] sm:$0xff]  ;;  %v4826_v58 = vld [vmem:[#allocation8 + $0x15e8] sm:$0xff]  ;;  %v4776_v59 = vld [vmem:[#allocation8 + $0x1458] sm:$0xff]  ;;  %v7885_v12 = vpack.c.bf16 %v4792_v26, %v4791_v7  ;;  %v7923_v11 = vpack.c.bf16 %v4810_v5, %v4809_v63 }
 0x481   : > { %v9323_v18 = vadd.f32 %v2737_v40, %v9301_v50  ;;  %7842 = vmatprep.subr.bf16.mxu1 %v7841_v3  ;;  %v4495_v50 = vld [vmem:[#allocation8 + $0x12c0] sm:$0xff]  ;;  %v4553_v3 = vrot.slane %v9317_v30, 1  ;;  %v7921_v4 = vpack.c.bf16 %v4826_v58, %v4825_v1  ;;  %v4827_v40 = vld [vmem:[#allocation8 + $0x15f0] sm:$0xff]  ;;  %v4816_v7 = vld [vmem:[#allocation8 + $0x1598] sm:$0xff] }
 0x482   : > { %v7851_v31 = vpack.c.bf16 %v4495_v50, %v4494_v15  ;;  %v4793_v6 = vld [vmem:[#allocation8 + $0x14e0] sm:$0xff]  ;;  %v7927_v50 = vpack.c.bf16 %v4812_v61, %v4811_v28  ;;  %v4799_v26 = vld [vmem:[#allocation8 + $0x1510] sm:$0xff]  ;;  %v4800_v1 = vld [vmem:[#allocation8 + $0x1518] sm:$0xff] }
 0x483   : > { %7868 = vmatpush3.bf16.msra.mxu0 %v7867_v8  ;;  %v4828_v8 = vld [vmem:[#allocation8 + $0x15f8] sm:$0xff]  ;;  %v7889_v13 = vpack.c.bf16 %v4794_v44, %v4793_v6  ;;  %v4817_v5 = vld [vmem:[#allocation8 + $0x15a0] sm:$0xff] }
 0x484   : > { %7844 = vmatpush3.bf16.msra.mxu1 %v7843_v14  ;;  %7870 = vmatprep.subr.bf16.mxu0 %v7869_v9  ;;  %v7887_v14 = vpack.c.bf16 %v4776_v59, %v4775_v56  ;;  %v4551_v9 = vrot.slane %v9304_v62, 1  ;;  %v7925_v32 = vpack.c.bf16 %v4828_v8, %v4827_v40  ;;  %v4801_v40 = vld [vmem:[#allocation8 + $0x1520] sm:$0xff]  ;;  %v4802_v8 = vld [vmem:[#allocation8 + $0x1528] sm:$0xff]  ;;  %v5082_v41 = vld [vmem:[#allocation8 + $0x16d8] sm:$0xff] }
 0x485   : > { %7846 = vmatprep.subr.bf16.mxu1 %v7845_v22  ;;  %v4778_v22 = vld [vmem:[#allocation8 + $0x1468] sm:$0xff]  ;;  %v4785_v28 = vld [vmem:[#allocation8 + $0x14a0] sm:$0xff] }
 0x486   : > { %v7891_v15 = vpack.c.bf16 %v4778_v22, %v4777_v16  ;;  %v7905_v22 = vpack.c.bf16 %v4802_v8, %v4801_v40  ;;  %v5071_v8 = vld [vmem:[#allocation8 + $0x1680] sm:$0xff] }
 0x487   : > { %7872 = vmatpush3.bf16.msra.mxu0 %v7871_v29  ;;  %v4796_v29 = vld [vmem:[#allocation8 + $0x14f8] sm:$0xff] }
 0x488   : > { %7848 = vmatpush3.bf16.msra.mxu1 %v7847_v21  ;;  %7874 = vmatprep.subr.bf16.mxu0 %v7873_v39  ;;  %v4829_v39 = vld [vmem:[#allocation8 + $0x1600] sm:$0xff]  ;;  %v7893_v57 = vpack.c.bf16 %v4796_v29, %v4795_v51  ;;  %v4820_v51 = vld [vmem:[#allocation8 + $0x15b8] sm:$0xff]  ;;  %v4803_v29 = vld [vmem:[#allocation8 + $0x1530] sm:$0xff] }
 0x489   : > { %7850 = vmatprep.subr.bf16.mxu1 %v7849_v23 }
 0x48b   : > { %7876 = vmatpush3.bf16.msra.mxu0 %v7875_v60  ;;  %v4780_v60 = vld [vmem:[#allocation8 + $0x1478] sm:$0xff] }
 0x48c   : > { %7852 = vmatpush3.bf16.msra.mxu1 %v7851_v31  ;;  %7878 = vmatprep.subr.bf16.mxu0 %v7877_v37  ;;  %v4813_v31 = vld [vmem:[#allocation8 + $0x1580] sm:$0xff]  ;;  %v7929_v37 = vpack.c.bf16 %v4830_v24, %v4829_v39 }
 0x48d   : > { %7070 = vmatprep.subr.mxu1 %v8562_v0  ;;  %v4837_v24 = vld [vmem:[#allocation8 + $0x1640] sm:$0xff] }
 0x48f   : > { %4628 = vmatmul.mubr.f32.vlgmr.msra.gmra.mrb[44].mxu1 %v4549_v17  ;;  %7880 = vmatpush3.bf16.msra.mxu0 %v7879_v35  ;;  %v4782_v17 = vld [vmem:[#allocation8 + $0x1488] sm:$0xff] }
 0x490   : > { %7071 = vmatpush3.msk.msra.mxu1 %vm434_vm3, %v4544_v46  ;;  %7882 = vmatprep.subr.bf16.mxu0 %v7881_v43  ;;  %v7895_v46 = vpack.c.bf16 %v4780_v60, %v4779_v10  ;;  %v7931_v43 = vpack.c.bf16 %v4814_v38, %v4813_v31  ;;  %v7899_v59 = vpack.c.bf16 %v4782_v17, %v4781_v25  ;;  %v4788_v10 = vld [vmem:[#allocation8 + $0x14b8] sm:$0xff]  ;;  %v4821_v60 = vld [vmem:[#allocation8 + $0x15c0] sm:$0xff]  ;;  %v5084_v17 = vld [vmem:[#allocation8 + $0x16e8] sm:$0xff] }
 0x491   : > { %7072 = vmatprep.mubr.msk.f32.mxu1 %vm8565_vm10, %v8562_v0  ;;  %7918 = vmatprep.subr.bf16.mxu1 %v7917_v33  ;;  %v4815_v33 = vld [vmem:[#allocation8 + $0x1590] sm:$0xff]  ;;  %v4805_v38 = vld [vmem:[#allocation8 + $0x1540] sm:$0xff] }
 0x492   : > { %v7935_v63 = vpack.c.bf16 %v4816_v7, %v4815_v33  ;;  %v7913_v45 = vpack.c.bf16 %v4806_v36, %v4805_v38  ;;  %v5067_v25 = vld [vmem:[#allocation8 + $0x1660] sm:$0xff]  ;;  %v5085_v33 = vld [vmem:[#allocation8 + $0x16f0] sm:$0xff]  ;;  %v5068_v7 = vld [vmem:[#allocation8 + $0x1668] sm:$0xff] }
 0x493   : > { %7884 = vmatpush3.bf16.msra.mxu0 %v7883_v54  ;;  %7073 = vmatmul.mubr.msk.f32.vlgmr.msra.gmra.mrb[46].mxu1 %vm2019_vm11, %v4553_v3  ;;  %v4833_v54 = vld [vmem:[#allocation8 + $0x1620] sm:$0xff]  ;;  %v7901_v3 = vpack.c.bf16 %v4800_v1, %v4799_v26  ;;  %v4842_v26 = vrot.slane %v9304_v62, 2  ;;  %v7953_v1 = vpack.c.bf16 %v5085_v33, %v5084_v17  ;;  %v5102_v36 = vld [vmem:[#allocation8 + $0x1778] sm:$0xff] }
 0x494   : > { %7920 = vmatpush3.bf16.msra.mxu1 %v7919_v55  ;;  %4988 = vmatprep.mubr.f32.mxu1 %v4843_v49  ;;  %v4834_v55 = vld [vmem:[#allocation8 + $0x1628] sm:$0xff] }
 0x495   : > { %7886 = vmatprep.subr.bf16.mxu0 %v7885_v12  ;;  %7922 = vmatprep.subr.bf16.mxu1 %v7921_v4  ;;  %v4783_v12 = vld [vmem:[#allocation8 + $0x1490] sm:$0xff]  ;;  %v4784_v4 = vld [vmem:[#allocation8 + $0x1498] sm:$0xff]  ;;  %v7937_v44 = vpack.c.bf16 %v4834_v55, %v4833_v54  ;;  %v4818_v49 = vld [vmem:[#allocation8 + $0x15a8] sm:$0xff] }
 0x496   : > { %4698 = vmatmul.mubr.f32.vlgmr.msra.gmra.mrb[48].mxu0 %v4551_v9  ;;  %v6267_v21 = vpop.f32.mrb[26].mxu1  ;;  %v4836_v9 = vld [vmem:[#allocation8 + $0x1638] sm:$0xff]  ;;  %v7939_v16 = vpack.c.bf16 %v4818_v49, %v4817_v5  ;;  %v5115_v55 = vld [vmem:[#allocation8 + $0x17e0] sm:$0xff] }
 0x497   : > { %7888 = vmatpush3.bf16.msra.mxu0 %v7887_v14  ;;  %4918 = vmatprep.mubr.f32.mxu0 %v4841_v2  ;;  %v6268_v20 = vpop.f32.mrb[27].mxu1  ;;  %v4835_v14 = vld [vmem:[#allocation8 + $0x1630] sm:$0xff]  ;;  %v4786_v2 = vld [vmem:[#allocation8 + $0x14a8] sm:$0xff]  ;;  %v5114_v54 = vld [vmem:[#allocation8 + $0x17d8] sm:$0xff] }
 0x498   : > { %7924 = vmatpush3.bf16.msra.mxu1 %v7923_v11  ;;  %v6269_v23 = vadd.f32 %v6268_v20, %v6267_v21  ;;  %7890 = vmatprep.subr.bf16.mxu0 %v7889_v13  ;;  %v7903_v13 = vpack.c.bf16 %v4784_v4, %v4783_v12  ;;  %v7941_v61 = vpack.c.bf16 %v4836_v9, %v4835_v14  ;;  %v4804_v21 = vld [vmem:[#allocation8 + $0x1538] sm:$0xff]  ;;  %v4838_v20 = vld [vmem:[#allocation8 + $0x1648] sm:$0xff]  ;;  %v4840_v12 = vrot.slane %v9309_v48, 2  ;;  %v5117_v9 = vld [vmem:[#allocation8 + $0x17f0] sm:$0xff] }
 0x499   : > { %7926 = vmatprep.subr.bf16.mxu1 %v7925_v32  ;;  %v4819_v32 = vld [vmem:[#allocation8 + $0x15b0] sm:$0xff]  ;;  %v7945_v31 = vpack.c.bf16 %v4838_v20, %v4837_v24  ;;  %v7981_v5 = vpack.c.bf16 %v5115_v55, %v5114_v54  ;;  %v5070_v49 = vld [vmem:[#allocation8 + $0x1678] sm:$0xff]  ;;  %v5116_v14 = vld [vmem:[#allocation8 + $0x17e8] sm:$0xff] }
 0x49a   : > { %v3027_v42 = vpop.f32.mrb[28].mxu1  ;;  %v5073_v24 = vld [vmem:[#allocation8 + $0x1690] sm:$0xff]  ;;  %v5118_v20 = vld [vmem:[#allocation8 + $0x17f8] sm:$0xff] }
 0x49b   : > { %7892 = vmatpush3.bf16.msra.mxu0 %v7891_v15  ;;  %v7044_v35 = vpop.f32.mrb[29].mxu1  ;;  %v7907_v15 = vpack.c.bf16 %v4786_v2, %v4785_v28  ;;  %v7959_v28 = vpack.c.bf16 %v5071_v8, %v5070_v49  ;;  %v7985_v2 = vpack.c.bf16 %v5117_v9, %v5116_v14  ;;  %v5107_v8 = vld [vmem:[#allocation8 + $0x17a0] sm:$0xff]  ;;  %v5078_v14 = vld [vmem:[#allocation8 + $0x16b8] sm:$0xff] }
 0x49c   : > { %7928 = vmatpush3.bf16.msra.mxu1 %v7927_v50  ;;  %7894 = vmatprep.subr.bf16.mxu0 %v7893_v57  ;;  %v7909_v50 = vpack.c.bf16 %v4804_v21, %v4803_v29  ;;  %v4787_v57 = vld [vmem:[#allocation8 + $0x14b0] sm:$0xff]  ;;  %v4789_v35 = vld [vmem:[#allocation8 + $0x14c0] sm:$0xff]  ;;  %v5134_v29 = vrot.slane %v9291_v19, 3 }
 0x49d   : > { %7930 = vmatprep.subr.bf16.mxu1 %v7929_v37  ;;  %v6302_v53 = vpop.f32.mrb[30].mxu0  ;;  %v4822_v37 = vld [vmem:[#allocation8 + $0x15c8] sm:$0xff] }
 0x49e   : > { %v6303_v58 = vpop.f32.mrb[31].mxu0  ;;  %v7947_v52 = vpack.c.bf16 %v4822_v37, %v4821_v60 }
 0x49f   : > { %7896 = vmatpush3.bf16.msra.mxu0 %v7895_v46  ;;  %v6304_v56 = vadd.f32 %v6303_v58, %v6302_v53  ;;  %v4790_v46 = vld [vmem:[#allocation8 + $0x14c8] sm:$0xff]  ;;  %v5069_v58 = vld [vmem:[#allocation8 + $0x1670] sm:$0xff] }
 0x4a0   : > { %7932 = vmatpush3.bf16.msra.mxu1 %v7931_v43  ;;  %7898 = vmatprep.subr.bf16.mxu0 %v7897_v47  ;;  %v5066_v47 = vld [vmem:[#allocation8 + $0x1658] sm:$0xff]  ;;  %v7915_v53 = vpack.c.bf16 %v4790_v46, %v4789_v35  ;;  %v7955_v4 = vpack.c.bf16 %v5069_v58, %v5068_v7  ;;  %v5120_v35 = vld [vmem:[#allocation8 + $0x1808] sm:$0xff]  ;;  %v5121_v46 = vld [vmem:[#allocation8 + $0x1810] sm:$0xff] }
 0x4a1   : > { %v2958_v6 = vadd.f32 %v6304_v56, %v6269_v23  ;;  %7934 = vmatprep.subr.bf16.mxu1 %v7933_v27  ;;  %v7943_v23 = vpack.c.bf16 %v4820_v51, %v4819_v32  ;;  %v7951_v27 = vpack.c.bf16 %v5067_v25, %v5066_v47  ;;  %v5132_v56 = vrot.slane %v9297_v34, 3  ;;  %v5100_v32 = vld [vmem:[#allocation8 + $0x1768] sm:$0xff]  ;;  %v5093_v25 = vld [vmem:[#allocation8 + $0x1730] sm:$0xff] }
 0x4a2   : > { %v5072_v51 = vld [vmem:[#allocation8 + $0x1688] sm:$0xff] }
 0x4a3   : > { %v3028_v11 = vadd.f32 %v3027_v42, %v2958_v6  ;;  %7900 = vmatpush3.bf16.msra.mxu0 %v7899_v59  ;;  %v5083_v42 = vld [vmem:[#allocation8 + $0x16e0] sm:$0xff]  ;;  %v5086_v59 = vld [vmem:[#allocation8 + $0x16f8] sm:$0xff]  ;;  %v7963_v37 = vpack.c.bf16 %v5073_v24, %v5072_v51  ;;  %v5092_v47 = vld [vmem:[#allocation8 + $0x1728] sm:$0xff] }
 0x4a4   : > { %7936 = vmatpush3.bf16.msra.mxu1 %v7935_v63  ;;  %7902 = vmatprep.subr.bf16.mxu0 %v7901_v3  ;;  %v7949_v43 = vpack.c.bf16 %v5083_v42, %v5082_v41  ;;  %v5087_v63 = vld [vmem:[#allocation8 + $0x1700] sm:$0xff]  ;;  %v4839_v3 = vld [vmem:[#allocation8 + $0x1650] sm:$0x7f]  ;;  %v5098_v6 = vld [vmem:[#allocation8 + $0x1758] sm:$0xff]  ;;  %v7969_v55 = vpack.c.bf16 %v5093_v25, %v5092_v47 }
 0x4a5   : > { %7938 = vmatprep.subr.bf16.mxu1 %v7937_v44  ;;  %v9336_v39 = vadd.f32 %v3028_v11, %v9323_v18  ;;  %v7911_v18 = vpack.c.bf16 %v4788_v10, %v4787_v57  ;;  %v5099_v44 = vld [vmem:[#allocation8 + $0x1760] sm:$0xff]  ;;  %v7957_v40 = vpack.c.bf16 %v5087_v63, %v5086_v59  ;;  %v5088_v11 = vld [vmem:[#allocation8 + $0x1708] sm:$0xff]  ;;  %v5074_v42 = vld [vmem:[#allocation8 + $0x1698] sm:$0xff] }
 0x4a6   : > { %v5091_v57 = vld [vmem:[#allocation8 + $0x1720] sm:$0xff]  ;;  %v5104_v7 = vld [vmem:[#allocation8 + $0x1788] sm:$0xff]  ;;  %v5122_v59 = vld [vmem:[#allocation8 + $0x1818] sm:$0xff] }
 0x4a7   : > { %7904 = vmatpush3.bf16.msra.mxu0 %v7903_v13  ;;  %v5089_v13 = vld [vmem:[#allocation8 + $0x1710] sm:$0xff]  ;;  %v5103_v41 = vld [vmem:[#allocation8 + $0x1780] sm:$0xff]  ;;  %v5080_v24 = vld [vmem:[#allocation8 + $0x16c8] sm:$0xff] }
 0x4a8   : > { %7940 = vmatpush3.bf16.msra.mxu1 %v7939_v16  ;;  %7906 = vmatprep.subr.bf16.mxu0 %v7905_v22  ;;  %v7983_v16 = vpack.c.bf16 %v5099_v44, %v5098_v6  ;;  %v4844_v22 = vrot.slane %v9317_v30, 2  ;;  %v7961_v21 = vpack.c.bf16 %v5089_v13, %v5088_v11  ;;  %v7991_v33 = vpack.c.bf16 %v5103_v41, %v5102_v36  ;;  %v5123_v63 = vld [vmem:[#allocation8 + $0x1820] sm:$0xff]  ;;  %v5406_v41 = vld [vmem:[#allocation8 + $0x19e8] sm:$0xff] }
 0x4a9   : > { %7942 = vmatprep.subr.bf16.mxu1 %v7941_v61  ;;  %v5101_v61 = vld [vmem:[#allocation8 + $0x1770] sm:$0xff]  ;;  %v7997_v49 = vpack.c.bf16 %v5123_v63, %v5122_v59  ;;  %v5079_v13 = vld [vmem:[#allocation8 + $0x16c0] sm:$0xff]  ;;  %v5390_v25 = vld [vmem:[#allocation8 + $0x1968] sm:$0xff] }
 0x4aa   : > { %v7987_v60 = vpack.c.bf16 %v5101_v61, %v5100_v32  ;;  %v7975_v61 = vpack.c.bf16 %v5079_v13, %v5078_v14  ;;  %v5405_v36 = vld [vmem:[#allocation8 + $0x19e0] sm:$0xff]  ;;  %v5392_v63 = vld [vmem:[#allocation8 + $0x1978] sm:$0xff]  ;;  %v5359_v14 = vld [vmem:[#allocation8 + $0x1870] sm:$0xff] }
 0x4ab   : > { %7908 = vmatpush3.bf16.msra.mxu0 %v7907_v15  ;;  %v5119_v15 = vld [vmem:[#allocation8 + $0x1800] sm:$0xff] }
 0x4ac   : > { %7944 = vmatpush3.bf16.msra.mxu1 %v7943_v23  ;;  %7910 = vmatprep.subr.bf16.mxu0 %v7909_v50  ;;  %v5090_v50 = vld [vmem:[#allocation8 + $0x1718] sm:$0xff]  ;;  %v7989_v38 = vpack.c.bf16 %v5119_v15, %v5118_v20  ;;  %v5389_v47 = vld [vmem:[#allocation8 + $0x1960] sm:$0xff] }
 0x4ad   : > { %7946 = vmatprep.subr.bf16.mxu1 %v7945_v31  ;;  %v5126_v15 = vld [vmem:[#allocation8 + $0x1838] sm:$0xff]  ;;  %v5393_v13 = vld [vmem:[#allocation8 + $0x1980] sm:$0xff] }
 0x4af   : > { %7912 = vmatpush3.bf16.msra.mxu0 %v7911_v18 }
 0x4b0   : > { %7948 = vmatpush3.bf16.msra.mxu1 %v7947_v52  ;;  %7914 = vmatprep.subr.bf16.mxu0 %v7913_v45  ;;  %v7965_v52 = vpack.c.bf16 %v5091_v57, %v5090_v50  ;;  %v5075_v45 = vld [vmem:[#allocation8 + $0x16a0] sm:$0xff] }
 0x4b1   : > { %7950 = vmatprep.subr.bf16.mxu1 %v7949_v43 }
 0x4b3   : > { %4989 = vmatmul.mubr.f32.vlgmr.msra.gmra.mrb[48].mxu1 %v4842_v26  ;;  %7916 = vmatpush3.bf16.msra.mxu0 %v7915_v53  ;;  %v7967_v53 = vpack.c.bf16 %v5075_v45, %v5074_v42  ;;  %v5105_v26 = vld [vmem:[#allocation8 + $0x1790] sm:$0xff]  ;;  %v5112_v45 = vld [vmem:[#allocation8 + $0x17c8] sm:$0xff] }
 0x4b4   : > { %7952 = vmatpush3.bf16.msra.mxu1 %v7951_v27  ;;  %5209 = vmatprep.mubr.f32.mxu1 %v5132_v56  ;;  %v7993_v27 = vpack.c.bf16 %v5121_v46, %v5120_v35  ;;  %v5077_v56 = vld [vmem:[#allocation8 + $0x16b0] sm:$0xff]  ;;  %v7995_v6 = vpack.c.bf16 %v5105_v26, %v5104_v7  ;;  %v5131_v46 = vrot.slane %v9309_v48, 3  ;;  %v8047_v26 = vpack.c.bf16 %v5390_v25, %v5389_v47  ;;  %v5398_v47 = vld [vmem:[#allocation8 + $0x19a8] sm:$0xff]  ;;  %v5381_v25 = vld [vmem:[#allocation8 + $0x1920] sm:$0xff] }
 0x4b5   : > { %7954 = vmatprep.subr.bf16.mxu1 %v7953_v1  ;;  %7075 = vmatprep.subr.mxu0 %v8562_v0  ;;  %v5076_v1 = vld [vmem:[#allocation8 + $0x16a8] sm:$0xff]  ;;  %v5113_v35 = vld [vmem:[#allocation8 + $0x17d0] sm:$0xff] }
 0x4b6   : > { %4919 = vmatmul.mubr.f32.vlgmr.msra.gmra.mrb[50].mxu0 %v4840_v12  ;;  %v5094_v12 = vld [vmem:[#allocation8 + $0x1738] sm:$0xff]  ;;  %v7971_v44 = vpack.c.bf16 %v5077_v56, %v5076_v1  ;;  %v8011_v7 = vpack.c.bf16 %v5113_v35, %v5112_v45  ;;  %v5357_v1 = vld [vmem:[#allocation8 + $0x1860] sm:$0xff] }
 0x4b7   : > { %7076 = vmatpush3.msk.msra.mxu0 %vm434_vm3, %v4839_v3  ;;  %7077 = vmatprep.mubr.msk.f32.mxu0 %vm8565_vm10, %v8562_v0  ;;  %v5364_v45 = vld [vmem:[#allocation8 + $0x1898] sm:$0xff]  ;;  %v5397_v35 = vld [vmem:[#allocation8 + $0x19a0] sm:$0xff] }
 0x4b8   : > { %7956 = vmatpush3.bf16.msra.mxu1 %v7955_v4  ;;  %7982 = vmatprep.subr.bf16.mxu0 %v7981_v5  ;;  %v5095_v4 = vld [vmem:[#allocation8 + $0x1740] sm:$0xff] }
 0x4b9   : > { %7958 = vmatprep.subr.bf16.mxu1 %v7957_v40  ;;  %v5106_v40 = vld [vmem:[#allocation8 + $0x1798] sm:$0xff]  ;;  %v7973_v11 = vpack.c.bf16 %v5095_v4, %v5094_v12  ;;  %v5425_v4 = vrot.slane %v9291_v19, 4 }
 0x4ba   : > { %7078 = vmatmul.mubr.msk.f32.vlgmr.msra.gmra.mrb[52].mxu0 %vm2019_vm11, %v4844_v22  ;;  %v6374_v23 = vpop.f32.mrb[30].mxu1  ;;  %v5125_v22 = vld [vmem:[#allocation8 + $0x1830] sm:$0xff]  ;;  %v7999_v32 = vpack.c.bf16 %v5107_v8, %v5106_v40  ;;  %v5376_v12 = vld [vmem:[#allocation8 + $0x18f8] sm:$0xff] }
 0x4bb   : > { %7984 = vmatpush3.bf16.msra.mxu0 %v7983_v16  ;;  %5279 = vmatprep.mubr.f32.mxu0 %v5134_v29  ;;  %v6375_v10 = vpop.f32.mrb[31].mxu1  ;;  %v5124_v16 = vld [vmem:[#allocation8 + $0x1828] sm:$0xff] }
 0x4bc   : > { %7960 = vmatpush3.bf16.msra.mxu1 %v7959_v28  ;;  %v6376_v31 = vadd.f32 %v6375_v10, %v6374_v23  ;;  %7986 = vmatprep.subr.bf16.mxu0 %v7985_v2  ;;  %v5096_v28 = vld [vmem:[#allocation8 + $0x1748] sm:$0xff]  ;;  %v5097_v2 = vld [vmem:[#allocation8 + $0x1750] sm:$0xff]  ;;  %v8001_v51 = vpack.c.bf16 %v5125_v22, %v5124_v16  ;;  %v5127_v23 = vld [vmem:[#allocation8 + $0x1840] sm:$0xff]  ;;  %v5423_v16 = vrot.slane %v9297_v34, 4 }
 0x4bd   : > { %7962 = vmatprep.subr.bf16.mxu1 %v7961_v21  ;;  %v6339_v18 = vpop.f32.mrb[32].mxu0  ;;  %v5108_v29 = vld [vmem:[#allocation8 + $0x17a8] sm:$0xff]  ;;  %v5109_v21 = vld [vmem:[#allocation8 + $0x17b0] sm:$0xff]  ;;  %v7977_v20 = vpack.c.bf16 %v5097_v2, %v5096_v28  ;;  %v8005_v10 = vpack.c.bf16 %v5127_v23, %v5126_v15  ;;  %v5377_v28 = vld [vmem:[#allocation8 + $0x1900] sm:$0xff] }
 0x4be   : > { %v6340_v43 = vpop.f32.mrb[33].mxu0  ;;  %v8003_v50 = vpack.c.bf16 %v5109_v21, %v5108_v29  ;;  %v5394_v22 = vld [vmem:[#allocation8 + $0x1988] sm:$0xff]  ;;  %v5361_v15 = vld [vmem:[#allocation8 + $0x1880] sm:$0xff]  ;;  %v5395_v34 = vld [vmem:[#allocation8 + $0x1990] sm:$0xff] }
 0x4bf   : > { %7988 = vmatpush3.bf16.msra.mxu0 %v7987_v60  ;;  %v6341_v17 = vadd.f32 %v6340_v43, %v6339_v18  ;;  %v5110_v60 = vld [vmem:[#allocation8 + $0x17b8] sm:$0xff]  ;;  %v8045_v43 = vpack.c.bf16 %v5406_v41, %v5405_v36  ;;  %v5378_v2 = vld [vmem:[#allocation8 + $0x1908] sm:$0xff] }
 0x4c0   : > { %7964 = vmatpush3.bf16.msra.mxu1 %v7963_v37  ;;  %7990 = vmatprep.subr.bf16.mxu0 %v7989_v38  ;;  %v5128_v37 = vld [vmem:[#allocation8 + $0x1848] sm:$0xff]  ;;  %v5129_v38 = vld [vmem:[#allocation8 + $0x1850] sm:$0xff]  ;;  %v5130_v18 = vld [vmem:[#allocation8 + $0x1858] sm:$0x7f] }
 0x4c1   : > { %7966 = vmatprep.subr.bf16.mxu1 %v7965_v52  ;;  %v3249_v58 = vadd.f32 %v6376_v31, %v6341_v17  ;;  %v3318_v54 = vpop.f32.mrb[34].mxu0  ;;  %v5111_v31 = vld [vmem:[#allocation8 + $0x17c0] sm:$0xff]  ;;  %v8009_v52 = vpack.c.bf16 %v5129_v38, %v5128_v37  ;;  %v5362_v23 = vld [vmem:[#allocation8 + $0x1888] sm:$0xff] }
 0x4c2   : > { %v7049_v3 = vpop.f32.mrb[35].mxu0  ;;  %v8007_v42 = vpack.c.bf16 %v5111_v31, %v5110_v60  ;;  %v5373_v17 = vld [vmem:[#allocation8 + $0x18e0] sm:$0xff]  ;;  %v5380_v60 = vld [vmem:[#allocation8 + $0x1918] sm:$0xff]  ;;  %v5414_v38 = vld [vmem:[#allocation8 + $0x1a28] sm:$0xff]  ;;  %v8023_v41 = vpack.c.bf16 %v5362_v23, %v5361_v15 }
 0x4c3   : > { %7992 = vmatpush3.bf16.msra.mxu0 %v7991_v33  ;;  %v3319_v5 = vadd.f32 %v3318_v54, %v3249_v58  ;;  %v5374_v33 = vld [vmem:[#allocation8 + $0x18e8] sm:$0xff]  ;;  %v5391_v54 = vld [vmem:[#allocation8 + $0x1970] sm:$0xff]  ;;  %v5413_v37 = vld [vmem:[#allocation8 + $0x1a20] sm:$0xff] }
 0x4c4   : > { %7968 = vmatpush3.bf16.msra.mxu1 %v7967_v53  ;;  %7994 = vmatprep.subr.bf16.mxu0 %v7993_v27  ;;  %v5407_v53 = vld [vmem:[#allocation8 + $0x19f0] sm:$0xff]  ;;  %v5408_v27 = vld [vmem:[#allocation8 + $0x19f8] sm:$0xff]  ;;  %v5358_v58 = vld [vmem:[#allocation8 + $0x1868] sm:$0xff]  ;;  %v8013_v56 = vpack.c.bf16 %v5374_v33, %v5373_v17  ;;  %v8051_v40 = vpack.c.bf16 %v5392_v63, %v5391_v54 }
 0x4c5   : > { %v9349_v9 = vadd.f32 %v3319_v5, %v9336_v39  ;;  %7970 = vmatprep.subr.bf16.mxu1 %v7969_v55  ;;  %v5081_v39 = vld [vmem:[#allocation8 + $0x16d0] sm:$0xff]  ;;  %v5135_v55 = vrot.slane %v9317_v30, 3  ;;  %v8049_v59 = vpack.c.bf16 %v5408_v27, %v5407_v53  ;;  %v5409_v5 = vld [vmem:[#allocation8 + $0x1a00] sm:$0xff]  ;;  %v5382_v17 = vld [vmem:[#allocation8 + $0x1928] sm:$0xff] }
 0x4c6   : > { %v7979_v57 = vpack.c.bf16 %v5081_v39, %v5080_v24  ;;  %v5375_v3 = vld [vmem:[#allocation8 + $0x18f0] sm:$0xff]  ;;  %v8021_v39 = vpack.c.bf16 %v5378_v2, %v5377_v28  ;;  %v5416_v27 = vld [vmem:[#allocation8 + $0x1a38] sm:$0xff]  ;;  %v5365_v54 = vld [vmem:[#allocation8 + $0x18a0] sm:$0xff] }
 0x4c7   : > { %7996 = vmatpush3.bf16.msra.mxu0 %v7995_v6  ;;  %v5410_v6 = vld [vmem:[#allocation8 + $0x1a08] sm:$0xff]  ;;  %v8017_v8 = vpack.c.bf16 %v5376_v12, %v5375_v3  ;;  %v5415_v53 = vld [vmem:[#allocation8 + $0x1a30] sm:$0xff]  ;;  %v5400_v3 = vld [vmem:[#allocation8 + $0x19b8] sm:$0xff] }
 0x4c8   : > { %7972 = vmatpush3.bf16.msra.mxu1 %v7971_v44  ;;  %7998 = vmatprep.subr.bf16.mxu0 %v7997_v49  ;;  %v8015_v44 = vpack.c.bf16 %v5358_v58, %v5357_v1  ;;  %v5133_v49 = vrot.slane %v9304_v62, 3  ;;  %v8053_v19 = vpack.c.bf16 %v5410_v6, %v5409_v5  ;;  %v8063_v1 = vpack.c.bf16 %v5398_v47, %v5397_v35  ;;  %v5383_v12 = vld [vmem:[#allocation8 + $0x1930] sm:$0xff]  ;;  %v5417_v5 = vld [vmem:[#allocation8 + $0x1a40] sm:$0xff]  ;;  %v5418_v6 = vld [vmem:[#allocation8 + $0x1a48] sm:$0xff] }
 0x4c9   : > { %7974 = vmatprep.subr.bf16.mxu1 %v7973_v11  ;;  %v5360_v11 = vld [vmem:[#allocation8 + $0x1878] sm:$0xff]  ;;  %v8029_v58 = vpack.c.bf16 %v5382_v17, %v5381_v25  ;;  %v8065_v63 = vpack.c.bf16 %v5416_v27, %v5415_v53  ;;  %v5386_v28 = vld [vmem:[#allocation8 + $0x1948] sm:$0xff] }
 0x4ca   : > { %v8019_v21 = vpack.c.bf16 %v5360_v11, %v5359_v14  ;;  %v5367_v14 = vld [vmem:[#allocation8 + $0x18b0] sm:$0xff]  ;;  %v5368_v11 = vld [vmem:[#allocation8 + $0x18b8] sm:$0xff] }
 0x4cb   : > { %8000 = vmatpush3.bf16.msra.mxu0 %v7999_v32  ;;  %v5404_v23 = vld [vmem:[#allocation8 + $0x19d8] sm:$0xff] }
 0x4cc   : > { %7976 = vmatpush3.bf16.msra.mxu1 %v7975_v61  ;;  %8002 = vmatprep.subr.bf16.mxu0 %v8001_v51  ;;  %v5411_v61 = vld [vmem:[#allocation8 + $0x1a10] sm:$0xff]  ;;  %v5412_v51 = vld [vmem:[#allocation8 + $0x1a18] sm:$0xff] }
 0x4cd   : > { %7978 = vmatprep.subr.bf16.mxu1 %v7977_v20  ;;  %v8055_v20 = vpack.c.bf16 %v5394_v22, %v5393_v13  ;;  %v5401_v13 = vld [vmem:[#allocation8 + $0x19c0] sm:$0xff] }
 0x4ce   : > { %v5385_v22 = vld [vmem:[#allocation8 + $0x1940] sm:$0xff] }
 0x4cf   : > { %8004 = vmatpush3.bf16.msra.mxu0 %v8003_v50  ;;  %v8057_v50 = vpack.c.bf16 %v5412_v51, %v5411_v61  ;;  %v5420_v61 = vld [vmem:[#allocation8 + $0x1a58] sm:$0xff]  ;;  %v8035_v51 = vpack.c.bf16 %v5368_v11, %v5367_v14 }
 0x4d0   : > { %7980 = vmatpush3.bf16.msra.mxu1 %v7979_v57  ;;  %8006 = vmatprep.subr.bf16.mxu0 %v8005_v10  ;;  %v5396_v57 = vld [vmem:[#allocation8 + $0x1998] sm:$0xff]  ;;  %v5379_v10 = vld [vmem:[#allocation8 + $0x1910] sm:$0xff] }
 0x4d1   : > { %7080 = vmatprep.subr.mxu1 %v8562_v0 }
 0x4d3   : > { %5210 = vmatmul.mubr.f32.vlgmr.msra.gmra.mrb[50].mxu1 %v5131_v46  ;;  %8008 = vmatpush3.bf16.msra.mxu0 %v8007_v42  ;;  %v8059_v42 = vpack.c.bf16 %v5396_v57, %v5395_v34  ;;  %v5387_v34 = vld [vmem:[#allocation8 + $0x1950] sm:$0xff] }
 0x4d4   : > { %7081 = vmatpush3.msk.msra.mxu1 %vm434_vm3, %v5130_v18  ;;  %8010 = vmatprep.subr.bf16.mxu0 %v8009_v52  ;;  %v8025_v18 = vpack.c.bf16 %v5380_v60, %v5379_v10  ;;  %v5363_v52 = vld [vmem:[#allocation8 + $0x1890] sm:$0xff] }
 0x4d5   : > { %7082 = vmatprep.mubr.msk.f32.mxu1 %vm8565_vm10, %v8562_v0  ;;  %8046 = vmatprep.subr.bf16.mxu1 %v8045_v43  ;;  %v8061_v43 = vpack.c.bf16 %v5414_v38, %v5413_v37  ;;  %v5371_v60 = vld [vmem:[#allocation8 + $0x18d0] sm:$0xff]  ;;  %v5424_v38 = vrot.slane %v9304_v62, 4 }
 0x4d7   : > { %8012 = vmatpush3.bf16.msra.mxu0 %v8011_v7  ;;  %7083 = vmatmul.mubr.msk.f32.vlgmr.msra.gmra.mrb[52].mxu1 %vm2019_vm11, %v5135_v55  ;;  %v5366_v55 = vld [vmem:[#allocation8 + $0x18a8] sm:$0xff] }
 0x4d8   : > { %8048 = vmatpush3.bf16.msra.mxu1 %v8047_v26  ;;  %5570 = vmatprep.mubr.f32.mxu1 %v5425_v4  ;;  %v8027_v26 = vpack.c.bf16 %v5364_v45, %v5363_v52  ;;  %v5384_v4 = vld [vmem:[#allocation8 + $0x1938] sm:$0xff] }
 0x4d9   : > { %8014 = vmatprep.subr.bf16.mxu0 %v8013_v56  ;;  %8050 = vmatprep.subr.bf16.mxu1 %v8049_v59  ;;  %v5399_v56 = vld [vmem:[#allocation8 + $0x19b0] sm:$0xff] }
 0x4da   : > { %5280 = vmatmul.mubr.f32.vlgmr.msra.gmra.mrb[54].mxu0 %v5133_v49  ;;  %v6411_v32 = vpop.f32.mrb[32].mxu1  ;;  %v8031_v49 = vpack.c.bf16 %v5366_v55, %v5365_v54 }
 0x4db   : > { %8016 = vmatpush3.bf16.msra.mxu0 %v8015_v44  ;;  %5500 = vmatprep.mubr.f32.mxu0 %v5423_v16  ;;  %v6412_v29 = vpop.f32.mrb[33].mxu1  ;;  %v8069_v16 = vpack.c.bf16 %v5418_v6, %v5417_v5  ;;  %v5654_v6 = vld [vmem:[%s9476_s6 + $0x20] sm:$0xff] }
 0x4dc   : > { %8052 = vmatpush3.bf16.msra.mxu1 %v8051_v40  ;;  %v6413_v24 = vadd.f32 %v6412_v29, %v6411_v32  ;;  %8018 = vmatprep.subr.bf16.mxu0 %v8017_v8  ;;  %v8067_v40 = vpack.c.bf16 %v5400_v3, %v5399_v56  ;;  %v8033_v8 = vpack.c.bf16 %v5384_v4, %v5383_v12  ;;  %v5419_v32 = vld [vmem:[#allocation8 + $0x1a50] sm:$0xff]  ;;  %v8566_v3 = vmov 0.0|0.0   ;;  %v5653_v4 = vld [vmem:[%s9476_s6 + $0x18] sm:$0xff] }
 0x4dd   : > { %8054 = vmatprep.subr.bf16.mxu1 %v8053_v19  ;;  %v5402_v19 = vld [vmem:[#allocation8 + $0x19c8] sm:$0xff]  ;;  %v8073_v15 = vpack.c.bf16 %v5420_v61, %v5419_v32 }
 0x4de   : > { %v3609_v31 = vpop.f32.mrb[34].mxu1  ;;  %v8071_v29 = vpack.c.bf16 %v5402_v19, %v5401_v13  ;;  %v5650_v56 = vld [vmem:[%s9476_s6] sm:$0xff] }
 0x4df   : > { %8020 = vmatpush3.bf16.msra.mxu0 %v8019_v21  ;;  %v7054_v36 = vpop.f32.mrb[35].mxu1  ;;  %v8037_v21 = vpack.c.bf16 %v5386_v28, %v5385_v22 }
 0x4e0   : > { %8056 = vmatpush3.bf16.msra.mxu1 %v8055_v20  ;;  %8022 = vmatprep.subr.bf16.mxu0 %v8021_v39  ;;  %v5370_v20 = vld [vmem:[#allocation8 + $0x18c8] sm:$0xff]  ;;  %v5403_v39 = vld [vmem:[#allocation8 + $0x19d0] sm:$0xff]  ;;  %v5422_v36 = vrot.slane %v9309_v48, 4 }
 0x4e1   : > { %8058 = vmatprep.subr.bf16.mxu1 %v8057_v50  ;;  %v6446_v46 = vpop.f32.mrb[36].mxu0  ;;  %v5388_v50 = vld [vmem:[#allocation8 + $0x1958] sm:$0xff] }
 0x4e2   : > { %v6447_v33 = vpop.f32.mrb[37].mxu0  ;;  %v8041_v10 = vpack.c.bf16 %v5388_v50, %v5387_v34  ;;  %v5662_v34 = vld [vmem:[%s9476_s6 + $0x60] sm:$0xff]  ;;  %v5663_v50 = vld [vmem:[%s9476_s6 + $0x68] sm:$0xff] }
 0x4e3   : > { %8024 = vmatpush3.bf16.msra.mxu0 %v8023_v41  ;;  %v6448_v7 = vadd.f32 %v6447_v33, %v6446_v46  ;;  %v5421_v41 = vld [vmem:[#allocation8 + $0x1a60] sm:$0x7f] }
 0x4e4   : > { %8060 = vmatpush3.bf16.msra.mxu1 %v8059_v42  ;;  %8026 = vmatprep.subr.bf16.mxu0 %v8025_v18  ;;  %v5426_v42 = vrot.slane %v9317_v30, 4 }
 0x4e5   : > { %v3540_v59 = vadd.f32 %v6448_v7, %v6413_v24  ;;  %8062 = vmatprep.subr.bf16.mxu1 %v8061_v43  ;;  %v5369_v24 = vld [vmem:[#allocation8 + $0x18c0] sm:$0xff] }
 0x4e6   : > { %v8039_v57 = vpack.c.bf16 %v5370_v20, %v5369_v24 }
 0x4e7   : > { %v3610_v44 = vadd.f32 %v3609_v31, %v3540_v59  ;;  %8028 = vmatpush3.bf16.msra.mxu0 %v8027_v26  ;;  %v5372_v31 = vld [vmem:[#allocation8 + $0x18d8] sm:$0xff] }
 0x4e8   : > { %8064 = vmatpush3.bf16.msra.mxu1 %v8063_v1  ;;  %8030 = vmatprep.subr.bf16.mxu0 %v8029_v58  ;;  %v8043_v37 = vpack.c.bf16 %v5372_v31, %v5371_v60  ;;  %v5651_v59 = vld [vmem:[%s9476_s6 + $0x8] sm:$0xff] }
 0x4e9   : > { %8066 = vmatprep.subr.bf16.mxu1 %v8065_v63  ;;  %v3613_v2 = vadd.f32 %v3610_v44, %v9349_v9  ;;  %v8075_v9 = vpack.c.bf16 %v5404_v23, %v5403_v39  ;;  %v5652_v63 = vld [vmem:[%s9476_s6 + $0x10] sm:$0xff]  ;;  %v8078_v12 = vpack.c.bf16 %v5651_v59, %v5650_v56  ;;  %v5655_v44 = vld [vmem:[%s9476_s6 + $0x28] sm:$0xff] }
 0x4ea   : > { %v8081_v5 = vpack.c.bf16 %v5653_v4, %v5652_v63  ;;  %v5660_v39 = vld [vmem:[%s9476_s6 + $0x50] sm:$0xff] }
 0x4eb   : > { %8032 = vmatpush3.bf16.msra.mxu0 %v8031_v49  ;;  %v8084_v49 = vpack.c.bf16 %v5655_v44, %v5654_v6 }
 0x4ec   : > { %8068 = vmatpush3.bf16.msra.mxu1 %v8067_v40  ;;  %8034 = vmatprep.subr.bf16.mxu0 %v8033_v8  ;;  %v5656_v40 = vld [vmem:[%s9476_s6 + $0x30] sm:$0xff]  ;;  %v5657_v8 = vld [vmem:[%s9476_s6 + $0x38] sm:$0xff] }
 0x4ed   : > { %8070 = vmatprep.subr.bf16.mxu1 %v8069_v16  ;;  %v8087_v14 = vpack.c.bf16 %v5657_v8, %v5656_v40 }
 0x4ef   : > { %8036 = vmatpush3.bf16.msra.mxu0 %v8035_v51 }
 0x4f0   : > { %8072 = vmatpush3.bf16.msra.mxu1 %v8071_v29  ;;  %8038 = vmatprep.subr.bf16.mxu0 %v8037_v21  ;;  %v5658_v29 = vld [vmem:[%s9476_s6 + $0x40] sm:$0xff]  ;;  %v5659_v21 = vld [vmem:[%s9476_s6 + $0x48] sm:$0xff] }
 0x4f1   : > { %8074 = vmatprep.subr.bf16.mxu1 %v8073_v15  ;;  %v8090_v20 = vpack.c.bf16 %v5659_v21, %v5658_v29  ;;  %v5661_v15 = vld [vmem:[%s9476_s6 + $0x58] sm:$0xff] }
 0x4f2   : > { %v8093_v23 = vpack.c.bf16 %v5661_v15, %v5660_v39 }
 0x4f3   : > { %8040 = vmatpush3.bf16.msra.mxu0 %v8039_v57  ;;  %v5664_v57 = vld [vmem:[%s9476_s6 + $0x70] sm:$0xff] }
 0x4f4   : > { %8076 = vmatpush3.bf16.msra.mxu1 %v8075_v9  ;;  %8042 = vmatprep.subr.bf16.mxu0 %v8041_v10  ;;  %v8096_v9 = vpack.c.bf16 %v5663_v50, %v5662_v34  ;;  %v5665_v10 = vld [vmem:[%s9476_s6 + $0x78] sm:$0xff] }
 0x4f5   : > { %8077 = vmatprep.subr.bf16.mxu1 %v8566_v3  ;;  %v8099_v60 = vpack.c.bf16 %v5665_v10, %v5664_v57 }
 0x4f7   : > { %5571 = vmatmul.mubr.f32.vlgmr.msra.gmra.mrb[54].mxu1 %v5424_v38  ;;  %8044 = vmatpush3.bf16.msra.mxu0 %v8043_v37 }
 0x4f8   : > { %7085 = vmatprep.subr.mxu0 %v8562_v0  ;;  %7122 = vmatprep.mubr.msk.f32.mxu1 %vm8565_vm10, %v8562_v0 }
 0x4f9   : > { %8079 = vmatpush3.bf16.msra.mxu1 %v8078_v12 }
 0x4fa   : > { %5501 = vmatmul.mubr.f32.vlgmr.msra.gmra.mrb[56].mxu0 %v5422_v36  ;;  %8080 = vmatprep.subr.bf16.mxu1 %v8566_v3 }
 0x4fb   : > { %7086 = vmatpush3.msk.msra.mxu0 %vm434_vm3, %v5421_v41  ;;  %7087 = vmatprep.mubr.msk.f32.mxu0 %vm8565_vm10, %v8562_v0 }
 0x4fd   : > { %8082 = vmatpush3.bf16.msra.mxu1 %v8081_v5 }
 0x4fe   : > { %7088 = vmatmul.mubr.msk.f32.vlgmr.msra.gmra.mrb[58].mxu0 %vm2019_vm11, %v5426_v42  ;;  %v6518_v62 = vpop.f32.mrb[36].mxu1  ;;  %8083 = vmatprep.subr.bf16.mxu1 %v8566_v3 }
 0x4ff   : > { %v6519_v18 = vpop.f32.mrb[37].mxu1 }
 0x500   : > { %v6520_v52 = vadd.f32 %v6519_v18, %v6518_v62 }
 0x501   : > { %v6483_v48 = vpop.f32.mrb[38].mxu0  ;;  %8085 = vmatpush3.bf16.msra.mxu1 %v8084_v49 }
 0x502   : > { %v6484_v45 = vpop.f32.mrb[39].mxu0  ;;  %8086 = vmatprep.subr.bf16.mxu1 %v8566_v3 }
 0x503   : > { %v6485_v35 = vadd.f32 %v6484_v45, %v6483_v48 }
 0x505   : > { %v3831_v46 = vadd.f32 %v6520_v52, %v6485_v35  ;;  %v3900_v43 = vpop.f32.mrb[40].mxu0  ;;  %8088 = vmatpush3.bf16.msra.mxu1 %v8087_v14 }
 0x506   : > { %v7059_v47 = vpop.f32.mrb[41].mxu0  ;;  %8089 = vmatprep.subr.bf16.mxu1 %v8566_v3 }
 0x507   : > { %v3901_v25 = vadd.f32 %v3900_v43, %v3831_v46 }
 0x509   : > { %v3904_v17 = vadd.f32 %v3901_v25, %v3613_v2  ;;  %8091 = vmatpush3.bf16.msra.mxu1 %v8090_v20 }
 0x50a   : > { %8092 = vmatprep.subr.bf16.mxu1 %v8566_v3 }
 0x50d   : > { %8094 = vmatpush3.bf16.msra.mxu1 %v8093_v23 }
 0x50e   : > { %8095 = vmatprep.subr.bf16.mxu1 %v8566_v3 }
 0x511   : > { %8097 = vmatpush3.bf16.msra.mxu1 %v8096_v9 }
 0x512   : > { %8098 = vmatprep.subr.bf16.mxu1 %v8566_v3 }
 0x515   : > { %8100 = vmatpush3.bf16.msra.mxu1 %v8099_v60 }
 0x51e   : > { %v6555_v33 = vpop.f32.mrb[38].mxu1 }
 0x51f   : > { %v6556_v53 = vpop.f32.mrb[39].mxu1 }
 0x520   : > { %v6557_v27 = vadd.f32 %v6556_v53, %v6555_v33 }
 0x522   : > { %v4191_v7 = vpop.f32.mrb[40].mxu1 }
 0x523   : > { %v7064_v0 = vpop.f32.mrb[41].mxu1 }
 0x525   : > { %v6590_v26 = vpop.f32.mrb[42].mxu0 }
 0x526   : > { %v6591_v30 = vpop.f32.mrb[43].mxu0 }
 0x527   : > { %v6592_v1 = vadd.f32 %v6591_v30, %v6590_v26 }
 0x529   : > { %v4122_v58 = vadd.f32 %v6592_v1, %v6557_v27 }
 0x52b   : > { %v4192_v54 = vadd.f32 %v4191_v7, %v4122_v58 }
 0x52d   : > { %v4195_v55 = vadd.f32 %v4192_v54, %v3904_v17 }
 0x542   : > { %v6662_v11 = vpop.f32.mrb[42].mxu1 }
 0x543   : > { %v6663_v13 = vpop.f32.mrb[43].mxu1 }
 0x544   : > { %v6664_v16 = vadd.f32 %v6663_v13, %v6662_v11 }
 0x545   : > { %v6627_v19 = vpop.f32.mrb[44].mxu0 }
 0x546   : > { %v6628_v22 = vpop.f32.mrb[45].mxu0 }
 0x547   : > { %v6629_v28 = vadd.f32 %v6628_v22, %v6627_v19 }
 0x549   : > { %v4405_v2 = vadd.f32 %v6664_v16, %v6629_v28  ;;  %v4474_v32 = vpop.f32.mrb[46].mxu0  ;;  %v5647_v16 = vld [vmem:[#allocation10] sm:$0x1] }
 0x54a   : > { %v7069_v61 = vpop.f32.mrb[47].mxu0 }
 0x54b   : > { %v4475_v51 = vadd.f32 %v4474_v32, %v4405_v2  ;;  %v5666_v2 = vld [vmem:[#allocation11] sm:$0x1] }
 0x54d   : > { %v4478_v24 = vadd.f32 %v4475_v51, %v4195_v55 }
 0x562   : > { %v6699_v31 = vpop.f32.mrb[44].mxu1 }
 0x563   : > { %v6700_v37 = vpop.f32.mrb[45].mxu1 }
 0x564   : > { %v6701_v38 = vadd.f32 %v6700_v37, %v6699_v31 }
 0x566   : > { %v4769_v36 = vpop.f32.mrb[46].mxu1 }
 0x567   : > { %v7074_v41 = vpop.f32.mrb[47].mxu1 }
 0x569   : > { %v6734_v42 = vpop.f32.mrb[48].mxu0 }
 0x56a   : > { %v6735_v62 = vpop.f32.mrb[49].mxu0 }
 0x56b   : > { %v6736_v18 = vadd.f32 %v6735_v62, %v6734_v42 }
 0x56d   : > { %v4700_v52 = vadd.f32 %v6736_v18, %v6701_v38 }
 0x56f   : > { %v4770_v48 = vadd.f32 %v4769_v36, %v4700_v52 }
 0x571   : > { %v4773_v45 = vadd.f32 %v4770_v48, %v4478_v24 }
 0x586   : > { %v6806_v35 = vpop.f32.mrb[48].mxu1 }
 0x587   : > { %v6807_v46 = vpop.f32.mrb[49].mxu1 }
 0x588   : > { %v6808_v43 = vadd.f32 %v6807_v46, %v6806_v35 }
 0x589   : > { %v6771_v47 = vpop.f32.mrb[50].mxu0 }
 0x58a   : > { %v6772_v25 = vpop.f32.mrb[51].mxu0 }
 0x58b   : > { %v6773_v17 = vadd.f32 %v6772_v25, %v6771_v47 }
 0x58d   : > { %v4991_v33 = vadd.f32 %v6808_v43, %v6773_v17  ;;  %v5060_v53 = vpop.f32.mrb[52].mxu0 }
 0x58e   : > { %v7079_v27 = vpop.f32.mrb[53].mxu0 }
 0x58f   : > { %v5061_v7 = vadd.f32 %v5060_v53, %v4991_v33 }
 0x591   : > { %v5064_v0 = vadd.f32 %v5061_v7, %v4773_v45 }
 0x5a6   : > { %v6843_v26 = vpop.f32.mrb[50].mxu1 }
 0x5a7   : > { %v6844_v30 = vpop.f32.mrb[51].mxu1 }
 0x5a8   : > { %v6845_v1 = vadd.f32 %v6844_v30, %v6843_v26 }
 0x5aa   : > { %v5351_v58 = vpop.f32.mrb[52].mxu1 }
 0x5ab   : > { %v7084_v54 = vpop.f32.mrb[53].mxu1 }
 0x5ad   : > { %v6878_v55 = vpop.f32.mrb[54].mxu0 }
 0x5ae   : > { %v6879_v56 = vpop.f32.mrb[55].mxu0 }
 0x5af   : > { %v6880_v59 = vadd.f32 %v6879_v56, %v6878_v55 }
 0x5b1   : > { %v5282_v63 = vadd.f32 %v6880_v59, %v6845_v1 }
 0x5b3   : > { %v5352_v3 = vadd.f32 %v5351_v58, %v5282_v63 }
 0x5b5   : > { %v5355_v12 = vadd.f32 %v5352_v3, %v5064_v0 }
 0x5ca   : > { %v6950_v4 = vpop.f32.mrb[54].mxu1 }
 0x5cb   : > { %v6951_v5 = vpop.f32.mrb[55].mxu1 }
 0x5cc   : > { %v6952_v6 = vadd.f32 %v6951_v5, %v6950_v4 }
 0x5cd   : > { %v6915_v44 = vpop.f32.mrb[56].mxu0 }
 0x5ce   : > { %v6916_v49 = vpop.f32.mrb[57].mxu0 }
 0x5cf   : > { %v6917_v40 = vadd.f32 %v6916_v49, %v6915_v44 }
 0x5d1   : > { %v5573_v8 = vadd.f32 %v6952_v6, %v6917_v40  ;;  %v5642_v14 = vpop.f32.mrb[58].mxu0 }
 0x5d2   : > { %v7089_v11 = vpop.f32.mrb[59].mxu0 }
 0x5d3   : > { %v5643_v13 = vadd.f32 %v5642_v14, %v5573_v8 }
 0x5d5   : > { %v5646_v19 = vadd.f32 %v5643_v13, %v5355_v12 }
 0x5d7   : > { %v5648_v22 = vadd.f32 %v5647_v16, %v5646_v19 }
 0x5d9   : > { %v5649_v28 = vmax.f32 %v5648_v22, 0.0 }
 0x5db   : > { %7123 = vmatmul.mubr.f32.vlgmr.msra.gmra.mrb[56].mxu1 %v5649_v28 }
 0x6ae   : > { %v5733_v32 = vpop.f32.mrb[56].mxu1 }
 0x6af   : > { %v5734_v61 = vadd.f32 %v5733_v32, %v5666_v2  ;;  %v7124_v51 = vpop.f32.mrb[57].mxu1 }
 0x6b1   : > { %v5738_v29 = vsel %vm5737_vm12, %v5734_v61, -inf }
 0x6b2   : > { %5739 = vmax.xlane.f32.xlu0 %v5738_v29 }
 0x73f   : > { %v5740_v21 = vpop.xlane.xlu0 %5739 }
 0x740   : > { %v5741_v24 = vsub.f32 %v5734_v61, %v5740_v21 }
 0x742   : > { %v5742_v20 = vmul.f32 1.442695, %v5741_v24 }
 0x744   : > { %8300 = vpow2.f32 %v5742_v20 }
 0x74e   : > { %v8301_v39 = vpop.eup %8300 }
 0x74f   : > { %v5744_v15 = vsel %vm5737_vm12, %v8301_v39, 0.0 }
 0x750   : > { %5745 = vadd.xlane.f32.xlu1 %v5744_v15 }
 0x7dd   : > { %v5746_v23 = vpop.xlane.xlu1 %5745 }
 0x7de   : > { %8302 = vlog2.f32 %v5746_v23 }
 0x7e8   : > { %v8303_v34 = vpop.eup %8302 }
 0x7e9   : > { %v5748_v50 = vmul.f32 0.6931472, %v8303_v34 }
 0x7eb   : > { %v5749_v57 = vsub.f32 %v5741_v24, %v5748_v50 }
 0x7ed   : > { %5750 = vst.msk [vmem:[%s379_s18] sm:$0x1] %vm5737_vm12, %v5749_v57 }
 0x7ee   : > { %8485 = shalt.err (!%p8482_p6)
}
 0x7ef   : > { %s8486_s22 = scalar_lea.hbm %s9427_s4, 16  ;;  %s8490_s10 = scalar_lea.hbm %s9478_s8, 32 }
 0x7f0   : > { %p8487_p5 = scmp.ne.s32.totalorder %s9427_s4, %s8486_s22  ;;  %p8491_p10 = scmp.lt.u32.totalorder %s9427_s4, %s9478_s8 }
 0x7f1   : > { %p8492_p2 = scmp.lt.u32.totalorder %s8490_s10, %s8486_s22  ;;  %p8494_p4 = scmp.lt.u32.totalorder %s8486_s22, %s9427_s4 }
 0x7f2   : > { %p8488_p9 = pnand %p8487_p5, %p9516_p7 }
 0x7f3   : > { %p8493_p3 = por %p8492_p2, %p8491_p10 }
 0x7f4   : > { %p8489_p12 = pneg %p8488_p9 }
 0x7f5   : > { %p8495_p8 = por %p8494_p4, %p8493_p3 }
 0x7f7   : > { %p8496_p11 = pnand %p8495_p8, %p8489_p12 }
 0x7f9   : > { %8499 = shalt.err (!%p8496_p11)
}
 0x7fa   : > { %8165 = dma.vmem_to_hbm [thread:$0]  (%p9516_p7), %s9429_s23, 16, %s9427_s4, %s5752_s29  }
 0x7fb PF: > { %s9517_s25 = sld [smem:[#allocation22_spill]]  ;;  %p8202_p13 = scmp.ge.s32.totalorder %s8550_s30, 2 }
 0x7fc   : > { %s5776_s19 = sand.u32 1, %s8538_s27  }
 0x7fd   : > { %s5777_s17 = scalar_lea.sflag [#allocation4], %s5776_s19 }
 0x801   : > { %p9518_p1 = scmp.ne.s32.totalorder %s9517_s25, 0 }
 0x803   : > { %p8187_p0 = pnand %p8202_p13, %p9518_p1 }
 0x805   : > { %8533 = dma.done.wait (!%p8187_p0), %s5777_s17, 16  }
 0x806   : > { %8535 = vsyncadd (!%p8187_p0), %s5777_s17, 4294967280  ;;  %s9519_s30 = sld [smem:[#allocation20_spill]]  ;;  %s9520_s20 = sld [smem:[#allocation19_spill]] }
 0x807   : > { %s9521_s29 = sld [smem:[#allocation21_spill]]  ;;  %s9522_s27 = smov %s8542_s28 }
 0x80c   : > { %p22_p6 = scmp.ge.s32.totalorder %s9519_s30, 4   ;;  %s9523_s28 = smov %s9520_s20 }
 0x80e   :  { %24 = sbr.rel (!%p22_p6) target bundleno = 10 (0xa), region = 126 }
 0x815   :  { %5781 = vsyncpa [#allocation3], 1 }
 0x816   :  { %5783 = vsyncpa [#allocation3 + $0x1], 1 }
 0x817   :  { %5784 = vsyncpa [#allocation6], 1 }
 0x818   :  { %5785 = vsyncpa [#allocation9], 1 }
 0x819   :  { %5786 = vsyncpa [#allocation12], 1 }
 0x81a   :  { %5787 = vsyncpa [#allocation4], 1 }
 0x81b   :  { %5789 = vsyncpa [#allocation4 + $0x1], 1 }

</bundles_post_ra>
